<compile_context>
chip_gen: v6e
topology: v6e:2x2x1
jax: 0.10.0
libtpu: 0.0.40
codegen_flags: <defaults>
</compile_context>

<pallas_src>
import jax
import jax.numpy as jnp
from jax.experimental import pallas as pl
from jax.experimental.pallas import tpu as pltpu


C_OUT1, C_OUT2, C_OUT3 = 16, 8, 4      # head widths of the reference module


# --------------------------- in-kernel helpers -------------------------------

def _pad_hw1(x):
    """Zero-pad a (H, W, C) tile by 1 pixel on each spatial side, in VMEM."""
    h, w, c = x.shape
    zrow = jnp.zeros((1, w, c), x.dtype)
    x = jnp.concatenate([zrow, x, zrow], axis=0)            # (H+2, W,   C)
    zcol = jnp.zeros((h + 2, 1, c), x.dtype)
    return jnp.concatenate([zcol, x, zcol], axis=1)          # (H+2, W+2, C)


def _conv3x3_im2col(x, w_mat, b_row):
    """3x3 'same' conv as ONE im2col MXU matmul.

    x:     (H, W, Cin)    f32 activation tile
    w_mat: (9*Cin, Cout)  bf16 weight, rows ordered (kh, kw, cin)
    b_row: (1, Cout)      f32 bias
    returns (H*W, Cout)   f32
    """
    h, w, c = x.shape
    xp = _pad_hw1(x)
    patches = jnp.concatenate(
        [xp[kh:kh + h, kw:kw + w, :] for kh in range(3) for kw in range(3)],
        axis=-1).reshape(h * w, 9 * c)                       # (HW, 9*Cin)
    y = jnp.dot(patches.astype(jnp.bfloat16), w_mat,
                preferred_element_type=jnp.float32)
    return y + b_row


def _silu(x):
    return x * jax.nn.sigmoid(x)


def _maxpool2x2(y):
    """2x2 / stride-2 max-pool on a (H, W, C) tile (even H, W assumed)."""
    h, w, c = y.shape
    y4 = y.reshape(h // 2, 2, w, c)
    yv = jnp.maximum(y4[:, 0], y4[:, 1])                     # vertical pool
    y4 = yv.reshape(h // 2, w // 2, 2, c)
    return jnp.maximum(y4[:, :, 0], y4[:, :, 1])             # horizontal pool


# ------------------------------ fused kernel ---------------------------------

def fused_kernel(x1_ref, x2_ref, wa_ref, ba_ref, wb_ref, bb_ref,
                 w3_ref, b3_ref, wh_ref, bh_ref, w3h_ref, b3h_ref, o_ref):
    """Entire SimpleConvModel forward for one batch element."""
    h, w = x1_ref.shape[1], x1_ref.shape[2]
    hp, wp = h // 2, w // 2
    ca = wa_ref.shape[-1]          # 32 = [branch1 16 | branch2 16]
    cb = wb_ref.shape[-1]          # 32

    # Both branches processed together: channels = [branch1 | branch2].
    x = jnp.concatenate([x1_ref[0], x2_ref[0]], axis=-1)          # (H, W, 6)

    # conv1a/conv2a (grouped block-diag weights) + bias + SiLU + 2x2 maxpool.
    ya = _conv3x3_im2col(x, wa_ref[...], ba_ref[...])             # (H*W, 32)
    ya = _maxpool2x2(_silu(ya).reshape(h, w, ca))                 # (Hp, Wp, 32)

    # conv1b/conv2b (grouped) + bias  ->  f_cat = [f1 | f2].
    fcat = _conv3x3_im2col(ya, wb_ref[...], bb_ref[...])          # (Hp*Wp, 32)

    # conv3 + bias + SiLU.
    g = _silu(_conv3x3_im2col(fcat.reshape(hp, wp, cb),
                              w3_ref[...], b3_ref[...]))          # (Hp*Wp, 32)

    # Heads: out1|out2 consume g; out3 consumes f_add = f1 + f2, expressed on
    # f_cat via the row-duplicated weight (see pack_params).
    out12 = jnp.dot(g.astype(jnp.bfloat16), wh_ref[...],
                    preferred_element_type=jnp.float32) + bh_ref[...]   # (HW, 24)
    out3 = jnp.dot(fcat.astype(jnp.bfloat16), w3h_ref[...],
                   preferred_element_type=jnp.float32) + b3h_ref[...]   # (HW, 4)

    o_ref[0] = jnp.concatenate([out12, out3], axis=-1).astype(o_ref.dtype)


# --------------------------- weight pre-packing -------------------------------

def _group2_hwio(w1, w2):
    """Two HWIO 3x3 weights -> one grouped weight (per-tap block-diagonal)."""
    kh, kw, cin1, cout1 = w1.shape
    _, _, cin2, cout2 = w2.shape
    top = jnp.concatenate([w1, jnp.zeros((kh, kw, cin1, cout2), w1.dtype)], axis=3)
    bot = jnp.concatenate([jnp.zeros((kh, kw, cin2, cout1), w2.dtype), w2], axis=3)
    return jnp.concatenate([top, bot], axis=2)   # (3, 3, cin1+cin2, cout1+cout2)


def _im2col_w(w):
    """(3, 3, Cin, Cout) HWIO -> (9*Cin, Cout), row order (kh, kw, cin)."""
    return w.reshape(9 * w.shape[2], w.shape[3])


def pack_params(p, mxu_dtype=jnp.bfloat16):
    """One-time pack of weights into kernel-ready (grouped, im2col, bf16) form."""
    return {
        "wa": _im2col_w(_group2_hwio(p["conv1a_w"], p["conv2a_w"])).astype(mxu_dtype),
        "ba": jnp.concatenate([p["conv1a_b"], p["conv2a_b"]]).reshape(1, -1),
        "wb": _im2col_w(_group2_hwio(p["conv1b_w"], p["conv2b_w"])).astype(mxu_dtype),
        "bb": jnp.concatenate([p["conv1b_b"], p["conv2b_b"]]).reshape(1, -1),
        "w3": _im2col_w(p["conv3_w"]).astype(mxu_dtype),
        "b3": p["conv3_b"].reshape(1, -1),
        # out1 | out2 share the same input (post-conv3 activation).
        "wh": jnp.concatenate([p["out1_w"], p["out2_w"]], axis=1).astype(mxu_dtype),
        "bh": jnp.concatenate([p["out1_b"], p["out2_b"]]).reshape(1, -1),
        # TODO(synk): the PyTorch reference declares conv_out3 = Conv2d(32, 4) but
        # applies it to the 16-channel f_add (a shape error there).  We keep the
        # previous semantics: zero-pad f_add to 32 channels == use the first 16
        # input-channel rows; on f_cat=[f1|f2] that is (f1+f2)@W[:16] ==
        # f_cat @ vstack(W[:16], W[:16]).
        "w3h": jnp.concatenate([p["out3_w"][:16], p["out3_w"][:16]],
                               axis=0).astype(mxu_dtype),
        "b3h": p["out3_b"].reshape(1, -1),
    }


# ------------------------------- model ---------------------------------------

def simple_conv_model(packed, x1, x2):
    """Forward pass: NCHW inputs -> (out1, out2, out3) NCHW, one pallas_call."""
    x1 = jnp.transpose(x1, (0, 2, 3, 1))    # NHWC for the kernel
    x2 = jnp.transpose(x2, (0, 2, 3, 1))
    n, h, w, cin = x1.shape
    assert h % 2 == 0 and w % 2 == 0, "2x2 max-pool assumes even H, W"
    hp, wp = h // 2, w // 2
    c_heads = C_OUT1 + C_OUT2 + C_OUT3      # 28 packed head channels

    def full(arr):
        shape = arr.shape
        return pl.BlockSpec(shape, lambda i, _s=len(shape): (0,) * _s)

    grid_spec = pltpu.PrefetchScalarGridSpec(
        num_scalar_prefetch=0,
        grid=(n,),
        in_specs=[
            pl.BlockSpec((1, h, w, cin), lambda i: (i, 0, 0, 0)),   # x1
            pl.BlockSpec((1, h, w, cin), lambda i: (i, 0, 0, 0)),   # x2
            full(packed["wa"]), full(packed["ba"]),
            full(packed["wb"]), full(packed["bb"]),
            full(packed["w3"]), full(packed["b3"]),
            full(packed["wh"]), full(packed["bh"]),
            full(packed["w3h"]), full(packed["b3h"]),
        ],
        out_specs=pl.BlockSpec((1, hp * wp, c_heads), lambda i: (i, 0, 0)),
    )

    out = pl.pallas_call(
        fused_kernel,
        out_shape=jax.ShapeDtypeStruct((n, hp * wp, c_heads), jnp.float32),
        grid_spec=grid_spec,
        compiler_params=pltpu.CompilerParams(
            dimension_semantics=("parallel",),       # batch axis -> both v7x TCs
            vmem_limit_bytes=16 * 1024 * 1024,       # working set is << 1 MiB
        ),
    )(x1, x2, packed["wa"], packed["ba"], packed["wb"], packed["bb"],
      packed["w3"], packed["b3"], packed["wh"], packed["bh"],
      packed["w3h"], packed["b3h"])

    out = out.reshape(n, hp, wp, c_heads)            # NHWC, heads packed on C
    out1 = jnp.transpose(out[..., :C_OUT1], (0, 3, 1, 2))
    out2 = jnp.transpose(out[..., C_OUT1:C_OUT1 + C_OUT2], (0, 3, 1, 2))
    out3 = jnp.transpose(out[..., C_OUT1 + C_OUT2:], (0, 3, 1, 2))
    return out1, out2, out3


# --------------------------- pure-JAX reference -------------------------------

def reference_model(params, x1, x2):
    """Plain XLA (f32) reference used to validate the fused Pallas kernel."""
    def conv(x, w, b):
        y = jax.lax.conv_general_dilated(
            x, w, window_strides=(1, 1), padding="SAME",
            dimension_numbers=("NHWC", "HWIO", "NHWC"))
        return y + b

    silu = lambda t: t * jax.nn.sigmoid(t)
    pool = lambda t: jax.lax.reduce_window(
        t, -jnp.inf, jax.lax.max, (1, 2, 2, 1), (1, 2, 2, 1), "VALID")

    x1 = jnp.transpose(x1, (0, 2, 3, 1))
    x2 = jnp.transpose(x2, (0, 2, 3, 1))
    f1 = conv(pool(silu(conv(x1, params["conv1a_w"], params["conv1a_b"]))),
              params["conv1b_w"], params["conv1b_b"])
    f2 = conv(pool(silu(conv(x2, params["conv2a_w"], params["conv2a_b"]))),
              params["conv2b_w"], params["conv2b_b"])
    f_add = f1 + f2
    f_cat = jnp.concatenate([f1, f2], axis=-1)
    g = silu(conv(f_cat, params["conv3_w"], params["conv3_b"]))
    out1 = jnp.einsum("nhwc,cd->nhwd", g, params["out1_w"]) + params["out1_b"]
    out2 = jnp.einsum("nhwc,cd->nhwd", g, params["out2_w"]) + params["out2_b"]
    out3 = (jnp.einsum("nhwc,cd->nhwd", f_add, params["out3_w"][:16])
            + params["out3_b"])
    return tuple(jnp.transpose(o, (0, 3, 1, 2)) for o in (out1, out2, out3))


# ----------------------------- parameters ------------------------------------

def conv_init(key, kh, kw, cin, cout):
    kw_key, kb_key = jax.random.split(key)
    bound = (kh * kw * cin) ** -0.5
    w = jax.random.uniform(kw_key, (kh, kw, cin, cout), jnp.float32,
                           -bound, bound)
    b = jax.random.uniform(kb_key, (cout,), jnp.float32, -bound, bound)
    return w, b


def make_params(key):
    ks = jax.random.split(key, 8)
    p = {}
    p["conv1a_w"], p["conv1a_b"] = conv_init(ks[0], 3, 3, 3, 16)
    p["conv1b_w"], p["conv1b_b"] = conv_init(ks[1], 3, 3, 16, 16)
    p["conv2a_w"], p["conv2a_b"] = conv_init(ks[2], 3, 3, 3, 16)
    p["conv2b_w"], p["conv2b_b"] = conv_init(ks[3], 3, 3, 16, 16)
    p["conv3_w"], p["conv3_b"] = conv_init(ks[4], 3, 3, 32, 32)
    w, b = conv_init(ks[5], 1, 1, 32, C_OUT1)
    p["out1_w"], p["out1_b"] = w.reshape(32, C_OUT1), b
    w, b = conv_init(ks[6], 1, 1, 32, C_OUT2)
    p["out2_w"], p["out2_b"] = w.reshape(32, C_OUT2), b
    w, b = conv_init(ks[7], 1, 1, 32, C_OUT3)
    p["out3_w"], p["out3_b"] = w.reshape(32, C_OUT3), b
    return p


# -------------------------------- main ----------------------------------------

if __name__ == "__main__":
    root = jax.random.PRNGKey(0)
    kp, kx1, kx2 = jax.random.split(root, 3)

    params = make_params(kp)
    packed = pack_params(params)

    # PyTorch-convention NCHW inputs: (batch=2, channels=3, 16, 16)
    x1 = jax.random.normal(kx1, (2, 3, 16, 16), jnp.float32)
    x2 = jax.random.normal(kx2, (2, 3, 16, 16), jnp.float32)

    fwd = jax.jit(simple_conv_model)
    out1, out2, out3 = fwd(packed, x1, x2)
    jax.block_until_ready((out1, out2, out3))

    assert out1.shape == (2, 16, 8, 8), out1.shape
    assert out2.shape == (2, 8, 8, 8), out2.shape
    assert out3.shape == (2, 4, 8, 8), out3.shape

    # Validate the fused bf16-MXU kernel against the f32 XLA reference.
    r1, r2, r3 = reference_model(params, x1, x2)
    for got, ref in ((out1, r1), (out2, r2), (out3, r3)):
        err = float(jnp.max(jnp.abs(got - ref)))
        assert err < 2e-1, f"mismatch vs reference: max abs err {err}"

    print("KERNEL_OK")
</pallas_src>

<mosaic_0001>
module attributes {stable_mosaic.version = 11 : i64} {
  func.func @fused_kernel(%arg0: i32, %arg1: memref<1x16x16x3xf32, #tpu.memory_space<vmem>>, %arg2: memref<1x16x16x3xf32, #tpu.memory_space<vmem>>, %arg3: memref<54x32xbf16, #tpu.memory_space<vmem>>, %arg4: memref<1x32xf32, #tpu.memory_space<vmem>>, %arg5: memref<288x32xbf16, #tpu.memory_space<vmem>>, %arg6: memref<1x32xf32, #tpu.memory_space<vmem>>, %arg7: memref<288x32xbf16, #tpu.memory_space<vmem>>, %arg8: memref<1x32xf32, #tpu.memory_space<vmem>>, %arg9: memref<32x24xbf16, #tpu.memory_space<vmem>>, %arg10: memref<1x24xf32, #tpu.memory_space<vmem>>, %arg11: memref<32x4xbf16, #tpu.memory_space<vmem>>, %arg12: memref<1x4xf32, #tpu.memory_space<vmem>>, %arg13: memref<1x64x28xf32, #tpu.memory_space<vmem>>) attributes {dimension_semantics = [#tpu.dimension_semantics<parallel>], iteration_bounds = array<i64: 2>, scalar_prefetch = 0 : i64, scratch_operands = 0 : i64, tpu.core_type = #tpu.core_type<tc>, window_params = [{transform_indices = @transform_0, window_bounds = array<i64: 1, 16, 16, 3>}, {transform_indices = @transform_1, window_bounds = array<i64: 1, 16, 16, 3>}, {pipeline_mode = #tpu.pipeline_mode<synchronous>, transform_indices = @transform_2, window_bounds = array<i64: 54, 32>}, {pipeline_mode = #tpu.pipeline_mode<synchronous>, transform_indices = @transform_3, window_bounds = array<i64: 1, 32>}, {pipeline_mode = #tpu.pipeline_mode<synchronous>, transform_indices = @transform_4, window_bounds = array<i64: 288, 32>}, {pipeline_mode = #tpu.pipeline_mode<synchronous>, transform_indices = @transform_5, window_bounds = array<i64: 1, 32>}, {pipeline_mode = #tpu.pipeline_mode<synchronous>, transform_indices = @transform_6, window_bounds = array<i64: 288, 32>}, {pipeline_mode = #tpu.pipeline_mode<synchronous>, transform_indices = @transform_7, window_bounds = array<i64: 1, 32>}, {pipeline_mode = #tpu.pipeline_mode<synchronous>, transform_indices = @transform_8, window_bounds = array<i64: 32, 24>}, {pipeline_mode = #tpu.pipeline_mode<synchronous>, transform_indices = @transform_9, window_bounds = array<i64: 1, 24>}, {pipeline_mode = #tpu.pipeline_mode<synchronous>, transform_indices = @transform_10, window_bounds = array<i64: 32, 4>}, {pipeline_mode = #tpu.pipeline_mode<synchronous>, transform_indices = @transform_11, window_bounds = array<i64: 1, 4>}, {transform_indices = @transform_12, window_bounds = array<i64: 1, 64, 28>}]} {
    %c0 = arith.constant 0 : index
    %c0_0 = arith.constant 0 : index
    %c0_1 = arith.constant 0 : index
    %c0_2 = arith.constant 0 : index
    %0 = vector.load %arg1[%c0, %c0_0, %c0_1, %c0_2] : memref<1x16x16x3xf32, #tpu.memory_space<vmem>>, vector<1x16x16x3xf32>
    %1 = vector.shape_cast %0 : vector<1x16x16x3xf32> to vector<16x16x3xf32>
    %c0_3 = arith.constant 0 : index
    %c0_4 = arith.constant 0 : index
    %c0_5 = arith.constant 0 : index
    %c0_6 = arith.constant 0 : index
    %2 = vector.load %arg2[%c0_3, %c0_4, %c0_5, %c0_6] : memref<1x16x16x3xf32, #tpu.memory_space<vmem>>, vector<1x16x16x3xf32>
    %3 = vector.shape_cast %2 : vector<1x16x16x3xf32> to vector<16x16x3xf32>
    %4 = tpu.concatenate %1, %3 in 2 : vector<16x16x3xf32>, vector<16x16x3xf32> -> vector<16x16x6xf32>
    %c0_7 = arith.constant 0 : index
    %c0_8 = arith.constant 0 : index
    %5 = vector.load %arg3[%c0_7, %c0_8] : memref<54x32xbf16, #tpu.memory_space<vmem>>, vector<54x32xbf16>
    %c0_9 = arith.constant 0 : index
    %c0_10 = arith.constant 0 : index
    %6 = vector.load %arg4[%c0_9, %c0_10] : memref<1x32xf32, #tpu.memory_space<vmem>>, vector<1x32xf32>
    %cst = arith.constant 0.000000e+00 : f32
    %7 = vector.broadcast %cst : f32 to vector<1x16x6xf32>
    %8 = tpu.concatenate %7, %4, %7 in 0 : vector<1x16x6xf32>, vector<16x16x6xf32>, vector<1x16x6xf32> -> vector<18x16x6xf32>
    %cst_11 = arith.constant 0.000000e+00 : f32
    %9 = vector.broadcast %cst_11 : f32 to vector<18x1x6xf32>
    %10 = tpu.concatenate %9, %8, %9 in 1 : vector<18x1x6xf32>, vector<18x16x6xf32>, vector<18x1x6xf32> -> vector<18x18x6xf32>
    %11 = vector.extract_strided_slice %10 {offsets = [0, 0, 0], sizes = [16, 16, 6], strides = [1, 1, 1]} : vector<18x18x6xf32> to vector<16x16x6xf32>
    %12 = vector.extract_strided_slice %10 {offsets = [0, 1, 0], sizes = [16, 16, 6], strides = [1, 1, 1]} : vector<18x18x6xf32> to vector<16x16x6xf32>
    %13 = vector.extract_strided_slice %10 {offsets = [0, 2, 0], sizes = [16, 16, 6], strides = [1, 1, 1]} : vector<18x18x6xf32> to vector<16x16x6xf32>
    %14 = vector.extract_strided_slice %10 {offsets = [1, 0, 0], sizes = [16, 16, 6], strides = [1, 1, 1]} : vector<18x18x6xf32> to vector<16x16x6xf32>
    %15 = vector.extract_strided_slice %10 {offsets = [1, 1, 0], sizes = [16, 16, 6], strides = [1, 1, 1]} : vector<18x18x6xf32> to vector<16x16x6xf32>
    %16 = vector.extract_strided_slice %10 {offsets = [1, 2, 0], sizes = [16, 16, 6], strides = [1, 1, 1]} : vector<18x18x6xf32> to vector<16x16x6xf32>
    %17 = vector.extract_strided_slice %10 {offsets = [2, 0, 0], sizes = [16, 16, 6], strides = [1, 1, 1]} : vector<18x18x6xf32> to vector<16x16x6xf32>
    %18 = vector.extract_strided_slice %10 {offsets = [2, 1, 0], sizes = [16, 16, 6], strides = [1, 1, 1]} : vector<18x18x6xf32> to vector<16x16x6xf32>
    %19 = vector.extract_strided_slice %10 {offsets = [2, 2, 0], sizes = [16, 16, 6], strides = [1, 1, 1]} : vector<18x18x6xf32> to vector<16x16x6xf32>
    %20 = tpu.concatenate %11, %12, %13, %14, %15, %16, %17, %18, %19 in 2 : vector<16x16x6xf32>, vector<16x16x6xf32>, vector<16x16x6xf32>, vector<16x16x6xf32>, vector<16x16x6xf32>, vector<16x16x6xf32>, vector<16x16x6xf32>, vector<16x16x6xf32>, vector<16x16x6xf32> -> vector<16x16x54xf32>
    %21 = vector.shape_cast %20 : vector<16x16x54xf32> to vector<256x54xf32>
    %22 = arith.truncf %21 : vector<256x54xf32> to vector<256x54xbf16>
    %cst_12 = arith.constant dense<0.000000e+00> : vector<256x32xf32>
    %23 = tpu.matmul %22, %5, %cst_12 {dimension_numbers = #tpu.dot_dimension_numbers<[1], [0], [0], [1], [0, 0, 1, 1], [], []>} : vector<256x54xbf16>, vector<54x32xbf16>, vector<256x32xf32> -> vector<256x32xf32>
    %24 = vector.broadcast %6 : vector<1x32xf32> to vector<256x32xf32>
    %25 = arith.addf %23, %24 : vector<256x32xf32>
    %26 = arith.negf %25 : vector<256x32xf32>
    %27 = math.exp %26 : vector<256x32xf32>
    %cst_13 = arith.constant 1.000000e+00 : f32
    %28 = vector.broadcast %cst_13 : f32 to vector<256x32xf32>
    %29 = arith.addf %28, %27 : vector<256x32xf32>
    %30 = arith.divf %28, %29 : vector<256x32xf32>
    %31 = arith.mulf %25, %30 : vector<256x32xf32>
    %32 = vector.shape_cast %31 : vector<256x32xf32> to vector<16x16x32xf32>
    %33 = vector.shape_cast %32 : vector<16x16x32xf32> to vector<8x2x16x32xf32>
    %34 = vector.extract_strided_slice %33 {offsets = [0, 0, 0, 0], sizes = [8, 1, 16, 32], strides = [1, 1, 1, 1]} : vector<8x2x16x32xf32> to vector<8x1x16x32xf32>
    %35 = vector.shape_cast %34 : vector<8x1x16x32xf32> to vector<8x16x32xf32>
    %36 = vector.extract_strided_slice %33 {offsets = [0, 1, 0, 0], sizes = [8, 1, 16, 32], strides = [1, 1, 1, 1]} : vector<8x2x16x32xf32> to vector<8x1x16x32xf32>
    %37 = vector.shape_cast %36 : vector<8x1x16x32xf32> to vector<8x16x32xf32>
    %38 = arith.maximumf %35, %37 : vector<8x16x32xf32>
    %39 = vector.shape_cast %38 : vector<8x16x32xf32> to vector<8x8x2x32xf32>
    %40 = vector.extract_strided_slice %39 {offsets = [0, 0, 0, 0], sizes = [8, 8, 1, 32], strides = [1, 1, 1, 1]} : vector<8x8x2x32xf32> to vector<8x8x1x32xf32>
    %41 = vector.shape_cast %40 : vector<8x8x1x32xf32> to vector<8x8x32xf32>
    %42 = vector.extract_strided_slice %39 {offsets = [0, 0, 1, 0], sizes = [8, 8, 1, 32], strides = [1, 1, 1, 1]} : vector<8x8x2x32xf32> to vector<8x8x1x32xf32>
    %43 = vector.shape_cast %42 : vector<8x8x1x32xf32> to vector<8x8x32xf32>
    %44 = arith.maximumf %41, %43 : vector<8x8x32xf32>
    %c0_14 = arith.constant 0 : index
    %c0_15 = arith.constant 0 : index
    %45 = vector.load %arg5[%c0_14, %c0_15] : memref<288x32xbf16, #tpu.memory_space<vmem>>, vector<288x32xbf16>
    %c0_16 = arith.constant 0 : index
    %c0_17 = arith.constant 0 : index
    %46 = vector.load %arg6[%c0_16, %c0_17] : memref<1x32xf32, #tpu.memory_space<vmem>>, vector<1x32xf32>
    %cst_18 = arith.constant 0.000000e+00 : f32
    %47 = vector.broadcast %cst_18 : f32 to vector<1x8x32xf32>
    %48 = tpu.concatenate %47, %44, %47 in 0 : vector<1x8x32xf32>, vector<8x8x32xf32>, vector<1x8x32xf32> -> vector<10x8x32xf32>
    %cst_19 = arith.constant 0.000000e+00 : f32
    %49 = vector.broadcast %cst_19 : f32 to vector<10x1x32xf32>
    %50 = tpu.concatenate %49, %48, %49 in 1 : vector<10x1x32xf32>, vector<10x8x32xf32>, vector<10x1x32xf32> -> vector<10x10x32xf32>
    %51 = vector.extract_strided_slice %50 {offsets = [0, 0, 0], sizes = [8, 8, 32], strides = [1, 1, 1]} : vector<10x10x32xf32> to vector<8x8x32xf32>
    %52 = vector.extract_strided_slice %50 {offsets = [0, 1, 0], sizes = [8, 8, 32], strides = [1, 1, 1]} : vector<10x10x32xf32> to vector<8x8x32xf32>
    %53 = vector.extract_strided_slice %50 {offsets = [0, 2, 0], sizes = [8, 8, 32], strides = [1, 1, 1]} : vector<10x10x32xf32> to vector<8x8x32xf32>
    %54 = vector.extract_strided_slice %50 {offsets = [1, 0, 0], sizes = [8, 8, 32], strides = [1, 1, 1]} : vector<10x10x32xf32> to vector<8x8x32xf32>
    %55 = vector.extract_strided_slice %50 {offsets = [1, 1, 0], sizes = [8, 8, 32], strides = [1, 1, 1]} : vector<10x10x32xf32> to vector<8x8x32xf32>
    %56 = vector.extract_strided_slice %50 {offsets = [1, 2, 0], sizes = [8, 8, 32], strides = [1, 1, 1]} : vector<10x10x32xf32> to vector<8x8x32xf32>
    %57 = vector.extract_strided_slice %50 {offsets = [2, 0, 0], sizes = [8, 8, 32], strides = [1, 1, 1]} : vector<10x10x32xf32> to vector<8x8x32xf32>
    %58 = vector.extract_strided_slice %50 {offsets = [2, 1, 0], sizes = [8, 8, 32], strides = [1, 1, 1]} : vector<10x10x32xf32> to vector<8x8x32xf32>
    %59 = vector.extract_strided_slice %50 {offsets = [2, 2, 0], sizes = [8, 8, 32], strides = [1, 1, 1]} : vector<10x10x32xf32> to vector<8x8x32xf32>
    %60 = tpu.concatenate %51, %52, %53, %54, %55, %56, %57, %58, %59 in 2 : vector<8x8x32xf32>, vector<8x8x32xf32>, vector<8x8x32xf32>, vector<8x8x32xf32>, vector<8x8x32xf32>, vector<8x8x32xf32>, vector<8x8x32xf32>, vector<8x8x32xf32>, vector<8x8x32xf32> -> vector<8x8x288xf32>
    %61 = vector.shape_cast %60 : vector<8x8x288xf32> to vector<64x288xf32>
    %62 = arith.truncf %61 : vector<64x288xf32> to vector<64x288xbf16>
    %cst_20 = arith.constant dense<0.000000e+00> : vector<64x32xf32>
    %63 = tpu.matmul %62, %45, %cst_20 {dimension_numbers = #tpu.dot_dimension_numbers<[1], [0], [0], [1], [0, 0, 1, 1], [], []>} : vector<64x288xbf16>, vector<288x32xbf16>, vector<64x32xf32> -> vector<64x32xf32>
    %64 = vector.broadcast %46 : vector<1x32xf32> to vector<64x32xf32>
    %65 = arith.addf %63, %64 : vector<64x32xf32>
    %66 = vector.shape_cast %65 : vector<64x32xf32> to vector<8x8x32xf32>
    %c0_21 = arith.constant 0 : index
    %c0_22 = arith.constant 0 : index
    %67 = vector.load %arg7[%c0_21, %c0_22] : memref<288x32xbf16, #tpu.memory_space<vmem>>, vector<288x32xbf16>
    %c0_23 = arith.constant 0 : index
    %c0_24 = arith.constant 0 : index
    %68 = vector.load %arg8[%c0_23, %c0_24] : memref<1x32xf32, #tpu.memory_space<vmem>>, vector<1x32xf32>
    %cst_25 = arith.constant 0.000000e+00 : f32
    %69 = vector.broadcast %cst_25 : f32 to vector<1x8x32xf32>
    %70 = tpu.concatenate %69, %66, %69 in 0 : vector<1x8x32xf32>, vector<8x8x32xf32>, vector<1x8x32xf32> -> vector<10x8x32xf32>
    %cst_26 = arith.constant 0.000000e+00 : f32
    %71 = vector.broadcast %cst_26 : f32 to vector<10x1x32xf32>
    %72 = tpu.concatenate %71, %70, %71 in 1 : vector<10x1x32xf32>, vector<10x8x32xf32>, vector<10x1x32xf32> -> vector<10x10x32xf32>
    %73 = vector.extract_strided_slice %72 {offsets = [0, 0, 0], sizes = [8, 8, 32], strides = [1, 1, 1]} : vector<10x10x32xf32> to vector<8x8x32xf32>
    %74 = vector.extract_strided_slice %72 {offsets = [0, 1, 0], sizes = [8, 8, 32], strides = [1, 1, 1]} : vector<10x10x32xf32> to vector<8x8x32xf32>
    %75 = vector.extract_strided_slice %72 {offsets = [0, 2, 0], sizes = [8, 8, 32], strides = [1, 1, 1]} : vector<10x10x32xf32> to vector<8x8x32xf32>
    %76 = vector.extract_strided_slice %72 {offsets = [1, 0, 0], sizes = [8, 8, 32], strides = [1, 1, 1]} : vector<10x10x32xf32> to vector<8x8x32xf32>
    %77 = vector.extract_strided_slice %72 {offsets = [1, 1, 0], sizes = [8, 8, 32], strides = [1, 1, 1]} : vector<10x10x32xf32> to vector<8x8x32xf32>
    %78 = vector.extract_strided_slice %72 {offsets = [1, 2, 0], sizes = [8, 8, 32], strides = [1, 1, 1]} : vector<10x10x32xf32> to vector<8x8x32xf32>
    %79 = vector.extract_strided_slice %72 {offsets = [2, 0, 0], sizes = [8, 8, 32], strides = [1, 1, 1]} : vector<10x10x32xf32> to vector<8x8x32xf32>
    %80 = vector.extract_strided_slice %72 {offsets = [2, 1, 0], sizes = [8, 8, 32], strides = [1, 1, 1]} : vector<10x10x32xf32> to vector<8x8x32xf32>
    %81 = vector.extract_strided_slice %72 {offsets = [2, 2, 0], sizes = [8, 8, 32], strides = [1, 1, 1]} : vector<10x10x32xf32> to vector<8x8x32xf32>
    %82 = tpu.concatenate %73, %74, %75, %76, %77, %78, %79, %80, %81 in 2 : vector<8x8x32xf32>, vector<8x8x32xf32>, vector<8x8x32xf32>, vector<8x8x32xf32>, vector<8x8x32xf32>, vector<8x8x32xf32>, vector<8x8x32xf32>, vector<8x8x32xf32>, vector<8x8x32xf32> -> vector<8x8x288xf32>
    %83 = vector.shape_cast %82 : vector<8x8x288xf32> to vector<64x288xf32>
    %84 = arith.truncf %83 : vector<64x288xf32> to vector<64x288xbf16>
    %cst_27 = arith.constant dense<0.000000e+00> : vector<64x32xf32>
    %85 = tpu.matmul %84, %67, %cst_27 {dimension_numbers = #tpu.dot_dimension_numbers<[1], [0], [0], [1], [0, 0, 1, 1], [], []>} : vector<64x288xbf16>, vector<288x32xbf16>, vector<64x32xf32> -> vector<64x32xf32>
    %86 = vector.broadcast %68 : vector<1x32xf32> to vector<64x32xf32>
    %87 = arith.addf %85, %86 : vector<64x32xf32>
    %88 = arith.negf %87 : vector<64x32xf32>
    %89 = math.exp %88 : vector<64x32xf32>
    %cst_28 = arith.constant 1.000000e+00 : f32
    %90 = vector.broadcast %cst_28 : f32 to vector<64x32xf32>
    %91 = arith.addf %90, %89 : vector<64x32xf32>
    %92 = arith.divf %90, %91 : vector<64x32xf32>
    %93 = arith.mulf %87, %92 : vector<64x32xf32>
    %94 = arith.truncf %93 : vector<64x32xf32> to vector<64x32xbf16>
    %c0_29 = arith.constant 0 : index
    %c0_30 = arith.constant 0 : index
    %95 = vector.load %arg9[%c0_29, %c0_30] : memref<32x24xbf16, #tpu.memory_space<vmem>>, vector<32x24xbf16>
    %cst_31 = arith.constant dense<0.000000e+00> : vector<64x24xf32>
    %96 = tpu.matmul %94, %95, %cst_31 {dimension_numbers = #tpu.dot_dimension_numbers<[1], [0], [0], [1], [0, 0, 1, 1], [], []>} : vector<64x32xbf16>, vector<32x24xbf16>, vector<64x24xf32> -> vector<64x24xf32>
    %c0_32 = arith.constant 0 : index
    %c0_33 = arith.constant 0 : index
    %97 = vector.load %arg10[%c0_32, %c0_33] : memref<1x24xf32, #tpu.memory_space<vmem>>, vector<1x24xf32>
    %98 = vector.broadcast %97 : vector<1x24xf32> to vector<64x24xf32>
    %99 = arith.addf %96, %98 : vector<64x24xf32>
    %100 = arith.truncf %65 : vector<64x32xf32> to vector<64x32xbf16>
    %c0_34 = arith.constant 0 : index
    %c0_35 = arith.constant 0 : index
    %101 = vector.load %arg11[%c0_34, %c0_35] : memref<32x4xbf16, #tpu.memory_space<vmem>>, vector<32x4xbf16>
    %cst_36 = arith.constant dense<0.000000e+00> : vector<64x4xf32>
    %102 = tpu.matmul %100, %101, %cst_36 {dimension_numbers = #tpu.dot_dimension_numbers<[1], [0], [0], [1], [0, 0, 1, 1], [], []>} : vector<64x32xbf16>, vector<32x4xbf16>, vector<64x4xf32> -> vector<64x4xf32>
    %c0_37 = arith.constant 0 : index
    %c0_38 = arith.constant 0 : index
    %103 = vector.load %arg12[%c0_37, %c0_38] : memref<1x4xf32, #tpu.memory_space<vmem>>, vector<1x4xf32>
    %104 = vector.broadcast %103 : vector<1x4xf32> to vector<64x4xf32>
    %105 = arith.addf %102, %104 : vector<64x4xf32>
    %106 = tpu.concatenate %99, %105 in 1 : vector<64x24xf32>, vector<64x4xf32> -> vector<64x28xf32>
    %c0_39 = arith.constant 0 : index
    %c0_40 = arith.constant 0 : index
    %c0_41 = arith.constant 0 : index
    %107 = vector.load %arg13[%c0_39, %c0_40, %c0_41] : memref<1x64x28xf32, #tpu.memory_space<vmem>>, vector<1x64x28xf32>
    %108 = vector.shape_cast %107 : vector<1x64x28xf32> to vector<64x28xf32>
    %109 = vector.shape_cast %106 : vector<64x28xf32> to vector<1x64x28xf32>
    tpu.vector_store %arg13[%c0_39, %c0_40, %c0_41], %109 {strides = array<i32>} : memref<1x64x28xf32, #tpu.memory_space<vmem>>, vector<1x64x28xf32>,
    return
  }
  func.func @transform_0(%arg0: i32) -> (i32, i32, i32, i32) {
    %c0_i32 = arith.constant 0 : i32
    %c0_i32_0 = arith.constant 0 : i32
    %c0_i32_1 = arith.constant 0 : i32
    %c0_i32_2 = arith.constant 0 : i32
    return %arg0, %c0_i32, %c0_i32_0, %c0_i32_1 : i32, i32, i32, i32
  }
  func.func @transform_1(%arg0: i32) -> (i32, i32, i32, i32) {
    %c0_i32 = arith.constant 0 : i32
    %c0_i32_0 = arith.constant 0 : i32
    %c0_i32_1 = arith.constant 0 : i32
    %c0_i32_2 = arith.constant 0 : i32
    return %arg0, %c0_i32, %c0_i32_0, %c0_i32_1 : i32, i32, i32, i32
  }
  func.func @transform_2(%arg0: i32) -> (i32, i32) {
    %c0_i32 = arith.constant 0 : i32
    %c0_i32_0 = arith.constant 0 : i32
    %c0_i32_1 = arith.constant 0 : i32
    return %c0_i32, %c0_i32_0 : i32, i32
  }
  func.func @transform_3(%arg0: i32) -> (i32, i32) {
    %c0_i32 = arith.constant 0 : i32
    %c0_i32_0 = arith.constant 0 : i32
    %c0_i32_1 = arith.constant 0 : i32
    return %c0_i32, %c0_i32_0 : i32, i32
  }
  func.func @transform_4(%arg0: i32) -> (i32, i32) {
    %c0_i32 = arith.constant 0 : i32
    %c0_i32_0 = arith.constant 0 : i32
    %c0_i32_1 = arith.constant 0 : i32
    return %c0_i32, %c0_i32_0 : i32, i32
  }
  func.func @transform_5(%arg0: i32) -> (i32, i32) {
    %c0_i32 = arith.constant 0 : i32
    %c0_i32_0 = arith.constant 0 : i32
    %c0_i32_1 = arith.constant 0 : i32
    return %c0_i32, %c0_i32_0 : i32, i32
  }
  func.func @transform_6(%arg0: i32) -> (i32, i32) {
    %c0_i32 = arith.constant 0 : i32
    %c0_i32_0 = arith.constant 0 : i32
    %c0_i32_1 = arith.constant 0 : i32
    return %c0_i32, %c0_i32_0 : i32, i32
  }
  func.func @transform_7(%arg0: i32) -> (i32, i32) {
    %c0_i32 = arith.constant 0 : i32
    %c0_i32_0 = arith.constant 0 : i32
    %c0_i32_1 = arith.constant 0 : i32
    return %c0_i32, %c0_i32_0 : i32, i32
  }
  func.func @transform_8(%arg0: i32) -> (i32, i32) {
    %c0_i32 = arith.constant 0 : i32
    %c0_i32_0 = arith.constant 0 : i32
    %c0_i32_1 = arith.constant 0 : i32
    return %c0_i32, %c0_i32_0 : i32, i32
  }
  func.func @transform_9(%arg0: i32) -> (i32, i32) {
    %c0_i32 = arith.constant 0 : i32
    %c0_i32_0 = arith.constant 0 : i32
    %c0_i32_1 = arith.constant 0 : i32
    return %c0_i32, %c0_i32_0 : i32, i32
  }
  func.func @transform_10(%arg0: i32) -> (i32, i32) {
    %c0_i32 = arith.constant 0 : i32
    %c0_i32_0 = arith.constant 0 : i32
    %c0_i32_1 = arith.constant 0 : i32
    return %c0_i32, %c0_i32_0 : i32, i32
  }
  func.func @transform_11(%arg0: i32) -> (i32, i32) {
    %c0_i32 = arith.constant 0 : i32
    %c0_i32_0 = arith.constant 0 : i32
    %c0_i32_1 = arith.constant 0 : i32
    return %c0_i32, %c0_i32_0 : i32, i32
  }
  func.func @transform_12(%arg0: i32) -> (i32, i32, i32) {
    %c0_i32 = arith.constant 0 : i32
    %c0_i32_0 = arith.constant 0 : i32
    %c0_i32_1 = arith.constant 0 : i32
    return %arg0, %c0_i32, %c0_i32_0 : i32, i32, i32
  }
}

</mosaic_0001>

<bundles_post_ra>
// kernel: simple_conv_model.1
= control target key start
LH: loop header
LB: loop body
LE: loop exit
PB: predicated region body
PF: predicated region fallthrough
CT: control target
= control target key end

     0   :  { %s6834_s21 = smov 0   ;;  %s9157_s0 = inlined_call_operand.vmem [shape: f32[2,16,16,3], index: 0, kind: input, shape index: {}]   ;;  %s9158_s1 = inlined_call_operand.vmem [shape: f32[2,16,16,3], index: 1, kind: input, shape index: {}]   ;;  %s9159_s2 = inlined_call_operand.vmem [shape: bf16[54,32], index: 2, kind: input, shape index: {}]   ;;  %s9160_s3 = inlined_call_operand.vmem [shape: f32[1,32], index: 3, kind: input, shape index: {}]   ;;  %s9161_s4 = inlined_call_operand.vmem [shape: bf16[288,32], index: 4, kind: input, shape index: {}]   ;;  %s9162_s5 = inlined_call_operand.vmem [shape: f32[1,32], index: 5, kind: input, shape index: {}]   ;;  %s9163_s6 = inlined_call_operand.vmem [shape: bf16[288,32], index: 6, kind: input, shape index: {}]   ;;  %s9164_s7 = inlined_call_operand.vmem [shape: f32[1,32], index: 7, kind: input, shape index: {}]   ;;  %s9165_s8 = inlined_call_operand.vmem [shape: bf16[32,24], index: 8, kind: input, shape index: {}]   ;;  %s9166_s9 = inlined_call_operand.vmem [shape: f32[1,24], index: 9, kind: input, shape index: {}]   ;;  %s9167_s10 = inlined_call_operand.vmem [shape: bf16[32,4], index: 10, kind: input, shape index: {}]   ;;  %s9168_s11 = inlined_call_operand.vmem [shape: f32[1,4], index: 11, kind: input, shape index: {}]   ;;  %s9169_s12 = inlined_call_operand.vmem [shape: f32[2,64,28], index: 12, kind: output, shape index: {}]  }
   0x1 LB: > { %s5157_s22 = sadd.s32 4294967295, %s6753_s21   ;;  %p5161_p0 = scmp.ge.s32.totalorder %s6753_s21, 1  ;;  %s6753_s21 = sphi %s6834_s21, %s22_s21  }
   0x2   : > { %p372_p1 = scmp.lt.s32.totalorder %s6753_s21, 3 }
   0x4   : > { %p373_p2 = pnand %p5161_p0, %p372_p1 }
   0x6   : > { %376 = sbr.rel (%p373_p2) target bundleno = 1854 (0x73e), region = 68 }
   0xb   : > { %p419_p3 = scmp.lt.s32.totalorder %s5157_s22, 1  ;;  %vm701_vm0 = vcmask 1040384   ;;  %v6755_v0 = vmov 0.0   ;;  %vm867_vm1 = vcmask 1046528   ;;  %vm1044_vm2 = vcmask 1045504   ;;  %s6756_s27 = smov 3  }
   0xc   : > { %v6842_v1 = vrot.slane %v6755_v0, 7  ;;  %s6757_s28 = smov 6   ;;  %s6758_s29 = smov 12   ;;  %vm627_vm3 = vcmask 23552   ;;  %vm2165_vm4 = vcmask 1042432   ;;  %vm1809_vm5 = vcmask 48128  }
   0xd   : > { %s9230_s22 = smov (!%p419_p3, %s5157_s22), 1  ;;  %s6759_s15 = smov 18   ;;  %vm1842_vm6 = vcmask 97280   ;;  %vm1875_vm7 = vcmask 146432   ;;  %vm1908_vm8 = vcmask 195584   ;;  %vm1941_vm9 = vcmask 244736  }
   0xe   : > { %9189 = vst [vmem:[#allocation2_spill] sm:$0xff] %v6842_v1  ;;  %v6848_v2 = vsel %vm701_vm0, 0.0, %v6842_v1  ;;  %v6852_v3 = vsel %vm701_vm0, %v6842_v1, 0.0  ;;  %v869_v4 = vrot.slane %v6842_v1, 1  ;;  %v1046_v5 = vrot.slane %v6842_v1, 2  ;;  %s5355_s23 = sshll.u32 %s9230_s22, 8 }
   0xf   : > { %9190 = vst [vmem:[#allocation3_spill] sm:$0xff] %v6848_v2  ;;  %9191 = vst [vmem:[#allocation4_spill] sm:$0xff] %v6852_v3  ;;  %v9172_v6 = vrot.slane %v6848_v2, 1  ;;  %v9173_v7 = vrot.slane %v6852_v3, 1  ;;  %v9170_v8 = vrot.slane %v6848_v2, 2  ;;  %v9171_v9 = vrot.slane %v6852_v3, 2  ;;  %s6866_s26 = scalar_lea.vmem %s9158_s1, %s5355_s23  ;;  %s6941_s14 = scalar_lea.vmem %s9157_s0, %s5355_s23 }
  0x10   : > { %v467_v10 = vld [vmem:[%s6866_s26] sm:$0xff]  ;;  %v468_v11 = vld [vmem:[%s6866_s26 + $0x8] sm:$0xff]  ;;  %v469_v12 = vld [vmem:[%s6866_s26 + $0x10] sm:$0xff]  ;;  %s6760_s16 = smov 36   ;;  %s6761_s17 = smov 24   ;;  %vm1974_vm10 = vcmask 293888  }
  0x11   : > { %v870_v13 = vsel %vm867_vm1, %v9172_v6, %v869_v4  ;;  %v872_v14 = vsel %vm867_vm1, %v869_v4, %v9173_v7  ;;  %v1047_v15 = vsel %vm1044_vm2, %v9170_v8, %v1046_v5  ;;  %v1049_v16 = vsel %vm1044_vm2, %v1046_v5, %v9171_v9  ;;  %v470_v18 = vld [vmem:[%s6866_s26 + $0x18] sm:$0xff]  ;;  %v471_v19 = vld [vmem:[%s6866_s26 + $0x20] sm:$0xff]  ;;  %v472_v20 = vld [vmem:[%s6866_s26 + $0x28] sm:$0xff]  ;;  %s6762_s18 = smov 30   ;;  %s6763_s19 = smov 42  }
  0x12   : > { %v5597_v17 = vpack.i.bf16 %v468_v11, %v467_v10  ;;  %v6886_v21 = vpack.i.bf16 %v872_v14, %v870_v13  ;;  %v6888_v22 = vpack.i.bf16 %v1049_v16, %v1047_v15  ;;  %v5607_v23 = vpack.i.bf16 %v472_v20, %v471_v19  ;;  %v473_v24 = vld [vmem:[%s6866_s26 + $0x30] sm:$0xff]  ;;  %v474_v25 = vld [vmem:[%s6866_s26 + $0x38] sm:$0xff]  ;;  %v475_v28 = vld [vmem:[%s6866_s26 + $0x40] sm:$0xff]  ;;  %s6764_s20 = smov 48  }
  0x13   : > { %v5602_v26 = vpack.i.bf16 %v470_v18, %v469_v12  ;;  %v5612_v27 = vpack.i.bf16 %v474_v25, %v473_v24  ;;  %v476_v29 = vld [vmem:[%s6866_s26 + $0x48] sm:$0xff]  ;;  %v477_v30 = vld [vmem:[%s6866_s26 + $0x50] sm:$0xff]  ;;  %v478_v31 = vld [vmem:[%s6866_s26 + $0x58] sm:$0xff]  ;;  %vm2007_vm11 = vcmask 343040   ;;  %vm2040_vm12 = vcmask 392192  }
  0x14   : > { %9192 = vst [vmem:[#allocation5_spill] sm:$0xff] %v6886_v21  ;;  %9193 = vst [vmem:[#allocation6_spill] sm:$0xff] %v6888_v22  ;;  %5598 = vrot.lane.b32.xlu0 %v5597_v17, %s6756_s27  ;;  %5608 = vrot.lane.b32.xlu1 %v5607_v23, %s6756_s27  ;;  %v5617_v32 = vpack.i.bf16 %v476_v29, %v475_v28  ;;  %v5622_v33 = vpack.i.bf16 %v478_v31, %v477_v30  ;;  %v479_v34 = vld [vmem:[%s6866_s26 + $0x60] sm:$0xff]  ;;  %v480_v35 = vld [vmem:[%s6866_s26 + $0x68] sm:$0xff]  ;;  %vm2116_vm13 = vcmask 441344   ;;  %vm3535_vm14 = vcmask 1041409  }
  0x15   : > { %v481_v36 = vld [vmem:[%s6866_s26 + $0x70] sm:$0xff]  ;;  %v482_v37 = vld [vmem:[%s6866_s26 + $0x78] sm:$0xff]  ;;  %v5627_v38 = vpack.i.bf16 %v480_v35, %v479_v34  ;;  %v483_v39 = vld [vmem:[%s6866_s26 + $0x80] sm:$0xff]  ;;  %vm3537_vm15 = vcmask 1042434  }
  0x16   : > { %v484_v40 = vld [vmem:[%s6866_s26 + $0x88] sm:$0xff]  ;;  %v5632_v41 = vpack.i.bf16 %v482_v37, %v481_v36  ;;  %v485_v42 = vld [vmem:[%s6866_s26 + $0x90] sm:$0xff]  ;;  %v486_v43 = vld [vmem:[%s6866_s26 + $0x98] sm:$0xff] }
  0x17   : > { %v487_v44 = vld [vmem:[%s6866_s26 + $0xa0] sm:$0xff]  ;;  %v488_v45 = vld [vmem:[%s6866_s26 + $0xa8] sm:$0xff]  ;;  %v5637_v46 = vpack.i.bf16 %v484_v40, %v483_v39  ;;  %v489_v47 = vld [vmem:[%s6866_s26 + $0xb0] sm:$0xff]  ;;  %v5642_v49 = vpack.i.bf16 %v486_v43, %v485_v42 }
  0x18   : > { %5603 = vrot.lane.b32.xlu0 %v5602_v26, %s6756_s27  ;;  %5613 = vrot.lane.b32.xlu1 %v5612_v27, %s6756_s27  ;;  %v490_v48 = vld [vmem:[%s6866_s26 + $0xb8] sm:$0xff]  ;;  %v491_v50 = vld [vmem:[%s6866_s26 + $0xc0] sm:$0xff]  ;;  %v5647_v52 = vpack.i.bf16 %v488_v45, %v487_v44 }
  0x19   : > { %v492_v51 = vld [vmem:[%s6866_s26 + $0xc8] sm:$0xff]  ;;  %v493_v53 = vld [vmem:[%s6866_s26 + $0xd0] sm:$0xff]  ;;  %v494_v54 = vld [vmem:[%s6866_s26 + $0xd8] sm:$0xff]  ;;  %v5652_v55 = vpack.i.bf16 %v490_v48, %v489_v47 }
  0x1a   : > { %v495_v56 = vld [vmem:[%s6866_s26 + $0xe0] sm:$0xff]  ;;  %v496_v57 = vld [vmem:[%s6866_s26 + $0xe8] sm:$0xff]  ;;  %v5657_v58 = vpack.i.bf16 %v492_v51, %v491_v50  ;;  %v497_v59 = vld [vmem:[%s6866_s26 + $0xf0] sm:$0xff]  ;;  %v5662_v61 = vpack.i.bf16 %v494_v54, %v493_v53 }
  0x1b   : > { %v498_v60 = vld [vmem:[%s6866_s26 + $0xf8] sm:$0xff]  ;;  %v5667_v62 = vpack.i.bf16 %v496_v57, %v495_v56  ;;  %v435_v4 = vld [vmem:[%s6941_s14] sm:$0xff]  ;;  %v436_v5 = vld [vmem:[%s6941_s14 + $0x8] sm:$0xff] }
  0x1c   : > { %5618 = vrot.lane.b32.xlu0 %v5617_v32, %s6756_s27  ;;  %5623 = vrot.lane.b32.xlu1 %v5622_v33, %s6756_s27  ;;  %v5672_v63 = vpack.i.bf16 %v498_v60, %v497_v59  ;;  %v439_v13 = vld [vmem:[%s6941_s14 + $0x20] sm:$0xff]  ;;  %v440_v14 = vld [vmem:[%s6941_s14 + $0x28] sm:$0xff] }
  0x1d   : > { %v437_v24 = vld [vmem:[%s6941_s14 + $0x10] sm:$0xff]  ;;  %v438_v25 = vld [vmem:[%s6941_s14 + $0x18] sm:$0xff]  ;;  %v444_v50 = vld [vmem:[%s6941_s14 + $0x48] sm:$0xff] }
  0x1e   : > { %v442_v32 = vld [vmem:[%s6941_s14 + $0x38] sm:$0xff]  ;;  %v441_v40 = vld [vmem:[%s6941_s14 + $0x30] sm:$0xff] }
  0x20   : > { %5628 = vrot.lane.b32.xlu0 %v5627_v38, %s6756_s27  ;;  %5633 = vrot.lane.b32.xlu1 %v5632_v41, %s6756_s27 }
  0x24   : > { %5638 = vrot.lane.b32.xlu0 %v5637_v46, %s6756_s27  ;;  %5643 = vrot.lane.b32.xlu1 %v5642_v49, %s6756_s27  ;;  %v443_v49 = vld [vmem:[%s6941_s14 + $0x40] sm:$0xff] }
  0x28   : > { %5648 = vrot.lane.b32.xlu0 %v5647_v52, %s6756_s27  ;;  %5653 = vrot.lane.b32.xlu1 %v5652_v55, %s6756_s27 }
  0x2c   : > { %5658 = vrot.lane.b32.xlu0 %v5657_v58, %s6756_s27  ;;  %5663 = vrot.lane.b32.xlu1 %v5662_v61, %s6756_s27 }
  0x30   : > { %5668 = vrot.lane.b32.xlu0 %v5667_v62, %s6756_s27  ;;  %5673 = vrot.lane.b32.xlu1 %v5672_v63, %s6756_s27  ;;  %v446_v62 = vld [vmem:[%s6941_s14 + $0x58] sm:$0xff] }
  0x34   : > { %5678 = vrot.lane.b32.xlu0 %v6886_v21, %s6757_s28 }
  0x38   : > { %5683 = vrot.lane.b32.xlu0 %v6888_v22, %s6758_s29 }
  0x86   : > { %v5599_v0 = vpop.permute.xlu0 %5598  ;;  %v5609_v12 = vpop.permute.xlu1 %5608 }
  0x87   : > { %v5601_v10 = vunpack.i.h.bf16 %v5599_v0  ;;  %v5600_v11 = vunpack.i.l.bf16 %v5599_v0  ;;  %v5611_v15 = vunpack.i.h.bf16 %v5609_v12  ;;  %v5610_v16 = vunpack.i.l.bf16 %v5609_v12 }
  0x89   : > { %v628_v17 = vsel %vm627_vm3, %v435_v4, %v5600_v11  ;;  %v6949_v18 = vsel %vm627_vm3, %v436_v5, %v5601_v10  ;;  %v632_v26 = vsel %vm627_vm3, %v439_v13, %v5610_v16  ;;  %v6956_v27 = vsel %vm627_vm3, %v440_v14, %v5611_v15  ;;  %v445_v4 = vld [vmem:[%s6941_s14 + $0x50] sm:$0xff] }
  0x8a   : > { %v704_v19 = vrot.slane %v628_v17, 7  ;;  %v705_v20 = vrot.slane %v6949_v18, 7  ;;  %v5604_v23 = vpop.permute.xlu0 %5603  ;;  %v710_v30 = vrot.slane %v632_v26, 7  ;;  %v5614_v31 = vpop.permute.xlu1 %5613  ;;  %v711_v33 = vrot.slane %v6956_v27, 7 }
  0x8b   : > { %v5606_v28 = vunpack.i.h.bf16 %v5604_v23  ;;  %v5605_v29 = vunpack.i.l.bf16 %v5604_v23  ;;  %v5616_v36 = vunpack.i.h.bf16 %v5614_v31  ;;  %v5615_v43 = vunpack.i.l.bf16 %v5614_v31  ;;  %v448_v23 = vld [vmem:[%s6941_s14 + $0x68] sm:$0xff] }
  0x8c   : > { %v6963_v34 = vsel %vm701_vm0, %v704_v19, %v705_v20  ;;  %v6966_v35 = vsel %vm701_vm0, 0.0, %v704_v19  ;;  %v6995_v55 = vsel %vm701_vm0, %v710_v30, %v711_v33  ;;  %v7004_v60 = vsel %vm701_vm0, 0.0, %v710_v30  ;;  %v447_v19 = vld [vmem:[%s6941_s14 + $0x60] sm:$0xff] }
  0x8d   : > { %v630_v37 = vsel %vm627_vm3, %v437_v24, %v5605_v29  ;;  %v6970_v38 = vsel %vm627_vm3, %v438_v25, %v5606_v28  ;;  %v5687_v39 = vpack.i.bf16 %v6963_v34, %v6966_v35  ;;  %v6977_v44 = vsel %vm627_vm3, %v442_v32, %v5616_v36 }
  0x8e   : > { %v707_v41 = vrot.slane %v630_v37, 7  ;;  %v708_v42 = vrot.slane %v6970_v38, 7  ;;  %v5619_v45 = vpop.permute.xlu0 %5618  ;;  %v714_v46 = vrot.slane %v6977_v44, 7  ;;  %v5624_v51 = vpop.permute.xlu1 %5623  ;;  %v634_v52 = vsel %vm627_vm3, %v441_v40, %v5615_v43 }
  0x8f   : > { %5688 = vrot.lane.b32.xlu0 %v5687_v39, %s6759_s15  ;;  %v5621_v47 = vunpack.i.h.bf16 %v5619_v45  ;;  %v5620_v48 = vunpack.i.l.bf16 %v5619_v45  ;;  %v713_v56 = vrot.slane %v634_v52, 7  ;;  %v5626_v61 = vunpack.i.h.bf16 %v5624_v51 }
  0x90   : > { %v6987_v53 = vsel %vm701_vm0, %v707_v41, %v708_v42  ;;  %v6990_v54 = vsel %vm701_vm0, 0.0, %v707_v41  ;;  %v5702_v0 = vpack.i.bf16 %v6995_v55, %v7004_v60  ;;  %v5625_v11 = vunpack.i.l.bf16 %v5624_v51 }
  0x91   : > { %v5692_v57 = vpack.i.bf16 %v6987_v53, %v6990_v54  ;;  %v636_v58 = vsel %vm627_vm3, %v443_v49, %v5620_v48  ;;  %v7001_v59 = vsel %vm627_vm3, %v444_v50, %v5621_v47  ;;  %v7016_v12 = vsel %vm701_vm0, %v713_v56, %v714_v46 }
  0x92   : > { %v716_v63 = vrot.slane %v636_v58, 7  ;;  %v5629_v5 = vpop.permute.xlu0 %5628  ;;  %v717_v10 = vrot.slane %v7001_v59, 7  ;;  %v7019_v13 = vsel %vm701_vm0, 0.0, %v713_v56  ;;  %v7022_v14 = vsel %vm627_vm3, %v446_v62, %v5626_v61 }
  0x93   : > { %5693 = vrot.lane.b32.xlu1 %v5692_v57, %s6759_s15  ;;  %5698 = vrot.lane.b32.xlu0 %v5692_v57, %s6760_s16  ;;  %v638_v15 = vsel %vm627_vm3, %v445_v4, %v5625_v11  ;;  %v5631_v16 = vunpack.i.h.bf16 %v5629_v5  ;;  %v5630_v17 = vunpack.i.l.bf16 %v5629_v5  ;;  %v5712_v24 = vpack.i.bf16 %v7016_v12, %v7019_v13 }
  0x94   : > { %v719_v25 = vrot.slane %v638_v15, 7  ;;  %v720_v26 = vrot.slane %v7022_v14, 7  ;;  %v7035_v28 = vsel %vm701_vm0, %v716_v63, %v717_v10  ;;  %v7038_v29 = vsel %vm701_vm0, 0.0, %v716_v63 }
  0x95   : > { %v640_v30 = vsel %vm627_vm3, %v447_v19, %v5630_v17  ;;  %v7042_v31 = vsel %vm627_vm3, %v448_v23, %v5631_v16  ;;  %v819_v32 = vsel %vm701_vm0, %v705_v20, 0.0  ;;  %v5722_v36 = vpack.i.bf16 %v7035_v28, %v7038_v29 }
  0x96   : > { %v722_v37 = vrot.slane %v640_v30, 7  ;;  %v723_v39 = vrot.slane %v7042_v31, 7  ;;  %v7055_v40 = vsel %vm701_vm0, %v719_v25, %v720_v26  ;;  %v7058_v41 = vsel %vm701_vm0, 0.0, %v719_v25 }
  0x97   : > { %5703 = vrot.lane.b32.xlu1 %v5702_v0, %s6760_s16  ;;  %5708 = vrot.lane.b32.xlu0 %v5702_v0, %s6759_s15  ;;  %v873_v18 = vrot.slane %v6966_v35, 1  ;;  %v874_v20 = vrot.slane %v6963_v34, 1  ;;  %v876_v43 = vrot.slane %v819_v32, 1  ;;  %v5732_v45 = vpack.i.bf16 %v7055_v40, %v7058_v41 }
  0x98   : > { %v7069_v47 = vsel %vm701_vm0, %v722_v37, %v723_v39  ;;  %v7072_v48 = vsel %vm701_vm0, 0.0, %v722_v37  ;;  %v1050_v49 = vrot.slane %v6966_v35, 2  ;;  %v1051_v52 = vrot.slane %v6963_v34, 2 }
  0x99   : > { %9194 = vst [vmem:[#allocation7_spill] sm:$0xff] %v7072_v48  ;;  %v875_v50 = vsel %vm867_vm1, %v873_v18, %v874_v20  ;;  %v877_v51 = vsel %vm867_vm1, %v874_v20, %v876_v43  ;;  %v1053_v56 = vrot.slane %v819_v32, 2  ;;  %v820_v57 = vsel %vm701_vm0, %v708_v42, 0.0 }
  0x9a   : > { %v7085_v58 = vpack.i.bf16 %v7069_v47, %v7072_v48  ;;  %v5757_v61 = vpack.i.bf16 %v877_v51, %v875_v50  ;;  %v878_v62 = vrot.slane %v6990_v54, 1  ;;  %v1052_v63 = vsel %vm1044_vm2, %v1050_v49, %v1051_v52 }
  0x9b   : > { %5713 = vrot.lane.b32.xlu1 %v5712_v24, %s6759_s15  ;;  %5718 = vrot.lane.b32.xlu0 %v5712_v24, %s6760_s16  ;;  %v1054_v0 = vsel %vm1044_vm2, %v1051_v52, %v1053_v56  ;;  %v879_v4 = vrot.slane %v6987_v53, 1  ;;  %v881_v38 = vrot.slane %v820_v57, 1  ;;  %v1055_v5 = vrot.slane %v6990_v54, 2 }
  0x9c   : > { %v5767_v42 = vpack.i.bf16 %v1054_v0, %v1052_v63  ;;  %v1056_v16 = vrot.slane %v6987_v53, 2  ;;  %v1058_v17 = vrot.slane %v820_v57, 2  ;;  %v821_v19 = vsel %vm701_vm0, %v711_v33, 0.0 }
  0x9d   : > { %v880_v11 = vsel %vm867_vm1, %v878_v62, %v879_v4  ;;  %v882_v15 = vsel %vm867_vm1, %v879_v4, %v881_v38  ;;  %v1060_v24 = vrot.slane %v7004_v60, 2  ;;  %v1061_v32 = vrot.slane %v6995_v55, 2 }
  0x9e   : > { %v5777_v23 = vpack.i.bf16 %v882_v15, %v880_v11  ;;  %v1057_v25 = vsel %vm1044_vm2, %v1055_v5, %v1056_v16  ;;  %v1059_v30 = vsel %vm1044_vm2, %v1056_v16, %v1058_v17  ;;  %v883_v33 = vrot.slane %v7004_v60, 1 }
  0x9f   : > { %5723 = vrot.lane.b32.xlu1 %v5722_v36, %s6760_s16  ;;  %5728 = vrot.lane.b32.xlu0 %v5722_v36, %s6759_s15  ;;  %v1063_v36 = vrot.slane %v821_v19, 2  ;;  %v5787_v27 = vpack.i.bf16 %v1059_v30, %v1057_v25  ;;  %v1062_v37 = vsel %vm1044_vm2, %v1060_v24, %v1061_v32  ;;  %v884_v20 = vrot.slane %v6995_v55, 1 }
  0xa0   : > { %v886_v43 = vrot.slane %v821_v19, 1  ;;  %v822_v52 = vsel %vm701_vm0, %v714_v46, 0.0  ;;  %v888_v56 = vrot.slane %v7019_v13, 1  ;;  %v889_v57 = vrot.slane %v7016_v12, 1 }
  0xa1   : > { %v1064_v18 = vsel %vm1044_vm2, %v1061_v32, %v1063_v36  ;;  %v885_v49 = vsel %vm867_vm1, %v883_v33, %v884_v20  ;;  %v1065_v62 = vrot.slane %v7019_v13, 2  ;;  %v1066_v46 = vrot.slane %v7016_v12, 2 }
  0xa2   : > { %v887_v50 = vsel %vm867_vm1, %v884_v20, %v886_v43  ;;  %v890_v63 = vsel %vm867_vm1, %v888_v56, %v889_v57  ;;  %v1068_v0 = vrot.slane %v822_v52, 2  ;;  %v823_v4 = vsel %vm701_vm0, %v717_v10, 0.0  ;;  %v6542_v20 = vld [vmem:[%s9159_s2 + $0x18] ss:$0 sps:$4 sm:$0x77]  }
  0xa3   : > { %5733 = vrot.lane.b32.xlu1 %v5732_v45, %s6759_s15  ;;  %5738 = vrot.lane.b32.xlu0 %v5732_v45, %s6760_s16  ;;  %v5797_v45 = vpack.i.bf16 %v1064_v18, %v1062_v37  ;;  %v5782_v51 = vpack.i.bf16 %v887_v50, %v885_v49  ;;  %v1067_v5 = vsel %vm1044_vm2, %v1065_v62, %v1066_v46  ;;  %v1071_v15 = vrot.slane %v7035_v28, 2  ;;  %v6543_v50 = vld [vmem:[%s9159_s2 + $0x10] sm:$0xff]   ;;  %v5639_v62 = vpop.permute.xlu0 %5638 }
  0xa4   : > { %v1069_v11 = vsel %vm1044_vm2, %v1066_v46, %v1068_v0  ;;  %v1073_v16 = vrot.slane %v823_v4, 2  ;;  %v893_v10 = vrot.slane %v7038_v29, 1  ;;  %v896_v24 = vrot.slane %v823_v4, 1  ;;  %5574 = vmatprep.subr.msk.bf16.mxu0 %vm2165_vm4, %v6542_v20 }
  0xa5   : > { %v5847_v59 = vpack.i.bf16 %v1069_v11, %v1067_v5  ;;  %v898_v33 = vrot.slane %v7058_v41, 1  ;;  %v899_v37 = vrot.slane %v7055_v40, 1  ;;  %v1075_v14 = vrot.slane %v7058_v41, 2  ;;  %v6545_v11 = vld [vmem:[%s9159_s2] sm:$0xff]  }
  0xa6   : > { %v1074_v19 = vsel %vm1044_vm2, %v1071_v15, %v1073_v16  ;;  %v5634_v16 = vpop.permute.xlu1 %5633 }
  0xa7   : > { %5743 = vrot.lane.b32.xlu1 %v7085_v58, %s6760_s16  ;;  %5758 = vrot.lane.b32.xlu0 %v5757_v61, %s6761_s17 }
  0xab   : > { %5768 = vrot.lane.b32.xlu0 %v5767_v42, %s6762_s18  ;;  %5748 = vrot.lane.b32.xlu1 %v5757_v61, %s6757_s28  ;;  %v891_v61 = vrot.slane %v822_v52, 1  ;;  %v2167_v52 = vsel %vm2165_vm4, %v6542_v20, 0  ;;  %v451_v20 = vld [vmem:[%s6941_s14 + $0x80] sm:$0xff]  ;;  %vm3541_vm4 = vcmask 1044484  }
  0xac   : > { %5483 = vmatpush3.bf16.msra.mxu0 %v2167_v52 }
  0xad   : > { %v892_v44 = vsel %vm867_vm1, %v889_v57, %v891_v61  ;;  %v1080_v57 = vrot.slane %v7072_v48, 2  ;;  %v1081_v61 = vrot.slane %v7069_v47, 2  ;;  %5484 = vmatprep.subr.bf16.mxu0 %v6543_v50 }
  0xae   : > { %v5837_v38 = vpack.i.bf16 %v892_v44, %v890_v63 }
  0xaf   : > { %5778 = vrot.lane.b32.xlu0 %v5777_v23, %s6763_s19  ;;  %5753 = vrot.lane.b32.xlu1 %v5767_v42, %s6758_s29  ;;  %v1070_v42 = vrot.slane %v7038_v29, 2  ;;  %v1082_v0 = vsel %vm1044_vm2, %v1080_v57, %v1081_v61 }
  0xb0   : > { %5485 = vmatpush3.bf16.msra.mxu0 %v6543_v50 }
  0xb1   : > { %v1072_v17 = vsel %vm1044_vm2, %v1070_v42, %v1071_v15  ;;  %v904_v42 = vrot.slane %v7069_v47, 1  ;;  %v7195_v15 = vpop.permute.xlu0 %5648 }
  0xb2   : > { %v5857_v25 = vpack.i.bf16 %v1074_v19, %v1072_v17  ;;  %v5636_v19 = vunpack.i.h.bf16 %v5634_v16 }
  0xb3   : > { %5788 = vrot.lane.b32.xlu0 %v5787_v27, %s6764_s20  ;;  %5763 = vrot.lane.b32.xlu1 %v5777_v23, %s6761_s17 }
  0xb7   : > { %5798 = vrot.lane.b32.xlu0 %v5797_v45, %s6764_s20  ;;  %5773 = vrot.lane.b32.xlu1 %v5787_v27, %s6762_s18 }
  0xbb   : > { %5808 = vrot.lane.b32.xlu0 %v5787_v27, %s6758_s29  ;;  %5783 = vrot.lane.b32.xlu1 %v5782_v51, %s6763_s19  ;;  %v824_v27 = vsel %vm701_vm0, %v720_v26, 0.0  ;;  %v900_v26 = vsel %vm867_vm1, %v898_v33, %v899_v37  ;;  %v5641_v33 = vunpack.i.h.bf16 %v5639_v62 }
  0xbc   : > { %v901_v18 = vrot.slane %v824_v27, 1  ;;  %v1078_v49 = vrot.slane %v824_v27, 2 }
  0xbe   : > { %v902_v43 = vsel %vm867_vm1, %v899_v37, %v901_v18  ;;  %v5640_v37 = vunpack.i.l.bf16 %v5639_v62  ;;  %v7209_v18 = vpop.permute.xlu1 %5643 }
  0xbf   : > { %5818 = vrot.lane.b32.xlu0 %v5782_v51, %s6761_s17  ;;  %5793 = vrot.lane.b32.xlu1 %v5777_v23, %s6757_s28  ;;  %v894_v23 = vrot.slane %v7035_v28, 1  ;;  %v5897_v56 = vpack.i.bf16 %v902_v43, %v900_v26 }
  0xc1   : > { %v895_v30 = vsel %vm867_vm1, %v893_v10, %v894_v23  ;;  %v897_v32 = vsel %vm867_vm1, %v894_v23, %v896_v24  ;;  %v5635_v23 = vunpack.i.l.bf16 %v5634_v16  ;;  %v449_v24 = vld [vmem:[%s6941_s14 + $0x70] sm:$0xff] }
  0xc2   : > { %v5842_v36 = vpack.i.bf16 %v897_v32, %v895_v30  ;;  %v7203_v32 = vpop.permute.xlu0 %5658 }
  0xc3   : > { %5828 = vrot.lane.b32.xlu0 %v5797_v45, %s6762_s18  ;;  %5803 = vrot.lane.b32.xlu1 %v5782_v51, %s6757_s28  ;;  %v825_v51 = vsel %vm701_vm0, %v723_v39, 0.0  ;;  %v6544_v39 = vld [vmem:[%s9159_s2 + $0x8] sm:$0xff]  }
  0xc4   : > { %v1083_v44 = vrot.slane %v825_v51, 2  ;;  %v906_v5 = vrot.slane %v825_v51, 1  ;;  %5486 = vmatprep.subr.bf16.mxu0 %v6544_v39 }
  0xc5   : > { %5487 = vmatpush3.bf16.msra.mxu0 %v6544_v39 }
  0xc6   : > { %v1084_v4 = vsel %vm1044_vm2, %v1081_v61, %v1083_v44  ;;  %v907_v17 = vsel %vm867_vm1, %v904_v42, %v906_v5  ;;  %5488 = vmatprep.subr.bf16.mxu0 %v6545_v11 }
  0xc7   : > { %5838 = vrot.lane.b32.xlu0 %v5837_v38, %s6763_s19  ;;  %5813 = vrot.lane.b32.xlu1 %v5797_v45, %s6758_s29  ;;  %v1076_v45 = vrot.slane %v7055_v40, 2 }
  0xc9   : > { %v1077_v63 = vsel %vm1044_vm2, %v1075_v14, %v1076_v45  ;;  %v1079_v31 = vsel %vm1044_vm2, %v1076_v45, %v1078_v49  ;;  %5489 = vmatpush3.bf16.msra.mxu0 %v6545_v11  ;;  %v452_v14 = vld [vmem:[%s6941_s14 + $0x88] sm:$0xff]  ;;  %v7216_v45 = vpop.permute.xlu0 %5668  ;;  %v644_v49 = vsel %vm627_vm3, %v451_v20, %v5640_v37 }
  0xca   : > { %v5907_v46 = vpack.i.bf16 %v1079_v31, %v1077_v63  ;;  %v645_v50 = vsel %vm627_vm3, %v452_v14, %v5641_v33 }
  0xcb   : > { %5848 = vrot.lane.b32.xlu0 %v5847_v59, %s6764_s20  ;;  %5823 = vrot.lane.b32.xlu1 %v5837_v38, %s6761_s17  ;;  %v729_v61 = vrot.slane %v645_v50, 7  ;;  %v5650_v50 = vunpack.i.l.bf16 %v7195_v15 }
  0xcd   : > { %v7231_v62 = vpop.permute.xlu0 %5678 }
  0xce   : > { %v5681_v9 = vunpack.i.h.bf16 %v7231_v62 }
  0xcf   : > { %5858 = vrot.lane.b32.xlu0 %v5857_v25, %s6764_s20  ;;  %5833 = vrot.lane.b32.xlu1 %v5847_v59, %s6762_s18 }
  0xd3   : > { %5868 = vrot.lane.b32.xlu0 %v5847_v59, %s6758_s29  ;;  %5843 = vrot.lane.b32.xlu1 %v5842_v36, %s6763_s19  ;;  %v5917_v59 = vpack.i.bf16 %v1084_v4, %v1082_v0 }
  0xd7   : > { %5878 = vrot.lane.b32.xlu0 %v5842_v36, %s6761_s17  ;;  %5853 = vrot.lane.b32.xlu1 %v5837_v38, %s6757_s28  ;;  %v903_v38 = vrot.slane %v7072_v48, 1 }
  0xd9   : > { %v905_v10 = vsel %vm867_vm1, %v903_v38, %v904_v42 }
  0xda   : > { %v5902_v30 = vpack.i.bf16 %v907_v17, %v905_v10  ;;  %v7254_v10 = vpop.permute.xlu0 %5683 }
  0xdb   : > { %5888 = vrot.lane.b32.xlu0 %v5857_v25, %s6762_s18  ;;  %5863 = vrot.lane.b32.xlu1 %v5842_v36, %s6757_s28  ;;  %v642_v36 = vsel %vm627_vm3, %v449_v24, %v5635_v23 }
  0xdc   : > { %v725_v26 = vrot.slane %v642_v36, 7 }
  0xde   : > { %v7224_v52 = vsel %vm701_vm0, 0.0, %v725_v26 }
  0xdf   : > { %5898 = vrot.lane.b32.xlu0 %v5897_v56, %s6763_s19  ;;  %5873 = vrot.lane.b32.xlu1 %v5857_v25, %s6758_s29  ;;  %v450_v25 = vld [vmem:[%s6941_s14 + $0x78] sm:$0xff]  ;;  %9196 = vst [vmem:[#allocation9_spill] sm:$0xff] %v7224_v52  ;;  %v908_v63 = vrot.slane %v7224_v52, 1  ;;  %v1085_v5 = vrot.slane %v7224_v52, 2 }
  0xe0   : > { %v643_v27 = vsel %vm627_vm3, %v450_v25, %v5636_v19 }
  0xe1   : > { %v726_v43 = vrot.slane %v643_v27, 7 }
  0xe3   : > { %5908 = vrot.lane.b32.xlu0 %v5907_v46, %s6764_s20  ;;  %5883 = vrot.lane.b32.xlu1 %v5897_v56, %s6761_s17  ;;  %v7221_v51 = vsel %vm701_vm0, %v725_v26, %v726_v43  ;;  %v826_v57 = vsel %vm701_vm0, %v726_v43, 0.0 }
  0xe4   : > { %9195 = vst [vmem:[#allocation8_spill] sm:$0xff] %v7221_v51  ;;  %v909_v31 = vrot.slane %v7221_v51, 1  ;;  %v911_v44 = vrot.slane %v826_v57, 1  ;;  %v5967_v39 = vpack.i.bf16 %v7221_v51, %v7224_v52  ;;  %v1086_v11 = vrot.slane %v7221_v51, 2 }
  0xe5   : > { %v1088_v16 = vrot.slane %v826_v57, 2  ;;  %v5661_v57 = vunpack.i.h.bf16 %v7203_v32 }
  0xe6   : > { %v910_v38 = vsel %vm867_vm1, %v908_v63, %v909_v31  ;;  %v912_v42 = vsel %vm867_vm1, %v909_v31, %v911_v44  ;;  %v1087_v24 = vsel %vm1044_vm2, %v1085_v5, %v1086_v11  ;;  %v460_v63 = vld [vmem:[%s6941_s14 + $0xc8] sm:$0xff]  ;;  %v5660_v31 = vunpack.i.l.bf16 %v7203_v32  ;;  %v459_v5 = vld [vmem:[%s6941_s14 + $0xc0] sm:$0xff] }
  0xe7   : > { %5918 = vrot.lane.b32.xlu0 %v5917_v59, %s6764_s20  ;;  %5893 = vrot.lane.b32.xlu1 %v5907_v46, %s6762_s18  ;;  %v7256_v17 = vpack.i.bf16 %v912_v42, %v910_v38  ;;  %v1089_v25 = vsel %vm1044_vm2, %v1086_v11, %v1088_v16  ;;  %v5646_v44 = vunpack.i.h.bf16 %v7209_v18  ;;  %v5645_v11 = vunpack.i.l.bf16 %v7209_v18  ;;  %v454_v16 = vld [vmem:[%s6941_s14 + $0x98] sm:$0xff] }
  0xe8   : > { %v5987_v33 = vpack.i.bf16 %v1089_v25, %v1087_v24  ;;  %v653_v24 = vsel %vm627_vm3, %v460_v63, %v5661_v57  ;;  %v453_v25 = vld [vmem:[%s6941_s14 + $0x90] sm:$0xff]  ;;  %v652_v18 = vsel %vm627_vm3, %v459_v5, %v5660_v31  ;;  %v5671_v57 = vunpack.i.h.bf16 %v7216_v45  ;;  %v463_v31 = vld [vmem:[%s6941_s14 + $0xe0] sm:$0xff] }
  0xeb   : > { %5928 = vrot.lane.b32.xlu0 %v5907_v46, %s6758_s29  ;;  %5903 = vrot.lane.b32.xlu1 %v5902_v30, %s6763_s19 }
  0xef   : > { %5938 = vrot.lane.b32.xlu0 %v7085_v58, %s6759_s15  ;;  %5913 = vrot.lane.b32.xlu1 %v5897_v56, %s6757_s28  ;;  %v7229_v58 = vpop.permute.xlu1 %5653  ;;  %v728_v56 = vrot.slane %v644_v49, 7  ;;  %v5651_v49 = vunpack.i.h.bf16 %v7195_v15 }
  0xf1   : > { %v7240_v46 = vsel %vm701_vm0, %v728_v56, %v729_v61  ;;  %v7243_v0 = vsel %vm701_vm0, 0.0, %v728_v56  ;;  %v455_v56 = vld [vmem:[%s6941_s14 + $0xa0] sm:$0xff] }
  0xf2   : > { %9197 = vst [vmem:[#allocation10_spill] sm:$0xff] %v7240_v46  ;;  %9198 = vst [vmem:[#allocation11_spill] sm:$0xff] %v7243_v0  ;;  %v1090_v19 = vrot.slane %v7243_v0, 2  ;;  %v1091_v23 = vrot.slane %v7240_v46, 2  ;;  %v913_v14 = vrot.slane %v7243_v0, 1  ;;  %v914_v26 = vrot.slane %v7240_v46, 1 }
  0xf3   : > { %5948 = vrot.lane.b32.xlu0 %v5902_v30, %s6761_s17  ;;  %5923 = vrot.lane.b32.xlu1 %v5902_v30, %s6757_s28  ;;  %v7245_v4 = vpop.permute.xlu1 %5663  ;;  %v5972_v15 = vpack.i.bf16 %v7240_v46, %v7243_v0  ;;  %v648_v32 = vsel %vm627_vm3, %v455_v56, %v5650_v50  ;;  %v646_v50 = vsel %vm627_vm3, %v453_v25, %v5645_v11  ;;  %v5670_v56 = vunpack.i.l.bf16 %v7216_v45 }
  0xf4   : > { %v1092_v37 = vsel %vm1044_vm2, %v1090_v19, %v1091_v23  ;;  %v731_v5 = vrot.slane %v646_v50, 7  ;;  %v457_v50 = vld [vmem:[%s6941_s14 + $0xb0] sm:$0xff] }
  0xf7   : > { %5958 = vrot.lane.b32.xlu0 %v5917_v59, %s6762_s18  ;;  %5933 = vrot.lane.b32.xlu1 %v5917_v59, %s6758_s29  ;;  %v827_v59 = vsel %vm701_vm0, %v729_v61, 0.0  ;;  %v7266_v36 = vpop.permute.xlu1 %5673  ;;  %v456_v61 = vld [vmem:[%s6941_s14 + $0xa8] sm:$0xff] }
  0xf8   : > { %v1093_v30 = vrot.slane %v827_v59, 2  ;;  %v916_v43 = vrot.slane %v827_v59, 1  ;;  %v915_v59 = vsel %vm867_vm1, %v913_v14, %v914_v26 }
  0xfa   : > { %v1094_v20 = vsel %vm1044_vm2, %v1091_v23, %v1093_v30  ;;  %v917_v19 = vsel %vm867_vm1, %v914_v26, %v916_v43  ;;  %v649_v23 = vsel %vm627_vm3, %v456_v61, %v5651_v49  ;;  %v647_v30 = vsel %vm627_vm3, %v454_v16, %v5646_v44  ;;  %v464_v44 = vld [vmem:[%s6941_s14 + $0xe8] sm:$0xff] }
  0xfb   : > { %5968 = vrot.lane.b32.xlu0 %v5967_v39, %s6760_s16  ;;  %5943 = vrot.lane.b32.xlu1 %v5967_v39, %s6759_s15  ;;  %v7288_v42 = vpack.i.bf16 %v1094_v20, %v1092_v37  ;;  %v5982_v14 = vpack.i.bf16 %v917_v19, %v915_v59  ;;  %v734_v26 = vrot.slane %v648_v32, 7  ;;  %v735_v43 = vrot.slane %v649_v23, 7 }
  0xfc   : > { %v741_v49 = vrot.slane %v653_v24, 7  ;;  %v740_v61 = vrot.slane %v652_v18, 7  ;;  %v732_v63 = vrot.slane %v647_v30, 7  ;;  %v7331_v19 = vsel %vm627_vm3, %v463_v31, %v5670_v56 }
  0xfd   : > { %v7322_v11 = vsel %vm701_vm0, %v734_v26, %v735_v43  ;;  %v7325_v45 = vsel %vm701_vm0, 0.0, %v734_v26  ;;  %v7334_v32 = vsel %vm627_vm3, %v464_v44, %v5671_v57  ;;  %v5656_v23 = vunpack.i.h.bf16 %v7229_v58  ;;  %v458_v57 = vld [vmem:[%s6941_s14 + $0xb8] sm:$0xff] }
  0xfe   : > { %9199 = vst [vmem:[#allocation12_spill] sm:$0xff] %v7325_v45  ;;  %v5655_v24 = vunpack.i.l.bf16 %v7229_v58  ;;  %v7342_v25 = vsel %vm701_vm0, %v735_v43, 0.0  ;;  %v7345_v18 = vsel %vm701_vm0, %v740_v61, %v741_v49  ;;  %v7348_v30 = vsel %vm701_vm0, 0.0, %v740_v61 }
  0xff   : > { %5978 = vrot.lane.b32.xlu0 %v7256_v17, %s6763_s19  ;;  %5953 = vrot.lane.b32.xlu1 %v7256_v17, %s6761_s17  ;;  %v828_v26 = vsel %vm701_vm0, %v732_v63, 0.0  ;;  %v651_v8 = vsel %vm627_vm3, %v458_v57, %v5656_v23  ;;  %v5685_v31 = vunpack.i.l.bf16 %v7254_v10  ;;  %v1101_v22 = vrot.slane %v7322_v11, 2 }
 0x100   : > { %v7368_v44 = vsel %vm627_vm3, %v457_v50, %v5655_v24  ;;  %v921_v7 = vrot.slane %v828_v26, 1  ;;  %v1098_v57 = vrot.slane %v828_v26, 2  ;;  %v738_v61 = vrot.slane %v651_v8, 7 }
 0x101   : > { %v7268_v27 = vpop.permute.xlu0 %5688 }
 0x103   : > { %5988 = vrot.lane.b32.xlu0 %v5987_v33, %s6764_s20  ;;  %5963 = vrot.lane.b32.xlu1 %v5987_v33, %s6762_s18 }
 0x105   : > { %v7284_v39 = vpop.permute.xlu1 %5693  ;;  %v7286_v38 = vpop.permute.xlu0 %5698 }
 0x107   : > { %5998 = vrot.lane.b32.xlu0 %v7288_v42, %s6764_s20  ;;  %5973 = vrot.lane.b32.xlu1 %v5972_v15, %s6760_s16 }
 0x109   : > { %v7306_v37 = vpop.permute.xlu1 %5703  ;;  %v7308_v20 = vpop.permute.xlu0 %5708 }
 0x10b   : > { %6008 = vrot.lane.b32.xlu0 %v5987_v33, %s6758_s29  ;;  %5983 = vrot.lane.b32.xlu1 %v5982_v14, %s6763_s19  ;;  %v7328_v33 = vsel %vm701_vm0, %v741_v49, 0.0  ;;  %v1811_v49 = vsel %vm1809_vm5, %v6842_v1, %v5681_v9 }
 0x10d   : > { %v7317_v16 = vpop.permute.xlu1 %5713  ;;  %v7319_v59 = vpop.permute.xlu0 %5718 }
 0x10f   : > { %6018 = vrot.lane.b32.xlu0 %v5972_v15, %s6759_s15  ;;  %5993 = vrot.lane.b32.xlu1 %v7256_v17, %s6757_s28  ;;  %v7358_v15 = vsel %vm701_vm0, %v731_v5, %v732_v63  ;;  %v7361_v17 = vsel %vm701_vm0, 0.0, %v731_v5  ;;  %v5680_v63 = vunpack.i.l.bf16 %v7231_v62  ;;  %v1100_v62 = vrot.slane %v7325_v45, 2 }
 0x110   : > { %9200 = vst [vmem:[#allocation13_spill] sm:$0xff] %v7358_v15  ;;  %9201 = vst [vmem:[#allocation14_spill] sm:$0xff] %v7361_v17  ;;  %v918_v5 = vrot.slane %v7361_v17, 1  ;;  %v919_v6 = vrot.slane %v7358_v15, 1  ;;  %v1095_v23 = vrot.slane %v7361_v17, 2  ;;  %v1096_v50 = vrot.slane %v7358_v15, 2 }
 0x111   : > { %v7353_v58 = vpop.permute.xlu1 %5723  ;;  %v7355_v56 = vpop.permute.xlu0 %5728  ;;  %v1810_v3 = vsel %vm1809_vm5, %v6848_v2, %v5680_v63  ;;  %v6047_v8 = vpack.i.bf16 %v7358_v15, %v7361_v17 }
 0x112   : > { %v922_v9 = vsel %vm867_vm1, %v919_v6, %v921_v7  ;;  %v1097_v0 = vsel %vm1044_vm2, %v1095_v23, %v1096_v50  ;;  %v1099_v46 = vsel %vm1044_vm2, %v1096_v50, %v1098_v57  ;;  %v1103_v50 = vrot.slane %v7342_v25, 2 }
 0x113   : > { %6028 = vrot.lane.b32.xlu0 %v5982_v14, %s6761_s17  ;;  %6003 = vrot.lane.b32.xlu1 %v5982_v14, %s6757_s28  ;;  %v5686_v14 = vunpack.i.h.bf16 %v7254_v10  ;;  %v920_v10 = vsel %vm867_vm1, %v918_v5, %v919_v6  ;;  %v7412_v5 = vsel %vm701_vm0, %v738_v61, 0.0  ;;  %v1843_v6 = vsel %vm1842_vm6, %v1810_v3, %v5685_v31 }
 0x114   : > { %v7418_v23 = vpack.i.bf16 %v922_v9, %v920_v10  ;;  %v5691_v57 = vunpack.i.h.bf16 %v7268_v27  ;;  %v924_v10 = vrot.slane %v7322_v11, 1  ;;  %v926_v9 = vrot.slane %v7342_v25, 1 }
 0x115   : > { %v7377_v43 = vpop.permute.xlu1 %5733  ;;  %v7379_v24 = vpop.permute.xlu0 %5738  ;;  %v1844_v7 = vsel %vm1842_vm6, %v1811_v49, %v5686_v14  ;;  %v1102_v14 = vsel %vm1044_vm2, %v1100_v62, %v1101_v22 }
 0x117   : > { %6038 = vrot.lane.b32.xlu0 %v7288_v42, %s6762_s18  ;;  %6013 = vrot.lane.b32.xlu1 %v7288_v42, %s6758_s29  ;;  %v9202_v42 = vrot.slane %v7368_v44, 7 }
 0x119   : > { %v7400_v26 = vpop.permute.xlu1 %5743  ;;  %v5759_v63 = vpop.permute.xlu0 %5758  ;;  %v7409_v21 = vsel %vm701_vm0, %v9202_v42, %v738_v61  ;;  %v5690_v42 = vunpack.i.l.bf16 %v7268_v27  ;;  %v7423_v61 = vpack.i.bf16 %v1099_v46, %v1097_v0  ;;  %v1104_v46 = vsel %vm1044_vm2, %v1101_v22, %v1103_v50 }
 0x11a   : > { %v5761_v17 = vunpack.i.h.bf16 %v5759_v63  ;;  %v5760_v3 = vunpack.i.l.bf16 %v5759_v63  ;;  %v923_v0 = vrot.slane %v7325_v45, 1  ;;  %v1877_v27 = vsel %vm1875_vm7, %v1844_v7, %v5691_v57 }
 0x11b   : > { %6048 = vrot.lane.b32.xlu0 %v6047_v8, %s6760_s16  ;;  %6023 = vrot.lane.b32.xlu1 %v6047_v8, %s6759_s15  ;;  %v7428_v8 = vpack.i.bf16 %v7322_v11, %v7325_v45  ;;  %v1876_v62 = vsel %vm1875_vm7, %v1843_v6, %v5690_v42  ;;  %v5701_v6 = vunpack.i.h.bf16 %v7286_v38  ;;  %v5700_v57 = vunpack.i.l.bf16 %v7286_v38 }
 0x11c   : > { %v1910_v63 = vsel %vm1908_vm8, %v1877_v27, %v5761_v17  ;;  %v7450_v17 = vpack.i.bf16 %v1104_v46, %v1102_v14 }
 0x11d   : > { %v5769_v31 = vpop.permute.xlu0 %5768  ;;  %v5749_v49 = vpop.permute.xlu1 %5748 }
 0x11e   : > { %v5771_v15 = vunpack.i.h.bf16 %v5769_v31  ;;  %v5770_v52 = vunpack.i.l.bf16 %v5769_v31  ;;  %v1909_v31 = vsel %vm1908_vm8, %v1876_v62, %v5760_v3  ;;  %v5751_v51 = vunpack.i.h.bf16 %v5749_v49 }
 0x11f   : > { %6058 = vrot.lane.b32.xlu0 %v7418_v23, %s6763_s19  ;;  %6033 = vrot.lane.b32.xlu1 %v7418_v23, %s6761_s17  ;;  %v5750_v1 = vunpack.i.l.bf16 %v5749_v49 }
 0x120   : > { %v1942_v50 = vsel %vm1941_vm9, %v1909_v31, %v5770_v52  ;;  %v1943_v45 = vsel %vm1941_vm9, %v1910_v63, %v5771_v15  ;;  %v925_v52 = vsel %vm867_vm1, %v923_v0, %v924_v10  ;;  %v927_v15 = vsel %vm867_vm1, %v924_v10, %v926_v9 }
 0x121   : > { %v5779_v2 = vpop.permute.xlu0 %5778  ;;  %v5754_v22 = vpop.permute.xlu1 %5753  ;;  %v1813_v3 = vsel %vm1809_vm5, %v6963_v34, %v5751_v51  ;;  %v1812_v38 = vsel %vm1809_vm5, %v6966_v35, %v5750_v1  ;;  %v1975_v27 = vsel %vm1974_vm10, %v1942_v50, %v5700_v57  ;;  %v1976_v62 = vsel %vm1974_vm10, %v1943_v45, %v5701_v6  ;;  %v461_v50 = vld [vmem:[%s6941_s14 + $0xd0] sm:$0xff] }
 0x122   : > { %v5756_v48 = vunpack.i.h.bf16 %v5754_v22  ;;  %v5755_v7 = vunpack.i.l.bf16 %v5754_v22  ;;  %v5781_v42 = vunpack.i.h.bf16 %v5779_v2  ;;  %v5780_v25 = vunpack.i.l.bf16 %v5779_v2 }
 0x123   : > { %6068 = vrot.lane.b32.xlu0 %v7423_v61, %s6764_s20  ;;  %6043 = vrot.lane.b32.xlu1 %v7423_v61, %s6762_s18  ;;  %v5696_v35 = vunpack.i.h.bf16 %v7284_v39  ;;  %v5695_v51 = vunpack.i.l.bf16 %v7284_v39  ;;  %v9203_v31 = vrot.slane %v7368_v44, 7 }
 0x124   : > { %v1845_v14 = vsel %vm1842_vm6, %v1812_v38, %v5755_v7  ;;  %v1846_v46 = vsel %vm1842_vm6, %v1813_v3, %v5756_v48  ;;  %v2008_v1 = vsel %vm2007_vm11, %v1975_v27, %v5780_v25  ;;  %v2009_v34 = vsel %vm2007_vm11, %v1976_v62, %v5781_v42  ;;  %v462_v7 = vld [vmem:[%s6941_s14 + $0xd8] sm:$0xff] }
 0x125   : > { %v5789_v2 = vpop.permute.xlu0 %5788  ;;  %v5764_v49 = vpop.permute.xlu1 %5763  ;;  %v7475_v22 = vsel %vm701_vm0, 0.0, %v9203_v31  ;;  %v6062_v3 = vpack.i.bf16 %v927_v15, %v925_v52  ;;  %v1878_v42 = vsel %vm1875_vm7, %v1845_v14, %v5695_v51  ;;  %v1879_v38 = vsel %vm1875_vm7, %v1846_v46, %v5696_v35 }
 0x126   : > { %v5791_v0 = vunpack.i.h.bf16 %v5789_v2  ;;  %v5790_v10 = vunpack.i.l.bf16 %v5789_v2  ;;  %v5766_v9 = vunpack.i.h.bf16 %v5764_v49  ;;  %v5765_v63 = vunpack.i.l.bf16 %v5764_v49 }
 0x127   : > { %6078 = vrot.lane.b32.xlu0 %v7450_v17, %s6764_s20  ;;  %6053 = vrot.lane.b32.xlu1 %v7428_v8, %s6760_s16  ;;  %v931_v49 = vrot.slane %v7412_v5, 1  ;;  %v1108_v27 = vrot.slane %v7412_v5, 2  ;;  %v9204_v52 = vunpack.i.l.bf16 %v7245_v4  ;;  %v9205_v14 = vunpack.i.h.bf16 %v7245_v4 }
 0x128   : > { %v2041_v48 = vsel %vm2040_vm12, %v2008_v1, %v5790_v10  ;;  %v2042_v45 = vsel %vm2040_vm12, %v2009_v34, %v5791_v0  ;;  %v1911_v44 = vsel %vm1908_vm8, %v1878_v42, %v5765_v63  ;;  %v1912_v62 = vsel %vm1908_vm8, %v1879_v38, %v5766_v9 }
 0x129   : > { %v5799_v6 = vpop.permute.xlu0 %5798  ;;  %v5774_v57 = vpop.permute.xlu1 %5773  ;;  %v2073_v25 = vpack.c.bf16 %v2042_v45, %v2041_v48  ;;  %v7491_v15 = vsel %vm627_vm3, %v461_v50, %v9204_v52  ;;  %v7496_v46 = vsel %vm627_vm3, %v462_v7, %v9205_v14  ;;  %v5705_v9 = vunpack.i.l.bf16 %v7306_v37 }
 0x12a   : > { %v5776_v39 = vunpack.i.h.bf16 %v5774_v57  ;;  %v5775_v2 = vunpack.i.l.bf16 %v5774_v57  ;;  %v5801_v51 = vunpack.i.h.bf16 %v5799_v6  ;;  %v5800_v48 = vunpack.i.l.bf16 %v5799_v6 }
 0x12b   : > { %6088 = vrot.lane.b32.xlu0 %v7423_v61, %s6758_s29  ;;  %5490 = vmatprep.mubr.msk.bf16.mxu0 %vm2116_vm13, %v2073_v25  ;;  %v5706_v61 = vunpack.i.h.bf16 %v7306_v37  ;;  %v6127_v37 = vpack.i.bf16 %v7409_v21, %v7475_v22  ;;  %v928_v42 = vrot.slane %v7475_v22, 1  ;;  %v1106_v52 = vrot.slane %v7409_v21, 2 }
 0x12c   : > { %v1944_v0 = vsel %vm1941_vm9, %v1911_v44, %v5775_v2  ;;  %v1945_v10 = vsel %vm1941_vm9, %v1912_v62, %v5776_v39  ;;  %6063 = vrot.lane.b32.xlu1 %v6062_v3, %s6763_s19  ;;  %v929_v39 = vrot.slane %v7409_v21, 1  ;;  %v1105_v2 = vrot.slane %v7475_v22, 2 }
 0x12d   : > { %v5809_v63 = vpop.permute.xlu0 %5808  ;;  %v5784_v1 = vpop.permute.xlu1 %5783  ;;  %v1977_v4 = vsel %vm1974_vm10, %v1944_v0, %v5705_v9  ;;  %v1978_v45 = vsel %vm1974_vm10, %v1945_v10, %v5706_v61  ;;  %v5711_v14 = vunpack.i.h.bf16 %v7308_v20  ;;  %v5710_v0 = vunpack.i.l.bf16 %v7308_v20 }
 0x12e   : > { %v5786_v34 = vunpack.i.h.bf16 %v5784_v1  ;;  %v5785_v35 = vunpack.i.l.bf16 %v5784_v1  ;;  %v5811_v44 = vunpack.i.h.bf16 %v5809_v63  ;;  %v5810_v62 = vunpack.i.l.bf16 %v5809_v63 }
 0x12f   : > { %6098 = vrot.lane.b32.xlu0 %v7428_v8, %s6759_s15 }
 0x130   : > { %v2010_v31 = vsel %vm2007_vm11, %v1977_v4, %v5785_v35  ;;  %v2011_v50 = vsel %vm2007_vm11, %v1978_v45, %v5786_v34  ;;  %6073 = vrot.lane.b32.xlu1 %v7418_v23, %s6757_s28  ;;  %v1110_v45 = vrot.slane %v7348_v30, 2 }
 0x131   : > { %v5819_v7 = vpop.permute.xlu0 %5818  ;;  %v5794_v57 = vpop.permute.xlu1 %5793  ;;  %v2043_v6 = vsel %vm2040_vm12, %v2010_v31, %v5800_v48  ;;  %v2044_v25 = vsel %vm2040_vm12, %v2011_v50, %v5801_v51  ;;  %v930_v31 = vsel %vm867_vm1, %v928_v42, %v929_v39  ;;  %v932_v50 = vsel %vm867_vm1, %v929_v39, %v931_v49 }
 0x132   : > { %v5796_v38 = vunpack.i.h.bf16 %v5794_v57  ;;  %v5795_v8 = vunpack.i.l.bf16 %v5794_v57  ;;  %v2074_v23 = vpack.c.bf16 %v2044_v25, %v2043_v6  ;;  %v5821_v9 = vunpack.i.h.bf16 %v5819_v7 }
 0x133   : > { %6108 = vrot.lane.b32.xlu0 %v6062_v3, %s6761_s17  ;;  %v5820_v1 = vunpack.i.l.bf16 %v5819_v7  ;;  %v1111_v7 = vrot.slane %v7345_v18, 2  ;;  %v933_v57 = vrot.slane %v7348_v30, 1  ;;  %v5721_v39 = vunpack.i.h.bf16 %v7319_v59 }
 0x134   : > { %v1815_v10 = vsel %vm1809_vm5, %v6987_v53, %v5796_v38  ;;  %v1814_v61 = vsel %vm1809_vm5, %v6990_v54, %v5795_v8  ;;  %6083 = vrot.lane.b32.xlu1 %v6062_v3, %s6757_s28  ;;  %5491 = vmatmul.mubr.msk.bf16.vlgmr.msra.gmra.mxu0 %vm2116_vm13, %v2074_v23 }
 0x135   : > { %v1848_v63 = vsel %vm1842_vm6, %v1815_v10, %v5811_v44  ;;  %v1847_v34 = vsel %vm1842_vm6, %v1814_v61, %v5810_v62  ;;  %v5829_v35 = vpop.permute.xlu0 %5828  ;;  %v5804_v51 = vpop.permute.xlu1 %5803  ;;  %v1107_v44 = vsel %vm1044_vm2, %v1105_v2, %v1106_v52  ;;  %v7555_v2 = vpack.i.bf16 %v932_v50, %v930_v31 }
 0x136   : > { %v5831_v48 = vunpack.i.h.bf16 %v5829_v35  ;;  %v5830_v20 = vunpack.i.l.bf16 %v5829_v35  ;;  %v1880_v4 = vsel %vm1875_vm7, %v1847_v34, %v5710_v0  ;;  %v1881_v53 = vsel %vm1875_vm7, %v1848_v63, %v5711_v14 }
 0x137   : > { %v1913_v54 = vsel %vm1908_vm8, %v1880_v4, %v5820_v1  ;;  %v1914_v3 = vsel %vm1908_vm8, %v1881_v53, %v5821_v9  ;;  %6118 = vrot.lane.b32.xlu0 %v7450_v17, %s6762_s18  ;;  %v5806_v6 = vunpack.i.h.bf16 %v5804_v51  ;;  %v5805_v25 = vunpack.i.l.bf16 %v5804_v51 }
 0x138   : > { %6093 = vrot.lane.b32.xlu1 %v7450_v17, %s6758_s29  ;;  %v1109_v17 = vsel %vm1044_vm2, %v1106_v52, %v1108_v27  ;;  %v1946_v42 = vsel %vm1941_vm9, %v1913_v54, %v5830_v20  ;;  %v1947_v62 = vsel %vm1941_vm9, %v1914_v3, %v5831_v48  ;;  %v5720_v14 = vunpack.i.l.bf16 %v7319_v59 }
 0x139   : > { %v5839_v38 = vpop.permute.xlu0 %5838  ;;  %v5814_v8 = vpop.permute.xlu1 %5813  ;;  %v7557_v5 = vpack.i.bf16 %v1109_v17, %v1107_v44  ;;  %v934_v27 = vrot.slane %v7345_v18, 1  ;;  %v1817_v52 = vsel %vm1809_vm5, %v6995_v55, %v5806_v6  ;;  %v1816_v61 = vsel %vm1809_vm5, %v7004_v60, %v5805_v25 }
 0x13a   : > { %v5841_v23 = vunpack.i.h.bf16 %v5839_v38  ;;  %v5840_v49 = vunpack.i.l.bf16 %v5839_v38  ;;  %v5816_v0 = vunpack.i.h.bf16 %v5814_v8  ;;  %v5815_v10 = vunpack.i.l.bf16 %v5814_v8 }
 0x13b   : > { %6128 = vrot.lane.b32.xlu0 %v6127_v37, %s6760_s16  ;;  %v1979_v59 = vsel %vm1974_vm10, %v1946_v42, %v5720_v14  ;;  %v1980_v9 = vsel %vm1974_vm10, %v1947_v62, %v5721_v39  ;;  %v5716_v60 = vunpack.i.h.bf16 %v7317_v16  ;;  %v5715_v53 = vunpack.i.l.bf16 %v7317_v16 }
 0x13c   : > { %6103 = vrot.lane.b32.xlu1 %v6127_v37, %s6759_s15  ;;  %v2012_v37 = vsel %vm2007_vm11, %v1979_v59, %v5840_v49  ;;  %v2013_v34 = vsel %vm2007_vm11, %v1980_v9, %v5841_v23  ;;  %v1849_v48 = vsel %vm1842_vm6, %v1816_v61, %v5815_v10  ;;  %v1850_v20 = vsel %vm1842_vm6, %v1817_v52, %v5816_v0 }
 0x13d   : > { %v5849_v1 = vpop.permute.xlu0 %5848  ;;  %v5824_v63 = vpop.permute.xlu1 %5823  ;;  %v1112_v25 = vsel %vm1044_vm2, %v1110_v45, %v1111_v7  ;;  %v9206_v38 = vrot.slane %v7328_v33, 2  ;;  %v1882_v44 = vsel %vm1875_vm7, %v1849_v48, %v5715_v53  ;;  %v1883_v16 = vsel %vm1875_vm7, %v1850_v20, %v5716_v60 }
 0x13e   : > { %v5851_v35 = vunpack.i.h.bf16 %v5849_v1  ;;  %v5850_v51 = vunpack.i.l.bf16 %v5849_v1  ;;  %v5826_v55 = vunpack.i.h.bf16 %v5824_v63  ;;  %v5825_v4 = vunpack.i.l.bf16 %v5824_v63 }
 0x13f   : > { %6138 = vrot.lane.b32.xlu0 %v7555_v2, %s6763_s19  ;;  %v1114_v8 = vsel %vm1044_vm2, %v1111_v7, %v9206_v38  ;;  %v9207_v62 = vrot.slane %v7334_v32, 7  ;;  %v9208_v23 = vrot.slane %v7331_v19, 7  ;;  %v743_v0 = vrot.slane %v7491_v15, 7 }
 0x140   : > { %v2045_v54 = vsel %vm2040_vm12, %v2012_v37, %v5850_v51  ;;  %v2046_v3 = vsel %vm2040_vm12, %v2013_v34, %v5851_v35  ;;  %6113 = vrot.lane.b32.xlu1 %v7555_v2, %s6761_s17  ;;  %v1915_v7 = vsel %vm1908_vm8, %v1882_v44, %v5825_v4  ;;  %v1916_v14 = vsel %vm1908_vm8, %v1883_v16, %v5826_v55 }
 0x141   : > { %v5859_v31 = vpop.permute.xlu0 %5858  ;;  %v5834_v50 = vpop.permute.xlu1 %5833  ;;  %v2075_v6 = vpack.c.bf16 %v2046_v3, %v2045_v54  ;;  %v7589_v49 = vsel %vm701_vm0, %v9208_v23, %v9207_v62  ;;  %v9209_v39 = vmov %v9208_v23  ;;  %v744_v10 = vrot.slane %v7496_v46, 7 }
 0x142   : > { %v5836_v17 = vunpack.i.h.bf16 %v5834_v50  ;;  %v5835_v42 = vunpack.i.l.bf16 %v5834_v50  ;;  %v7594_v45 = vsel %vm701_vm0, 0.0, %v9209_v39  ;;  %v5726_v61 = vunpack.i.h.bf16 %v7353_v58 }
 0x143   : > { %6148 = vrot.lane.b32.xlu0 %v7557_v5, %s6764_s20  ;;  %5494 = vmatprep.mubr.msk.bf16.mxu0 %vm2116_vm13, %v2075_v6  ;;  %v5725_v59 = vunpack.i.l.bf16 %v7353_v58  ;;  %v7609_v63 = vpack.i.bf16 %v1114_v8, %v1112_v25  ;;  %v6132_v15 = vpack.i.bf16 %v7345_v18, %v7348_v30  ;;  %v935_v34 = vsel %vm867_vm1, %v933_v57, %v934_v27 }
 0x144   : > { %v1948_v52 = vsel %vm1941_vm9, %v1915_v7, %v5835_v42  ;;  %v1949_v19 = vsel %vm1941_vm9, %v1916_v14, %v5836_v17  ;;  %6123 = vrot.lane.b32.xlu1 %v7557_v5, %s6762_s18  ;;  %v9210_v35 = vrot.slane %v7328_v33, 1  ;;  %v5861_v48 = vunpack.i.h.bf16 %v5859_v31 }
 0x145   : > { %v5869_v9 = vpop.permute.xlu0 %5868  ;;  %v5844_v1 = vpop.permute.xlu1 %5843  ;;  %v5860_v20 = vunpack.i.l.bf16 %v5859_v31  ;;  %v1981_v58 = vsel %vm1974_vm10, %v1948_v52, %v5725_v59  ;;  %v1982_v55 = vsel %vm1974_vm10, %v1949_v19, %v5726_v61  ;;  %v7624_v4 = vsel %vm701_vm0, %v743_v0, %v744_v10 }
 0x146   : > { %v5846_v37 = vunpack.i.h.bf16 %v5844_v1  ;;  %v5845_v46 = vunpack.i.l.bf16 %v5844_v1  ;;  %v937_v51 = vsel %vm867_vm1, %v934_v27, %v9210_v35  ;;  %v7627_v60 = vsel %vm701_vm0, 0.0, %v743_v0 }
 0x147   : > { %6158 = vrot.lane.b32.xlu0 %v7609_v63, %s6764_s20  ;;  %v7633_v27 = vsel %vm701_vm0, %v744_v10, 0.0  ;;  %v6142_v25 = vpack.i.bf16 %v937_v51, %v935_v34  ;;  %v5871_v38 = vunpack.i.h.bf16 %v5869_v9  ;;  %v5870_v8 = vunpack.i.l.bf16 %v5869_v9 }
 0x148   : > { %v2014_v57 = vsel %vm2007_vm11, %v1981_v58, %v5845_v46  ;;  %v2015_v33 = vsel %vm2007_vm11, %v1982_v55, %v5846_v37  ;;  %6133 = vrot.lane.b32.xlu1 %v6132_v15, %s6760_s16  ;;  %v5731_v16 = vunpack.i.h.bf16 %v7355_v56  ;;  %v5730_v17 = vunpack.i.l.bf16 %v7355_v56 }
 0x149   : > { %v5879_v53 = vpop.permute.xlu0 %5878  ;;  %v5854_v54 = vpop.permute.xlu1 %5853  ;;  %v2047_v3 = vsel %vm2040_vm12, %v2014_v57, %v5860_v20  ;;  %v2048_v31 = vsel %vm2040_vm12, %v2015_v33, %v5861_v48  ;;  %v941_v61 = vrot.slane %v7633_v27, 1  ;;  %v1118_v1 = vrot.slane %v7633_v27, 2 }
 0x14a   : > { %v5856_v50 = vunpack.i.h.bf16 %v5854_v54  ;;  %v5855_v6 = vunpack.i.l.bf16 %v5854_v54  ;;  %v2076_v44 = vpack.c.bf16 %v2048_v31, %v2047_v3  ;;  %v5881_v23 = vunpack.i.h.bf16 %v5879_v53 }
 0x14b   : > { %6168 = vrot.lane.b32.xlu0 %v7557_v5, %s6758_s29  ;;  %v5880_v39 = vunpack.i.l.bf16 %v5879_v53  ;;  %v6207_v35 = vpack.i.bf16 %v7624_v4, %v7627_v60  ;;  %v5740_v55 = vunpack.i.l.bf16 %v7379_v24  ;;  %v939_v53 = vrot.slane %v7624_v4, 1 }
 0x14c   : > { %v1819_v42 = vsel %vm1809_vm5, %v7016_v12, %v5856_v50  ;;  %v1818_v62 = vsel %vm1809_vm5, %v7019_v13, %v5855_v6  ;;  %6143 = vrot.lane.b32.xlu1 %v6142_v25, %s6763_s19  ;;  %5495 = vmatmul.mubr.msk.bf16.gmra.mxu0 %vm2116_vm13, %v2076_v44  ;;  %v9211_v13 = vrot.slane %v7334_v32, 7  ;;  %v1115_v54 = vrot.slane %v7627_v60, 2 }
 0x14d   : > { %v1852_v7 = vsel %vm1842_vm6, %v1819_v42, %v5871_v38  ;;  %v1851_v14 = vsel %vm1842_vm6, %v1818_v62, %v5870_v8  ;;  %v5889_v5 = vpop.permute.xlu0 %5888  ;;  %v5864_v0 = vpop.permute.xlu1 %5863  ;;  %v5675_v27 = vunpack.i.l.bf16 %v7266_v36 }
 0x14e   : > { %v5891_v10 = vunpack.i.h.bf16 %v5889_v5  ;;  %v5890_v56 = vunpack.i.l.bf16 %v5889_v5  ;;  %v1884_v52 = vsel %vm1875_vm7, %v1851_v14, %v5730_v17  ;;  %v1885_v12 = vsel %vm1875_vm7, %v1852_v7, %v5731_v16 }
 0x14f   : > { %v7654_v19 = vsel %vm701_vm0, %v9211_v13, 0.0  ;;  %v1917_v59 = vsel %vm1908_vm8, %v1884_v52, %v5880_v39  ;;  %v1918_v9 = vsel %vm1908_vm8, %v1885_v12, %v5881_v23  ;;  %6178 = vrot.lane.b32.xlu0 %v6132_v15, %s6759_s15  ;;  %v5866_v37 = vunpack.i.h.bf16 %v5864_v0 }
 0x150   : > { %6153 = vrot.lane.b32.xlu1 %v7555_v2, %s6757_s28  ;;  %v5865_v46 = vunpack.i.l.bf16 %v5864_v0  ;;  %v1950_v51 = vsel %vm1941_vm9, %v1917_v59, %v5890_v56  ;;  %v1951_v48 = vsel %vm1941_vm9, %v1918_v9, %v5891_v10  ;;  %v5741_v15 = vunpack.i.h.bf16 %v7379_v24 }
 0x151   : > { %v5899_v34 = vpop.permute.xlu0 %5898  ;;  %v5874_v32 = vpop.permute.xlu1 %5873  ;;  %v938_v2 = vrot.slane %v7627_v60, 1  ;;  %v1821_v3 = vsel %vm1809_vm5, %v7035_v28, %v5866_v37  ;;  %v1983_v24 = vsel %vm1974_vm10, %v1950_v51, %v5740_v55  ;;  %v5735_v23 = vunpack.i.l.bf16 %v7377_v43 }
 0x152   : > { %v5901_v20 = vunpack.i.h.bf16 %v5899_v34  ;;  %v5900_v58 = vunpack.i.l.bf16 %v5899_v34  ;;  %v5876_v57 = vunpack.i.h.bf16 %v5874_v32  ;;  %v5875_v33 = vunpack.i.l.bf16 %v5874_v32 }
 0x153   : > { %6188 = vrot.lane.b32.xlu0 %v6142_v25, %s6761_s17  ;;  %v1820_v31 = vsel %vm1809_vm5, %v7038_v29, %v5865_v46  ;;  %v1984_v50 = vsel %vm1974_vm10, %v1951_v48, %v5741_v15  ;;  %v5736_v29 = vunpack.i.h.bf16 %v7377_v43  ;;  %v940_v10 = vsel %vm867_vm1, %v938_v2, %v939_v53 }
 0x154   : > { %6163 = vrot.lane.b32.xlu1 %v6142_v25, %s6757_s28  ;;  %v2016_v25 = vsel %vm2007_vm11, %v1983_v24, %v5900_v58  ;;  %v2017_v8 = vsel %vm2007_vm11, %v1984_v50, %v5901_v20  ;;  %v1853_v17 = vsel %vm1842_vm6, %v1820_v31, %v5875_v33  ;;  %v1854_v42 = vsel %vm1842_vm6, %v1821_v3, %v5876_v57 }
 0x155   : > { %v5909_v6 = vpop.permute.xlu0 %5908  ;;  %v5884_v38 = vpop.permute.xlu1 %5883  ;;  %v942_v56 = vsel %vm867_vm1, %v939_v53, %v941_v61  ;;  %v1116_v52 = vrot.slane %v7624_v4, 2  ;;  %v1886_v12 = vsel %vm1875_vm7, %v1853_v17, %v5735_v23  ;;  %v1887_v43 = vsel %vm1875_vm7, %v1854_v42, %v5736_v29  ;;  %v466_v53 = vld [vmem:[%s6941_s14 + $0xf8] sm:$0xff] }
 0x156   : > { %v5911_v44 = vunpack.i.h.bf16 %v5909_v6  ;;  %v5910_v16 = vunpack.i.l.bf16 %v5909_v6  ;;  %v5886_v28 = vunpack.i.h.bf16 %v5884_v38  ;;  %v5885_v62 = vunpack.i.l.bf16 %v5884_v38 }
 0x157   : > { %6198 = vrot.lane.b32.xlu0 %v7609_v63, %s6762_s18  ;;  %v1123_v9 = vrot.slane %v7654_v19, 2  ;;  %v5676_v37 = vunpack.i.h.bf16 %v7266_v36  ;;  %v1120_v32 = vrot.slane %v7594_v45, 2  ;;  %v1121_v51 = vrot.slane %v7589_v49, 2 }
 0x158   : > { %v2049_v39 = vsel %vm2040_vm12, %v2016_v25, %v5910_v16  ;;  %v2050_v7 = vsel %vm2040_vm12, %v2017_v8, %v5911_v44  ;;  %6173 = vrot.lane.b32.xlu1 %v7609_v63, %s6758_s29  ;;  %v1919_v63 = vsel %vm1908_vm8, %v1886_v12, %v5885_v62  ;;  %v1920_v46 = vsel %vm1908_vm8, %v1887_v43, %v5886_v28  ;;  %v465_v28 = vld [vmem:[%s6941_s14 + $0xf0] sm:$0xff]  ;;  %s6766_s14 = smov 32  }
 0x159   : > { %v5919_v14 = vpop.permute.xlu0 %5918  ;;  %v5894_v5 = vpop.permute.xlu1 %5893  ;;  %v2077_v0 = vpack.c.bf16 %v2050_v7, %v2049_v39  ;;  %v5746_v48 = vunpack.i.h.bf16 %v7400_v26  ;;  %v5745_v20 = vunpack.i.l.bf16 %v7400_v26  ;;  %v7712_v55 = vpack.i.bf16 %v942_v56, %v940_v10 }
 0x15a   : > { %v5896_v13 = vunpack.i.h.bf16 %v5894_v5  ;;  %v5895_v59 = vunpack.i.l.bf16 %v5894_v5  ;;  %v1117_v57 = vsel %vm1044_vm2, %v1115_v54, %v1116_v52  ;;  %v5921_v3 = vunpack.i.h.bf16 %v5919_v14 }
 0x15b   : > { %6208 = vrot.lane.b32.xlu0 %v6207_v35, %s6760_s16  ;;  %5498 = vmatprep.mubr.msk.bf16.mxu0 %vm2116_vm13, %v2077_v0  ;;  %v5920_v31 = vunpack.i.l.bf16 %v5919_v14  ;;  %v659_v44 = vsel %vm627_vm3, %v466_v53, %v5676_v37  ;;  %v1122_v16 = vsel %vm1044_vm2, %v1120_v32, %v1121_v51  ;;  %v1124_v17 = vsel %vm1044_vm2, %v1121_v51, %v1123_v9 }
 0x15c   : > { %v1952_v61 = vsel %vm1941_vm9, %v1919_v63, %v5895_v59  ;;  %v1953_v34 = vsel %vm1941_vm9, %v1920_v46, %v5896_v13  ;;  %6183 = vrot.lane.b32.xlu1 %v6207_v35, %s6759_s15  ;;  %v1119_v35 = vsel %vm1044_vm2, %v1116_v52, %v1118_v1  ;;  %v946_v42 = vrot.slane %v7654_v19, 1 }
 0x15d   : > { %v7710_v58 = vpop.permute.xlu0 %5928  ;;  %v5904_v15 = vpop.permute.xlu1 %5903  ;;  %v1985_v24 = vsel %vm1974_vm10, %v1952_v61, %v5745_v20  ;;  %v1986_v26 = vsel %vm1974_vm10, %v1953_v34, %v5746_v48  ;;  %v6227_v38 = vpack.i.bf16 %v1119_v35, %v1117_v57  ;;  %v943_v36 = vrot.slane %v7594_v45, 1 }
 0x15e   : > { %v5906_v33 = vunpack.i.h.bf16 %v5904_v15  ;;  %v5905_v2 = vunpack.i.l.bf16 %v5904_v15  ;;  %v944_v29 = vrot.slane %v7589_v49, 1  ;;  %v750_v23 = vrot.slane %v659_v44, 7 }
 0x15f   : > { %6218 = vrot.lane.b32.xlu0 %v7712_v55, %s6763_s19  ;;  %v7742_v14 = vpack.i.bf16 %v1124_v17, %v1122_v16  ;;  %v658_v19 = vsel %vm627_vm3, %v465_v28, %v5675_v27  ;;  %v6212_v5 = vpack.i.bf16 %v7589_v49, %v7594_v45  ;;  %v5931_v61 = vunpack.i.h.bf16 %v7710_v58 }
 0x160   : > { %v2018_v50 = vsel %vm2007_vm11, %v1985_v24, %v5905_v2  ;;  %v2019_v54 = vsel %vm2007_vm11, %v1986_v26, %v5906_v33  ;;  %6193 = vrot.lane.b32.xlu1 %v7712_v55, %s6761_s17  ;;  %v945_v56 = vsel %vm867_vm1, %v943_v36, %v944_v29  ;;  %v947_v52 = vsel %vm867_vm1, %v944_v29, %v946_v42 }
 0x161   : > { %v5939_v1 = vpop.permute.xlu0 %5938  ;;  %v5914_v6 = vpop.permute.xlu1 %5913  ;;  %v2051_v25 = vsel %vm2040_vm12, %v2018_v50, %v5920_v31  ;;  %v2052_v8 = vsel %vm2040_vm12, %v2019_v54, %v5921_v3  ;;  %v749_v12 = vrot.slane %v658_v19, 7  ;;  %v7753_v43 = vsel %vm701_vm0, %v750_v23, 0.0 }
 0x162   : > { %v2078_v62 = vpack.c.bf16 %v2052_v8, %v2051_v25  ;;  %v5916_v0 = vunpack.i.h.bf16 %v5914_v6  ;;  %v5915_v10 = vunpack.i.l.bf16 %v5914_v6  ;;  %v6222_v9 = vpack.i.bf16 %v947_v52, %v945_v56 }
 0x163   : > { %6228 = vrot.lane.b32.xlu0 %v6227_v38, %s6764_s20  ;;  %v1322_v46 = vrot.slane %v7753_v43, 1  ;;  %v5930_v34 = vunpack.i.l.bf16 %v7710_v58  ;;  %v7767_v32 = vsel %vm701_vm0, 0.0, %v749_v12  ;;  %v1423_v51 = vrot.slane %v7753_v43, 2 }
 0x164   : > { %6203 = vrot.lane.b32.xlu1 %v6227_v38, %s6762_s18  ;;  %5499 = vmatmul.mubr.msk.bf16.gmra.mxu0 %vm2116_vm13, %v2078_v62  ;;  %v1823_v37 = vsel %vm1809_vm5, %v7055_v40, %v5916_v0  ;;  %v1822_v63 = vsel %vm1809_vm5, %v7058_v41, %v5915_v10  ;;  %v7773_v41 = vsel %vm701_vm0, %v749_v12, %v750_v23  ;;  %v5941_v57 = vunpack.i.h.bf16 %v5939_v1 }
 0x165   : > { %v5949_v39 = vpop.permute.xlu0 %5948  ;;  %v7740_v7 = vpop.permute.xlu1 %5923  ;;  %v1856_v20 = vsel %vm1842_vm6, %v1823_v37, %v5931_v61  ;;  %v1855_v15 = vsel %vm1842_vm6, %v1822_v63, %v5930_v34  ;;  %v5940_v33 = vunpack.i.l.bf16 %v5939_v1  ;;  %v1319_v35 = vrot.slane %v7767_v32, 1 }
 0x166   : > { %v5951_v58 = vunpack.i.h.bf16 %v5949_v39  ;;  %v5950_v2 = vunpack.i.l.bf16 %v5949_v39  ;;  %v1320_v53 = vrot.slane %v7773_v41, 1  ;;  %v1889_v31 = vsel %vm1875_vm7, %v1856_v20, %v5941_v57 }
 0x167   : > { %6238 = vrot.lane.b32.xlu0 %v7742_v14, %s6764_s20  ;;  %v1888_v3 = vsel %vm1875_vm7, %v1855_v15, %v5940_v33  ;;  %v6287_v6 = vpack.i.bf16 %v7773_v41, %v7767_v32  ;;  %v1421_v17 = vrot.slane %v7773_v41, 2  ;;  %v5926_v42 = vunpack.i.h.bf16 %v7740_v7 }
 0x168   : > { %6213 = vrot.lane.b32.xlu1 %v6212_v5, %s6760_s16  ;;  %v1921_v8 = vsel %vm1908_vm8, %v1888_v3, %v5950_v2  ;;  %v1922_v44 = vsel %vm1908_vm8, %v1889_v31, %v5951_v58  ;;  %v1321_v16 = vsel %vm867_vm1, %v1319_v35, %v1320_v53  ;;  %v5925_v28 = vunpack.i.l.bf16 %v7740_v7 }
 0x169   : > { %v5959_v13 = vpop.permute.xlu0 %5958  ;;  %v7755_v59 = vpop.permute.xlu1 %5933  ;;  %v1825_v41 = vsel %vm1809_vm5, %v7069_v47, %v5926_v42  ;;  %vm3539_vm3 = vcmask 1043459  }
 0x16a   : > { %v5961_v24 = vunpack.i.h.bf16 %v5959_v13  ;;  %v5960_v26 = vunpack.i.l.bf16 %v5959_v13  ;;  %v5936_v10 = vunpack.i.h.bf16 %v7755_v59  ;;  %v5935_v56 = vunpack.i.l.bf16 %v7755_v59 }
 0x16b   : > { %6248 = vrot.lane.b32.xlu0 %v6227_v38, %s6758_s29 }
 0x16c   : > { %6223 = vrot.lane.b32.xlu1 %v6222_v9, %s6763_s19  ;;  %v1954_v62 = vsel %vm1941_vm9, %v1921_v8, %v5960_v26  ;;  %v1955_v36 = vsel %vm1941_vm9, %v1922_v44, %v5961_v24 }
 0x16d   : > { %v5969_v48 = vpop.permute.xlu0 %5968  ;;  %v7770_v40 = vpop.permute.xlu1 %5943 }
 0x16e   : > { %v5971_v27 = vunpack.i.h.bf16 %v5969_v48  ;;  %v5970_v1 = vunpack.i.l.bf16 %v5969_v48  ;;  %v5946_v12 = vunpack.i.h.bf16 %v7770_v40  ;;  %v5945_v13 = vunpack.i.l.bf16 %v7770_v40  ;;  %v9212_v40 = vld [vmem:[#allocation7_spill] sm:$0xff] }
 0x16f   : > { %6258 = vrot.lane.b32.xlu0 %v6212_v5, %s6759_s15  ;;  %v1323_v48 = vsel %vm867_vm1, %v1320_v53, %v1322_v46  ;;  %v1824_v20 = vsel %vm1809_vm5, %v9212_v40, %v5925_v28 }
 0x170   : > { %6233 = vrot.lane.b32.xlu1 %v7712_v55, %s6757_s28  ;;  %v1420_v55 = vrot.slane %v7767_v32, 2  ;;  %v1987_v39 = vsel %vm1974_vm10, %v1954_v62, %v5970_v1  ;;  %v1988_v19 = vsel %vm1974_vm10, %v1955_v36, %v5971_v27  ;;  %v1857_v33 = vsel %vm1842_vm6, %v1824_v20, %v5935_v56  ;;  %v9213_v36 = vld [vmem:[#allocation3_spill] sm:$0xff] }
 0x171   : > { %v5979_v50 = vpop.permute.xlu0 %5978  ;;  %v5954_v54 = vpop.permute.xlu1 %5953  ;;  %v1890_v46 = vsel %vm1875_vm7, %v1857_v33, %v5945_v13  ;;  %v6297_v47 = vpack.i.bf16 %v1323_v48, %v1321_v16 }
 0x172   : > { %v5981_v38 = vunpack.i.h.bf16 %v5979_v50  ;;  %v5980_v25 = vunpack.i.l.bf16 %v5979_v50  ;;  %v5956_v63 = vunpack.i.h.bf16 %v5954_v54  ;;  %v5955_v59 = vunpack.i.l.bf16 %v5954_v54 }
 0x173   : > { %6268 = vrot.lane.b32.xlu0 %v6222_v9, %s6761_s17  ;;  %v1422_v26 = vsel %vm1044_vm2, %v1420_v55, %v1421_v17  ;;  %v1424_v50 = vsel %vm1044_vm2, %v1421_v17, %v1423_v51 }
 0x174   : > { %6243 = vrot.lane.b32.xlu1 %v6222_v9, %s6757_s28  ;;  %v2020_v52 = vsel %vm2007_vm11, %v1987_v39, %v5980_v25  ;;  %v2021_v7 = vsel %vm2007_vm11, %v1988_v19, %v5981_v38  ;;  %v1923_v53 = vsel %vm1908_vm8, %v1890_v46, %v5955_v59  ;;  %v6307_v17 = vpack.i.bf16 %v1424_v50, %v1422_v26 }
 0x175   : > { %v5989_v29 = vpop.permute.xlu0 %5988  ;;  %v5964_v23 = vpop.permute.xlu1 %5963 }
 0x176   : > { %v5991_v5 = vunpack.i.h.bf16 %v5989_v29  ;;  %v5990_v0 = vunpack.i.l.bf16 %v5989_v29  ;;  %v5966_v15 = vunpack.i.h.bf16 %v5964_v23  ;;  %v5965_v57 = vunpack.i.l.bf16 %v5964_v23  ;;  %v9214_v29 = vld [vmem:[#allocation2_spill] sm:$0xff] }
 0x177   : > { %6278 = vrot.lane.b32.xlu0 %v7742_v14, %s6762_s18  ;;  %v6292_v23 = vpack.i.bf16 %v9214_v29, %v9213_v36 }
 0x178   : > { %v2053_v9 = vsel %vm2040_vm12, %v2020_v52, %v5990_v0  ;;  %v2054_v37 = vsel %vm2040_vm12, %v2021_v7, %v5991_v5  ;;  %6253 = vrot.lane.b32.xlu1 %v7742_v14, %s6758_s29  ;;  %v1858_v14 = vsel %vm1842_vm6, %v1825_v41, %v5936_v10  ;;  %v1956_v54 = vsel %vm1941_vm9, %v1923_v53, %v5965_v57  ;;  %v9215_v52 = vld [vmem:[#allocation8_spill] sm:$0xff] }
 0x179   : > { %v5999_v61 = vpop.permute.xlu0 %5998  ;;  %v5974_v34 = vpop.permute.xlu1 %5973  ;;  %v2079_v32 = vpack.c.bf16 %v2054_v37, %v2053_v9  ;;  %v1891_v35 = vsel %vm1875_vm7, %v1858_v14, %v5946_v12  ;;  %v9216_v12 = vld [vmem:[#allocation9_spill] sm:$0xff] }
 0x17a   : > { %v5976_v58 = vunpack.i.h.bf16 %v5974_v34  ;;  %v5975_v2 = vunpack.i.l.bf16 %v5974_v34  ;;  %v1924_v3 = vsel %vm1908_vm8, %v1891_v35, %v5956_v63  ;;  %v6000_v25 = vunpack.i.l.bf16 %v5999_v61  ;;  %v9217_v63 = vld [vmem:[#allocation5_spill] sm:$0xff] }
 0x17b   : > { %6288 = vrot.lane.b32.xlu0 %v6287_v6, %s6760_s16  ;;  %5502 = vmatprep.mubr.msk.bf16.mxu0 %vm2116_vm13, %v2079_v32  ;;  %v1957_v27 = vsel %vm1941_vm9, %v1924_v3, %v5966_v15  ;;  %v9218_v15 = vld [vmem:[#allocation6_spill] sm:$0xff] }
 0x17c   : > { %6263 = vrot.lane.b32.xlu1 %v6287_v6, %s6759_s15  ;;  %v6001_v6 = vunpack.i.h.bf16 %v5999_v61  ;;  %v1989_v8 = vsel %vm1974_vm10, %v1956_v54, %v5975_v2  ;;  %v1990_v44 = vsel %vm1974_vm10, %v1957_v27, %v5976_v58  ;;  %s6767_s15 = smov 64  }
 0x17d   : > { %v6009_v31 = vpop.permute.xlu0 %6008  ;;  %v5984_v24 = vpop.permute.xlu1 %5983 }
 0x17e   : > { %v5986_v1 = vunpack.i.h.bf16 %v5984_v24  ;;  %v5985_v38 = vunpack.i.l.bf16 %v5984_v24  ;;  %v6011_v9 = vunpack.i.h.bf16 %v6009_v31  ;;  %v6010_v37 = vunpack.i.l.bf16 %v6009_v31 }
 0x17f   : > { %6298 = vrot.lane.b32.xlu0 %v6297_v47, %s6763_s19 }
 0x180   : > { %v2022_v55 = vsel %vm2007_vm11, %v1989_v8, %v5985_v38  ;;  %v2023_v43 = vsel %vm2007_vm11, %v1990_v44, %v5986_v1  ;;  %6273 = vrot.lane.b32.xlu1 %v6297_v47, %s6761_s17 }
 0x181   : > { %v6019_v51 = vpop.permute.xlu0 %6018  ;;  %v5994_v16 = vpop.permute.xlu1 %5993  ;;  %v2055_v42 = vsel %vm2040_vm12, %v2022_v55, %v6000_v25  ;;  %v2056_v28 = vsel %vm2040_vm12, %v2023_v43, %v6001_v6 }
 0x182   : > { %v2080_v62 = vpack.c.bf16 %v2056_v28, %v2055_v42  ;;  %v5996_v5 = vunpack.i.h.bf16 %v5994_v16  ;;  %v5995_v0 = vunpack.i.l.bf16 %v5994_v16  ;;  %v6021_v48 = vunpack.i.h.bf16 %v6019_v51 }
 0x183   : > { %6308 = vrot.lane.b32.xlu0 %v6307_v17, %s6764_s20  ;;  %v6020_v41 = vunpack.i.l.bf16 %v6019_v51 }
 0x184   : > { %6283 = vrot.lane.b32.xlu1 %v6307_v17, %s6762_s18  ;;  %5503 = vmatmul.mubr.msk.bf16.gmra.mxu0 %vm2116_vm13, %v2080_v62  ;;  %v1827_v7 = vsel %vm1809_vm5, %v9215_v52, %v5996_v5  ;;  %v1826_v13 = vsel %vm1809_vm5, %v9216_v12, %v5995_v0  ;;  %v9220_v52 = vld [vmem:[#allocation11_spill] sm:$0xff] }
 0x185   : > { %v6029_v39 = vpop.permute.xlu0 %6028  ;;  %v6004_v19 = vpop.permute.xlu1 %6003  ;;  %v1860_v34 = vsel %vm1842_vm6, %v1827_v7, %v6011_v9  ;;  %v1859_v32 = vsel %vm1842_vm6, %v1826_v13, %v6010_v37 }
 0x186   : > { %v6031_v40 = vunpack.i.h.bf16 %v6029_v39  ;;  %v6030_v20 = vunpack.i.l.bf16 %v6029_v39  ;;  %v1892_v57 = vsel %vm1875_vm7, %v1859_v32, %v6020_v41  ;;  %v1893_v33 = vsel %vm1875_vm7, %v1860_v34, %v6021_v48 }
 0x187   : > { %v6006_v8 = vunpack.i.h.bf16 %v6004_v19  ;;  %v6005_v44 = vunpack.i.l.bf16 %v6004_v19 }
 0x188   : > { %6293 = vrot.lane.b32.xlu1 %v6292_v23, %s6760_s16  ;;  %v1925_v31 = vsel %vm1908_vm8, %v1892_v57, %v6030_v20  ;;  %v1926_v24 = vsel %vm1908_vm8, %v1893_v33, %v6031_v40  ;;  %s6768_s16 = smov 96  }
 0x189   : > { %v6039_v10 = vpop.permute.xlu0 %6038  ;;  %v6014_v56 = vpop.permute.xlu1 %6013  ;;  %v1828_v7 = vsel %vm1809_vm5, %v9220_v52, %v6005_v44 }
 0x18a   : > { %v6041_v14 = vunpack.i.h.bf16 %v6039_v10  ;;  %v6040_v58 = vunpack.i.l.bf16 %v6039_v10  ;;  %v6016_v51 = vunpack.i.h.bf16 %v6014_v56  ;;  %v6015_v16 = vunpack.i.l.bf16 %v6014_v56  ;;  %v9219_v10 = vld [vmem:[#allocation10_spill] sm:$0xff] }
 0x18b   : > { %v1829_v19 = vsel %vm1809_vm5, %v9219_v10, %v6006_v8  ;;  %v9222_v8 = vld [vmem:[#allocation14_spill] sm:$0xff] }
 0x18c   : > { %6303 = vrot.lane.b32.xlu1 %v9217_v63, %s6763_s19  ;;  %v1958_v26 = vsel %vm1941_vm9, %v1925_v31, %v6040_v58  ;;  %v1959_v50 = vsel %vm1941_vm9, %v1926_v24, %v6041_v14  ;;  %v1861_v56 = vsel %vm1842_vm6, %v1828_v7, %v6015_v16  ;;  %v1862_v9 = vsel %vm1842_vm6, %v1829_v19, %v6016_v51  ;;  %s5357_s19 = sshll.u32 %s9230_s22, 6 }
 0x18d   : > { %v6049_v59 = vpop.permute.xlu0 %6048  ;;  %v6024_v61 = vpop.permute.xlu1 %6023 }
 0x18e   : > { %v6051_v35 = vunpack.i.h.bf16 %v6049_v59  ;;  %v6050_v47 = vunpack.i.l.bf16 %v6049_v59  ;;  %v6026_v28 = vunpack.i.h.bf16 %v6024_v61  ;;  %v6025_v62 = vunpack.i.l.bf16 %v6024_v61 }
 0x190   : > { %6313 = vrot.lane.b32.xlu1 %v9218_v15, %s6764_s20  ;;  %v1991_v1 = vsel %vm1974_vm10, %v1958_v26, %v6050_v47  ;;  %v1992_v38 = vsel %vm1974_vm10, %v1959_v50, %v6051_v35  ;;  %v1894_v59 = vsel %vm1875_vm7, %v1861_v56, %v6025_v62  ;;  %v1895_v61 = vsel %vm1875_vm7, %v1862_v9, %v6026_v28 }
 0x191   : > { %v6059_v2 = vpop.permute.xlu0 %6058  ;;  %v6034_v46 = vpop.permute.xlu1 %6033 }
 0x192   : > { %v6061_v53 = vunpack.i.h.bf16 %v6059_v2  ;;  %v6060_v3 = vunpack.i.l.bf16 %v6059_v2  ;;  %v6036_v5 = vunpack.i.h.bf16 %v6034_v46  ;;  %v6035_v0 = vunpack.i.l.bf16 %v6034_v46 }
 0x194   : > { %v2024_v55 = vsel %vm2007_vm11, %v1991_v1, %v6060_v3  ;;  %v2025_v43 = vsel %vm2007_vm11, %v1992_v38, %v6061_v53  ;;  %v1927_v32 = vsel %vm1908_vm8, %v1894_v59, %v6035_v0  ;;  %v1928_v48 = vsel %vm1908_vm8, %v1895_v61, %v6036_v5 }
 0x195   : > { %v6069_v54 = vpop.permute.xlu0 %6068  ;;  %v6044_v27 = vpop.permute.xlu1 %6043 }
 0x196   : > { %v6071_v6 = vunpack.i.h.bf16 %v6069_v54  ;;  %v6070_v25 = vunpack.i.l.bf16 %v6069_v54  ;;  %v6046_v12 = vunpack.i.h.bf16 %v6044_v27  ;;  %v6045_v13 = vunpack.i.l.bf16 %v6044_v27 }
 0x198   : > { %v2057_v17 = vsel %vm2040_vm12, %v2024_v55, %v6070_v25  ;;  %v2058_v42 = vsel %vm2040_vm12, %v2025_v43, %v6071_v6  ;;  %v1960_v40 = vsel %vm1941_vm9, %v1927_v32, %v6045_v13  ;;  %v1961_v20 = vsel %vm1941_vm9, %v1928_v48, %v6046_v12  ;;  %v9221_v6 = vld [vmem:[#allocation13_spill] sm:$0xff] }
 0x199   : > { %v6079_v29 = vpop.permute.xlu0 %6078  ;;  %v6054_v23 = vpop.permute.xlu1 %6053  ;;  %v2081_v39 = vpack.c.bf16 %v2058_v42, %v2057_v17 }
 0x19a   : > { %v6056_v37 = vunpack.i.h.bf16 %v6054_v23  ;;  %v6055_v63 = vunpack.i.l.bf16 %v6054_v23  ;;  %v6081_v33 = vunpack.i.h.bf16 %v6079_v29  ;;  %v6080_v14 = vunpack.i.l.bf16 %v6079_v29 }
 0x19b   : > { %5506 = vmatprep.mubr.msk.bf16.mxu0 %vm2116_vm13, %v2081_v39 }
 0x19c   : > { %v1993_v58 = vsel %vm1974_vm10, %v1960_v40, %v6055_v63  ;;  %v1994_v2 = vsel %vm1974_vm10, %v1961_v20, %v6056_v37 }
 0x19d   : > { %v6089_v34 = vpop.permute.xlu0 %6088 }
 0x19e   : > { %v6064_v41 = vpop.permute.xlu1 %6063  ;;  %v6091_v55 = vunpack.i.h.bf16 %v6089_v34  ;;  %v6090_v43 = vunpack.i.l.bf16 %v6089_v34 }
 0x19f   : > { %v6066_v15 = vunpack.i.h.bf16 %v6064_v41  ;;  %v6065_v57 = vunpack.i.l.bf16 %v6064_v41 }
 0x1a1   : > { %v2026_v46 = vsel %vm2007_vm11, %v1993_v58, %v6065_v57  ;;  %v2027_v35 = vsel %vm2007_vm11, %v1994_v2, %v6066_v15  ;;  %v6099_v47 = vpop.permute.xlu0 %6098 }
 0x1a2   : > { %v6074_v53 = vpop.permute.xlu1 %6073  ;;  %v2059_v3 = vsel %vm2040_vm12, %v2026_v46, %v6080_v14  ;;  %v2060_v31 = vsel %vm2040_vm12, %v2027_v35, %v6081_v33  ;;  %v6101_v28 = vunpack.i.h.bf16 %v6099_v47  ;;  %v6100_v62 = vunpack.i.l.bf16 %v6099_v47 }
 0x1a3   : > { %v2082_v24 = vpack.c.bf16 %v2060_v31, %v2059_v3  ;;  %v6076_v54 = vunpack.i.h.bf16 %v6074_v53  ;;  %v6075_v27 = vunpack.i.l.bf16 %v6074_v53 }
 0x1a5   : > { %5507 = vmatmul.mubr.msk.bf16.gmra.mxu0 %vm2116_vm13, %v2082_v24  ;;  %v6109_v26 = vpop.permute.xlu0 %6108  ;;  %v1831_v25 = vsel %vm1809_vm5, %v9221_v6, %v6076_v54  ;;  %v1830_v44 = vsel %vm1809_vm5, %v9222_v8, %v6075_v27  ;;  %v9223_v54 = vld [vmem:[#allocation12_spill] sm:$0xff] }
 0x1a6   : > { %v6084_v50 = vpop.permute.xlu1 %6083  ;;  %v1864_v16 = vsel %vm1842_vm6, %v1831_v25, %v6091_v55  ;;  %v1863_v17 = vsel %vm1842_vm6, %v1830_v44, %v6090_v43  ;;  %v6111_v29 = vunpack.i.h.bf16 %v6109_v26  ;;  %v6110_v23 = vunpack.i.l.bf16 %v6109_v26 }
 0x1a7   : > { %v1896_v39 = vsel %vm1875_vm7, %v1863_v17, %v6100_v62  ;;  %v1897_v5 = vsel %vm1875_vm7, %v1864_v16, %v6101_v28  ;;  %v6086_v20 = vunpack.i.h.bf16 %v6084_v50  ;;  %v6085_v15 = vunpack.i.l.bf16 %v6084_v50 }
 0x1a8   : > { %v1929_v9 = vsel %vm1908_vm8, %v1896_v39, %v6110_v23  ;;  %v1930_v37 = vsel %vm1908_vm8, %v1897_v5, %v6111_v29 }
 0x1a9   : > { %v6119_v1 = vpop.permute.xlu0 %6118  ;;  %v1833_v50 = vsel %vm1809_vm5, %v7322_v11, %v6086_v20  ;;  %v1832_v27 = vsel %vm1809_vm5, %v9223_v54, %v6085_v15 }
 0x1aa   : > { %v6094_v38 = vpop.permute.xlu1 %6093  ;;  %v6121_v0 = vunpack.i.h.bf16 %v6119_v1  ;;  %v6120_v10 = vunpack.i.l.bf16 %v6119_v1 }
 0x1ab   : > { %v6096_v14 = vunpack.i.h.bf16 %v6094_v38  ;;  %v6095_v58 = vunpack.i.l.bf16 %v6094_v38 }
 0x1ac   : > { %v1962_v63 = vsel %vm1941_vm9, %v1929_v9, %v6120_v10  ;;  %v1963_v59 = vsel %vm1941_vm9, %v1930_v37, %v6121_v0 }
 0x1ad   : > { %v6129_v51 = vpop.permute.xlu0 %6128  ;;  %v1865_v38 = vsel %vm1842_vm6, %v1832_v27, %v6095_v58  ;;  %v1866_v25 = vsel %vm1842_vm6, %v1833_v50, %v6096_v14 }
 0x1ae   : > { %v6104_v42 = vpop.permute.xlu1 %6103  ;;  %v6131_v52 = vunpack.i.h.bf16 %v6129_v51  ;;  %v6130_v7 = vunpack.i.l.bf16 %v6129_v51 }
 0x1af   : > { %v6106_v35 = vunpack.i.h.bf16 %v6104_v42  ;;  %v6105_v47 = vunpack.i.l.bf16 %v6104_v42 }
 0x1b0   : > { %v1995_v34 = vsel %vm1974_vm10, %v1962_v63, %v6130_v7  ;;  %v1996_v32 = vsel %vm1974_vm10, %v1963_v59, %v6131_v52 }
 0x1b1   : > { %v6139_v19 = vpop.permute.xlu0 %6138  ;;  %v1898_v55 = vsel %vm1875_vm7, %v1865_v38, %v6105_v47  ;;  %v1899_v43 = vsel %vm1875_vm7, %v1866_v25, %v6106_v35 }
 0x1b2   : > { %v6114_v12 = vpop.permute.xlu1 %6113  ;;  %v6141_v13 = vunpack.i.h.bf16 %v6139_v19  ;;  %v6140_v56 = vunpack.i.l.bf16 %v6139_v19 }
 0x1b3   : > { %v6116_v31 = vunpack.i.h.bf16 %v6114_v12  ;;  %v6115_v24 = vunpack.i.l.bf16 %v6114_v12 }
 0x1b4   : > { %v2028_v57 = vsel %vm2007_vm11, %v1995_v34, %v6140_v56  ;;  %v2029_v33 = vsel %vm2007_vm11, %v1996_v32, %v6141_v13 }
 0x1b5   : > { %v6149_v61 = vpop.permute.xlu0 %6148  ;;  %v1931_v11 = vsel %vm1908_vm8, %v1898_v55, %v6115_v24  ;;  %v1932_v16 = vsel %vm1908_vm8, %v1899_v43, %v6116_v31 }
 0x1b6   : > { %v6151_v48 = vunpack.i.h.bf16 %v6149_v61  ;;  %v6150_v41 = vunpack.i.l.bf16 %v6149_v61  ;;  %v6124_v40 = vpop.permute.xlu1 %6123 }
 0x1b7   : > { %v6126_v1 = vunpack.i.h.bf16 %v6124_v40  ;;  %v6125_v6 = vunpack.i.l.bf16 %v6124_v40 }
 0x1b8   : > { %v2061_v2 = vsel %vm2040_vm12, %v2028_v57, %v6150_v41  ;;  %v2062_v46 = vsel %vm2040_vm12, %v2029_v33, %v6151_v48 }
 0x1b9   : > { %v2083_v53 = vpack.c.bf16 %v2062_v46, %v2061_v2  ;;  %v6159_v3 = vpop.permute.xlu0 %6158  ;;  %v1964_v42 = vsel %vm1941_vm9, %v1931_v11, %v6125_v6  ;;  %v1965_v28 = vsel %vm1941_vm9, %v1932_v16, %v6126_v1 }
 0x1ba   : > { %v6134_v26 = vpop.permute.xlu1 %6133  ;;  %v6161_v23 = vunpack.i.h.bf16 %v6159_v3  ;;  %v6160_v39 = vunpack.i.l.bf16 %v6159_v3 }
 0x1bb   : > { %5510 = vmatprep.mubr.msk.bf16.mxu0 %vm2116_vm13, %v2083_v53  ;;  %v6136_v8 = vunpack.i.h.bf16 %v6134_v26  ;;  %v6135_v44 = vunpack.i.l.bf16 %v6134_v26 }
 0x1bd   : > { %v6169_v51 = vpop.permute.xlu0 %6168  ;;  %v1997_v5 = vsel %vm1974_vm10, %v1964_v42, %v6135_v44  ;;  %v1998_v0 = vsel %vm1974_vm10, %v1965_v28, %v6136_v8 }
 0x1be   : > { %v6144_v17 = vpop.permute.xlu1 %6143  ;;  %v6171_v41 = vunpack.i.h.bf16 %v6169_v51  ;;  %v6170_v40 = vunpack.i.l.bf16 %v6169_v51 }
 0x1bf   : > { %v6146_v62 = vunpack.i.h.bf16 %v6144_v17  ;;  %v6145_v29 = vunpack.i.l.bf16 %v6144_v17 }
 0x1c1   : > { %v2030_v10 = vsel %vm2007_vm11, %v1997_v5, %v6145_v29  ;;  %v2031_v19 = vsel %vm2007_vm11, %v1998_v0, %v6146_v62  ;;  %v6179_v52 = vpop.permute.xlu0 %6178 }
 0x1c2   : > { %v6154_v7 = vpop.permute.xlu1 %6153  ;;  %v2063_v12 = vsel %vm2040_vm12, %v2030_v10, %v6160_v39  ;;  %v2064_v13 = vsel %vm2040_vm12, %v2031_v19, %v6161_v23  ;;  %v6181_v14 = vunpack.i.h.bf16 %v6179_v52  ;;  %v6180_v58 = vunpack.i.l.bf16 %v6179_v52 }
 0x1c3   : > { %v2084_v56 = vpack.c.bf16 %v2064_v13, %v2063_v12  ;;  %v6156_v63 = vunpack.i.h.bf16 %v6154_v7  ;;  %v6155_v59 = vunpack.i.l.bf16 %v6154_v7 }
 0x1c5   : > { %5511 = vmatmul.mubr.msk.bf16.gmra.mxu0 %vm2116_vm13, %v2084_v56  ;;  %v6189_v9 = vpop.permute.xlu0 %6188  ;;  %v1835_v32 = vsel %vm1809_vm5, %v7409_v21, %v6156_v63  ;;  %v1834_v48 = vsel %vm1809_vm5, %v7475_v22, %v6155_v59 }
 0x1c6   : > { %v6164_v37 = vpop.permute.xlu1 %6163  ;;  %v1868_v15 = vsel %vm1842_vm6, %v1835_v32, %v6171_v41  ;;  %v1867_v57 = vsel %vm1842_vm6, %v1834_v48, %v6170_v40  ;;  %v6191_v2 = vunpack.i.h.bf16 %v6189_v9  ;;  %v6190_v46 = vunpack.i.l.bf16 %v6189_v9 }
 0x1c7   : > { %v1900_v35 = vsel %vm1875_vm7, %v1867_v57, %v6180_v58  ;;  %v1901_v47 = vsel %vm1875_vm7, %v1868_v15, %v6181_v14  ;;  %v6166_v51 = vunpack.i.h.bf16 %v6164_v37  ;;  %v6165_v11 = vunpack.i.l.bf16 %v6164_v37 }
 0x1c8   : > { %v1933_v54 = vsel %vm1908_vm8, %v1900_v35, %v6190_v46  ;;  %v1934_v27 = vsel %vm1908_vm8, %v1901_v47, %v6191_v2 }
 0x1c9   : > { %v6199_v61 = vpop.permute.xlu0 %6198  ;;  %v1837_v7 = vsel %vm1809_vm5, %v7345_v18, %v6166_v51  ;;  %v1836_v12 = vsel %vm1809_vm5, %v7348_v30, %v6165_v11 }
 0x1ca   : > { %v6174_v34 = vpop.permute.xlu1 %6173  ;;  %v6201_v21 = vunpack.i.h.bf16 %v6199_v61  ;;  %v6200_v53 = vunpack.i.l.bf16 %v6199_v61 }
 0x1cb   : > { %v6176_v42 = vunpack.i.h.bf16 %v6174_v34  ;;  %v6175_v28 = vunpack.i.l.bf16 %v6174_v34 }
 0x1cc   : > { %v1966_v1 = vsel %vm1941_vm9, %v1933_v54, %v6200_v53  ;;  %v1967_v6 = vsel %vm1941_vm9, %v1934_v27, %v6201_v21 }
 0x1cd   : > { %v6209_v20 = vpop.permute.xlu0 %6208  ;;  %v1869_v9 = vsel %vm1842_vm6, %v1836_v12, %v6175_v28  ;;  %v1870_v37 = vsel %vm1842_vm6, %v1837_v7, %v6176_v42 }
 0x1ce   : > { %v6184_v33 = vpop.permute.xlu1 %6183  ;;  %v6211_v22 = vunpack.i.h.bf16 %v6209_v20  ;;  %v6210_v31 = vunpack.i.l.bf16 %v6209_v20 }
 0x1cf   : > { %v6186_v23 = vunpack.i.h.bf16 %v6184_v33  ;;  %v6185_v39 = vunpack.i.l.bf16 %v6184_v33 }
 0x1d0   : > { %v1999_v25 = vsel %vm1974_vm10, %v1966_v1, %v6210_v31  ;;  %v2000_v8 = vsel %vm1974_vm10, %v1967_v6, %v6211_v22 }
 0x1d1   : > { %v6219_v3 = vpop.permute.xlu0 %6218  ;;  %v1902_v61 = vsel %vm1875_vm7, %v1869_v9, %v6185_v39  ;;  %v1903_v34 = vsel %vm1875_vm7, %v1870_v37, %v6186_v23 }
 0x1d2   : > { %v6194_v24 = vpop.permute.xlu1 %6193  ;;  %v6221_v26 = vunpack.i.h.bf16 %v6219_v3  ;;  %v6220_v50 = vunpack.i.l.bf16 %v6219_v3 }
 0x1d3   : > { %v6196_v10 = vunpack.i.h.bf16 %v6194_v24  ;;  %v6195_v19 = vunpack.i.l.bf16 %v6194_v24 }
 0x1d4   : > { %v2032_v16 = vsel %vm2007_vm11, %v1999_v25, %v6220_v50  ;;  %v2033_v17 = vsel %vm2007_vm11, %v2000_v8, %v6221_v26 }
 0x1d5   : > { %v6229_v38 = vpop.permute.xlu0 %6228  ;;  %v1935_v18 = vsel %vm1908_vm8, %v1902_v61, %v6195_v19  ;;  %v1936_v48 = vsel %vm1908_vm8, %v1903_v34, %v6196_v10  ;;  %v7983_v10 = vld [vmem:[%s9160_s3] ss:$0 sm:$0xff] }
 0x1d6   : > { %v6231_v44 = vunpack.i.h.bf16 %v6229_v38  ;;  %v6230_v55 = vunpack.i.l.bf16 %v6229_v38  ;;  %v6204_v43 = vpop.permute.xlu1 %6203 }
 0x1d7   : > { %v6206_v13 = vunpack.i.h.bf16 %v6204_v43  ;;  %v6205_v56 = vunpack.i.l.bf16 %v6204_v43 }
 0x1d8   : > { %v2065_v62 = vsel %vm2040_vm12, %v2032_v16, %v6230_v55  ;;  %v2066_v29 = vsel %vm2040_vm12, %v2033_v17, %v6231_v44 }
 0x1d9   : > { %v2085_v5 = vpack.c.bf16 %v2066_v29, %v2065_v62  ;;  %v6239_v0 = vpop.permute.xlu0 %6238  ;;  %v1968_v41 = vsel %vm1941_vm9, %v1935_v18, %v6205_v56  ;;  %v1969_v40 = vsel %vm1941_vm9, %v1936_v48, %v6206_v13 }
 0x1da   : > { %v6214_v52 = vpop.permute.xlu1 %6213  ;;  %v6241_v57 = vunpack.i.h.bf16 %v6239_v0  ;;  %v6240_v33 = vunpack.i.l.bf16 %v6239_v0 }
 0x1db   : > { %5514 = vmatprep.mubr.msk.bf16.mxu0 %vm2116_vm13, %v2085_v5  ;;  %v6216_v63 = vunpack.i.h.bf16 %v6214_v52  ;;  %v6215_v59 = vunpack.i.l.bf16 %v6214_v52 }
 0x1dd   : > { %v6249_v32 = vpop.permute.xlu0 %6248  ;;  %v2001_v14 = vsel %vm1974_vm10, %v1968_v41, %v6215_v59  ;;  %v2002_v58 = vsel %vm1974_vm10, %v1969_v40, %v6216_v63 }
 0x1de   : > { %v6224_v30 = vpop.permute.xlu1 %6223  ;;  %v6250_v1 = vunpack.i.l.bf16 %v6249_v32  ;;  %v6251_v38 = vunpack.i.h.bf16 %v6249_v32 }
 0x1df   : > { %v6226_v20 = vunpack.i.h.bf16 %v6224_v30  ;;  %v6225_v15 = vunpack.i.l.bf16 %v6224_v30 }
 0x1e1   : > { %v2034_v2 = vsel %vm2007_vm11, %v2001_v14, %v6225_v15  ;;  %v2035_v46 = vsel %vm2007_vm11, %v2002_v58, %v6226_v20  ;;  %v6259_v35 = vpop.permute.xlu0 %6258 }
 0x1e2   : > { %v6234_v47 = vpop.permute.xlu1 %6233  ;;  %v2067_v21 = vsel %vm2040_vm12, %v2034_v2, %v6240_v33  ;;  %v2068_v53 = vsel %vm2040_vm12, %v2035_v46, %v6241_v57  ;;  %v6260_v44 = vunpack.i.l.bf16 %v6259_v35  ;;  %v6261_v51 = vunpack.i.h.bf16 %v6259_v35 }
 0x1e3   : > { %v2086_v3 = vpack.c.bf16 %v2068_v53, %v2067_v21  ;;  %v6235_v31 = vunpack.i.l.bf16 %v6234_v47  ;;  %v6236_v26 = vunpack.i.h.bf16 %v6234_v47 }
 0x1e5   : > { %5515 = vmatmul.mubr.msk.bf16.gmra.mxu0 %vm2116_vm13, %v2086_v3  ;;  %v6269_v22 = vpop.permute.xlu0 %6268  ;;  %v1838_v54 = vsel %vm1809_vm5, %v7627_v60, %v6235_v31  ;;  %v1839_v6 = vsel %vm1809_vm5, %v7624_v4, %v6236_v26 }
 0x1e6   : > { %v7965_v24 = vpop.permute.xlu1 %6243  ;;  %v1871_v25 = vsel %vm1842_vm6, %v1838_v54, %v6250_v1  ;;  %v1872_v55 = vsel %vm1842_vm6, %v1839_v6, %v6251_v38  ;;  %v6270_v11 = vunpack.i.l.bf16 %v6269_v22  ;;  %v6271_v16 = vunpack.i.h.bf16 %v6269_v22 }
 0x1e7   : > { %v1904_v60 = vsel %vm1875_vm7, %v1871_v25, %v6260_v44  ;;  %v1905_v42 = vsel %vm1875_vm7, %v1872_v55, %v6261_v51  ;;  %v6245_v34 = vunpack.i.l.bf16 %v7965_v24  ;;  %v6246_v15 = vunpack.i.h.bf16 %v7965_v24 }
 0x1e8   : > { %v1937_v39 = vsel %vm1908_vm8, %v1904_v60, %v6270_v11  ;;  %v1938_v19 = vsel %vm1908_vm8, %v1905_v42, %v6271_v16 }
 0x1e9   : > { %v6279_v50 = vpop.permute.xlu0 %6278  ;;  %v1840_v35 = vsel %vm1809_vm5, %v7594_v45, %v6245_v34  ;;  %v1841_v24 = vsel %vm1809_vm5, %v7589_v49, %v6246_v15  ;;  %vm3543_vm5 = vcmask 1045509  }
 0x1ea   : > { %v7969_v27 = vpop.permute.xlu1 %6253  ;;  %v6280_v17 = vunpack.i.l.bf16 %v6279_v50  ;;  %v6281_v28 = vunpack.i.h.bf16 %v6279_v50 }
 0x1eb   : > { %v6255_v57 = vunpack.i.l.bf16 %v7969_v27  ;;  %v6256_v47 = vunpack.i.h.bf16 %v7969_v27 }
 0x1ec   : > { %v1970_v52 = vsel %vm1941_vm9, %v1937_v39, %v6280_v17  ;;  %v1971_v7 = vsel %vm1941_vm9, %v1938_v19, %v6281_v28 }
 0x1ed   : > { %v6289_v8 = vpop.permute.xlu0 %6288  ;;  %v1873_v45 = vsel %vm1842_vm6, %v1840_v35, %v6255_v57  ;;  %v1874_v38 = vsel %vm1842_vm6, %v1841_v24, %v6256_v47  ;;  %vm3545_vm6 = vcmask 1046534  }
 0x1ee   : > { %v7975_v43 = vpop.permute.xlu1 %6263  ;;  %v6290_v62 = vunpack.i.l.bf16 %v6289_v8  ;;  %v6291_v29 = vunpack.i.h.bf16 %v6289_v8 }
 0x1ef   : > { %v6265_v21 = vunpack.i.l.bf16 %v7975_v43  ;;  %v6266_v3 = vunpack.i.h.bf16 %v7975_v43 }
 0x1f0   : > { %v2003_v12 = vsel %vm1974_vm10, %v1970_v52, %v6290_v62  ;;  %v2004_v9 = vsel %vm1974_vm10, %v1971_v7, %v6291_v29 }
 0x1f1   : > { %v6299_v4 = vpop.permute.xlu0 %6298  ;;  %v1906_v25 = vsel %vm1875_vm7, %v1873_v45, %v6265_v21  ;;  %v1907_v55 = vsel %vm1875_vm7, %v1874_v38, %v6266_v3  ;;  %vm3547_vm7 = vcmask 1047559  }
 0x1f2   : > { %v6274_v23 = vpop.permute.xlu1 %6273  ;;  %v6301_v5 = vunpack.i.h.bf16 %v6299_v4  ;;  %v6300_v0 = vunpack.i.l.bf16 %v6299_v4 }
 0x1f3   : > { %v6276_v26 = vunpack.i.h.bf16 %v6274_v23  ;;  %v6275_v50 = vunpack.i.l.bf16 %v6274_v23 }
 0x1f4   : > { %v5492_v13 = vpop.f32.mrf.mxu0  ;;  %v2036_v32 = vsel %vm2007_vm11, %v2003_v12, %v6300_v0  ;;  %v2037_v18 = vsel %vm2007_vm11, %v2004_v9, %v6301_v5 }
 0x1f5   : > { %v6309_v56 = vpop.permute.xlu0 %6308  ;;  %v7991_v37 = vadd.f32 %v5492_v13, %v7983_v10  ;;  %v1939_v51 = vsel %vm1908_vm8, %v1906_v25, %v6275_v50  ;;  %v1940_v11 = vsel %vm1908_vm8, %v1907_v55, %v6276_v26 }
 0x1f6   : > { %v6311_v63 = vunpack.i.h.bf16 %v6309_v56  ;;  %v6310_v59 = vunpack.i.l.bf16 %v6309_v56  ;;  %v6284_v61 = vpop.permute.xlu1 %6283  ;;  %v2203_v48 = vpop.f32.mrf.mxu0 }
 0x1f7   : > { %v5191_v30 = vmul.f32 -1.442695, %v7991_v37  ;;  %v8000_v20 = vadd.f32 %v7983_v10, %v2203_v48  ;;  %v6286_v54 = vunpack.i.h.bf16 %v6284_v61  ;;  %v6285_v27 = vunpack.i.l.bf16 %v6284_v61 }
 0x1f8   : > { %v2069_v41 = vsel %vm2040_vm12, %v2036_v32, %v6310_v59  ;;  %v2070_v40 = vsel %vm2040_vm12, %v2037_v18, %v6311_v63  ;;  %v5493_v14 = vpop.f32.mrf.mxu0  ;;  %v2590_v48 = vlaneseq }
 0x1f9   : > { %v2087_v33 = vpack.c.bf16 %v2070_v40, %v2069_v41  ;;  %6586 = vpow2.f32 %v5191_v30  ;;  %v5189_v58 = vmul.f32 -1.442695, %v8000_v20  ;;  %v8006_v2 = vadd.f32 %v5493_v14, %v7983_v10 }
 0x1fa   : > { %v6294_v46 = vpop.permute.xlu1 %6293  ;;  %v2206_v53 = vpop.f32.mrf.mxu0  ;;  %v1972_v16 = vsel %vm1941_vm9, %v1939_v51, %v6285_v27  ;;  %v1973_v60 = vsel %vm1941_vm9, %v1940_v11, %v6286_v54  ;;  %v6765_v41 = vmov 1983009808   ;;  %v2591_v35 = vshrl.u32 %v2590_v48, 7 }
 0x1fb   : > { %5518 = vmatprep.mubr.msk.bf16.mxu0 %vm2116_vm13, %v2087_v33  ;;  %6588 = vpow2.f32 %v5189_v58  ;;  %v5192_v22 = vmul.f32 -1.442695, %v8006_v2  ;;  %v8016_v31 = vadd.f32 %v7983_v10, %v2206_v53  ;;  %v6296_v8 = vunpack.i.h.bf16 %v6294_v46 }
 0x1fc   : > { %v6295_v44 = vunpack.i.l.bf16 %v6294_v46  ;;  %v2588_v40 = vunpack.c.l.s4 %v6765_v41  ;;  %v8059_v25 = vsub.s32 0, %v2591_v35  ;;  %vm3856_vm9 = vcmask 261120  }
 0x1fd   : > { %6590 = vpow2.f32 %v5192_v22  ;;  %v5190_v1 = vmul.f32 -1.442695, %v8016_v31  ;;  %v2006_v28 = vsel %vm1974_vm10, %v1973_v60, %v6296_v8 }
 0x1fe   : > { %v6304_v6 = vpop.permute.xlu1 %6303  ;;  %v2005_v42 = vsel %vm1974_vm10, %v1972_v16, %v6295_v44  ;;  %v2589_v46 = vunpack.c.0.s8 %v2588_v40  ;;  %vm3865_vm10 = vcmask 523264  }
 0x1ff   : > { %6592 = vpow2.f32 %v5190_v1  ;;  %v6306_v49 = vunpack.i.h.bf16 %v6304_v6  ;;  %v6305_v43 = vunpack.i.l.bf16 %v6304_v6 }
 0x200   : > { %v8054_v24 = vsub.s32 %v2589_v46, %v2591_v35 }
 0x201   : > { %v2038_v29 = vsel %vm2007_vm11, %v2005_v42, %v6305_v43  ;;  %v2039_v23 = vsel %vm2007_vm11, %v2006_v28, %v6306_v49  ;;  %vm3874_vm11 = vcmask 785408  }
 0x202   : > { %v6314_v17 = vpop.permute.xlu1 %6313 }
 0x203   : > { %v6316_v62 = vunpack.i.h.bf16 %v6314_v17  ;;  %v6315_v4 = vunpack.i.l.bf16 %v6314_v17 }
 0x205   : > { %v2071_v39 = vsel %vm2040_vm12, %v2038_v29, %v6315_v4  ;;  %v2072_v5 = vsel %vm2040_vm12, %v2039_v23, %v6316_v62 }
 0x206   : > { %v2088_v0 = vpack.c.bf16 %v2072_v5, %v2071_v39  ;;  %v6587_v19 = vpop.eup %6586 }
 0x207   : > { %v2428_v52 = vadd.f32 1.0, %v6587_v19 }
 0x208   : > { %5519 = vmatmul.mubr.msk.bf16.gmra.mxu0 %vm2116_vm13, %v2088_v0  ;;  %v6589_v7 = vpop.eup %6588 }
 0x209   : > { %6594 = vrcp.f32 %v2428_v52  ;;  %v2426_v12 = vadd.f32 1.0, %v6589_v7 }
 0x20a   : > { %v6591_v13 = vpop.eup %6590 }
 0x20b   : > { %6596 = vrcp.f32 %v2426_v12  ;;  %v2429_v56 = vadd.f32 1.0, %v6591_v13 }
 0x20c   : > { %v6593_v9 = vpop.eup %6592  ;;  %v5496_v63 = vpop.f32.mrf.mxu0 }
 0x20d   : > { %6598 = vrcp.f32 %v2429_v56  ;;  %v2427_v59 = vadd.f32 1.0, %v6593_v9  ;;  %v8037_v61 = vadd.f32 %v5496_v63, %v7983_v10 }
 0x20e   : > { %v2219_v34 = vpop.f32.mrf.mxu0 }
 0x20f   : > { %6600 = vrcp.f32 %v2427_v59  ;;  %v5195_v32 = vmul.f32 -1.442695, %v8037_v61  ;;  %v8041_v18 = vadd.f32 %v7983_v10, %v2219_v34 }
 0x210   : > { %v5497_v30 = vpop.f32.mrf.mxu0 }
 0x211   : > { %6602 = vpow2.f32 %v5195_v32  ;;  %v5193_v15 = vmul.f32 -1.442695, %v8041_v18  ;;  %v8045_v57 = vadd.f32 %v5497_v30, %v7983_v10 }
 0x212   : > { %v2222_v33 = vpop.f32.mrf.mxu0 }
 0x213   : > { %6604 = vpow2.f32 %v5193_v15  ;;  %v5196_v14 = vmul.f32 -1.442695, %v8045_v57  ;;  %v8049_v58 = vadd.f32 %v7983_v10, %v2222_v33 }
 0x215   : > { %6606 = vpow2.f32 %v5196_v14  ;;  %v5194_v47 = vmul.f32 -1.442695, %v8049_v58 }
 0x216   : > { %v6595_v21 = vpop.eup %6594 }
 0x217   : > { %6608 = vpow2.f32 %v5194_v47  ;;  %v2524_v3 = vmul.f32 %v6595_v21, %v7991_v37 }
 0x218   : > { %v6597_v53 = vpop.eup %6596 }
 0x219   : > { %v2522_v22 = vmul.f32 %v6597_v53, %v8000_v20 }
 0x21a   : > { %v6599_v45 = vpop.eup %6598 }
 0x21b   : > { %v2554_v26 = vmax.f32 %v2522_v22, %v2524_v3  ;;  %v2525_v1 = vmul.f32 %v6599_v45, %v8006_v2 }
 0x21c   : > { %v6601_v50 = vpop.eup %6600 }
 0x21d   : > { %v2586_v54 = vcombine.high %v2554_v26, %v2554_v26  ;;  %v2593_v27 = vrot.slane %v2554_v26, %v8054_v24  ;;  %v2523_v6 = vmul.f32 %v6601_v50, %v8016_v31 }
 0x21e   : > { %v6603_v38 = vpop.eup %6602 }
 0x21f   : > { %v2600_v37 = vrot.slane %v2586_v54, %v8054_v24  ;;  %v2601_v8 = vcombine.high %v2593_v27, %v2593_v27  ;;  %v5221_v20 = vrot.slane %v2593_v27, 9  ;;  %v2555_v44 = vmax.f32 %v2523_v6, %v2525_v1 }
 0x220   : > { %v6605_v55 = vpop.eup %6604  ;;  %v2432_v49 = vadd.f32 1.0, %v6603_v38 }
 0x221   : > { %v2602_v43 = vcombine.high %v2600_v37, %v2600_v37  ;;  %v5222_v51 = vrot.slane %v2601_v8, 9  ;;  %v5223_v11 = vrot.slane %v2600_v37, 9  ;;  %v3114_v2 = vmax.f32 %v2593_v27, %v5221_v20 }
 0x222   : > { %v6607_v31 = vpop.eup %6606  ;;  %v2603_v16 = vcombine.high %v2555_v44, %v2555_v44  ;;  %v2610_v60 = vrot.slane %v2555_v44, %v8054_v24  ;;  %6610 = vrcp.f32 %v2432_v49  ;;  %v2430_v17 = vadd.f32 1.0, %v6605_v55  ;;  %v9224_v49 = vld [vmem:[#allocation4_spill] sm:$0xff] }
 0x223   : > { %v5224_v42 = vrot.slane %v2602_v43, 9  ;;  %v3115_v28 = vmax.f32 %v2601_v8, %v5222_v51  ;;  %v3116_v62 = vmax.f32 %v2600_v37, %v5223_v11  ;;  %v3282_v4 = vrot.slane %v3114_v2, %v8059_v25 }
 0x224   : > { %v6609_v29 = vpop.eup %6608  ;;  %v2617_v23 = vrot.slane %v2603_v16, %v8054_v24  ;;  %v2618_v39 = vcombine.high %v2610_v60, %v2610_v60  ;;  %v5225_v5 = vrot.slane %v2610_v60, 9  ;;  %6612 = vrcp.f32 %v2430_v17  ;;  %v5500_v0 = vpop.f32.mrf.mxu0 }
 0x225   : > { %v3117_v19 = vmax.f32 %v2602_v43, %v5224_v42  ;;  %v3286_v52 = vrot.slane %v3115_v28, %v8059_v25  ;;  %v3290_v7 = vrot.slane %v3116_v62, %v8059_v25  ;;  %v2433_v12 = vadd.f32 1.0, %v6607_v31 }
 0x226   : > { %v2619_v13 = vcombine.high %v2617_v23, %v2617_v23  ;;  %v5226_v56 = vrot.slane %v2618_v39, 9  ;;  %v5227_v9 = vrot.slane %v2617_v23, 9  ;;  %v3118_v63 = vmax.f32 %v2610_v60, %v5225_v5  ;;  %v2235_v59 = vpop.f32.mrf.mxu0 }
 0x227   : > { %v3294_v34 = vrot.slane %v3117_v19, %v8059_v25  ;;  %v3536_v32 = vsel %vm3535_vm14, %v3286_v52, %v3282_v4  ;;  %6614 = vrcp.f32 %v2433_v12  ;;  %v2431_v48 = vadd.f32 1.0, %v6609_v29 }
 0x228   : > { %v3538_v30 = vsel %vm3537_vm15, %v3290_v7, %v3536_v32  ;;  %v5228_v41 = vrot.slane %v2619_v13, 9  ;;  %v3119_v40 = vmax.f32 %v2618_v39, %v5226_v56  ;;  %v3120_v15 = vmax.f32 %v2617_v23, %v5227_v9  ;;  %v5501_v33 = vpop.f32.mrf.mxu0 }
 0x229   : > { %v3298_v14 = vrot.slane %v3118_v63, %v8059_v25  ;;  %v3540_v46 = vsel %vm3539_vm3, %v3294_v34, %v3538_v30  ;;  %6616 = vrcp.f32 %v2431_v48  ;;  %v8073_v35 = vadd.f32 %v5500_v0, %v7983_v10 }
 0x22a   : > { %v3121_v47 = vmax.f32 %v2619_v13, %v5228_v41  ;;  %v3302_v21 = vrot.slane %v3119_v40, %v8059_v25  ;;  %v3306_v53 = vrot.slane %v3120_v15, %v8059_v25  ;;  %v8078_v3 = vadd.f32 %v7983_v10, %v2235_v59  ;;  %v2238_v22 = vpop.f32.mrf.mxu0 }
 0x22b   : > { %v3542_v45 = vsel %vm3541_vm4, %v3298_v14, %v3540_v46  ;;  %v5199_v26 = vmul.f32 -1.442695, %v8073_v35  ;;  %v8083_v50 = vadd.f32 %v5501_v33, %v7983_v10  ;;  %v8086_v54 = vadd.f32 %v7983_v10, %v2238_v22 }
 0x22c   : > { %v3310_v27 = vrot.slane %v3121_v47, %v8059_v25  ;;  %v3544_v1 = vsel %vm3543_vm5, %v3302_v21, %v3542_v45  ;;  %v5197_v6 = vmul.f32 -1.442695, %v8078_v3  ;;  %v9225_v43 = vrot.slane %v9224_v49, 1 }
 0x22d   : > { %6618 = vpow2.f32 %v5199_v26  ;;  %v5200_v38 = vmul.f32 -1.442695, %v8083_v50  ;;  %v5198_v37 = vmul.f32 -1.442695, %v8086_v54  ;;  %v3546_v8 = vsel %vm3545_vm6, %v3306_v53, %v3544_v1 }
 0x22e   : > { %6620 = vpow2.f32 %v5197_v6  ;;  %v3548_v20 = vsel %vm3547_vm7, %v3310_v27, %v3546_v8  ;;  %v9226_v51 = vrot.slane %v9213_v36, 1  ;;  %v9228_v52 = vrot.slane %v9213_v36, 2 }
 0x22f   : > { %v6611_v44 = vpop.eup %6610  ;;  %v3598_v55 = vrot.slane %v3548_v20, 7  ;;  %6622 = vpow2.f32 %v5200_v38 }
 0x230   : > { %v8100_v11 = vsel %vm867_vm1, %v9226_v51, %v9225_v43  ;;  %v2528_v31 = vmul.f32 %v6611_v44, %v8037_v61  ;;  %6624 = vpow2.f32 %v5198_v37 }
 0x231   : > { %v6613_v2 = vpop.eup %6612  ;;  %v8104_v16 = vsel %vm701_vm0, 0.0, %v3598_v55  ;;  %v3622_v60 = vsel %vm701_vm0, %v3598_v55, 0.0 }
 0x232   : > { %v2526_v17 = vmul.f32 %v6613_v2, %v8041_v18  ;;  %v3645_v42 = vrot.slane %v8104_v16, 1  ;;  %v3646_v28 = vrot.slane %v3622_v60, 1  ;;  %v3691_v62 = vrot.slane %v8104_v16, 2 }
 0x233   : > { %v3692_v4 = vrot.slane %v3622_v60, 2  ;;  %v9227_v18 = vrot.slane %v9224_v49, 2 }
 0x234   : > { %v6615_v29 = vpop.eup %6614  ;;  %v2556_v23 = vmax.f32 %v2526_v17, %v2528_v31  ;;  %v8111_v39 = vsel %vm867_vm1, %v3645_v42, %v3646_v28 }
 0x235   : > { %v6317_v61 = vpack.i.bf16 %v8111_v39, %v8100_v11  ;;  %v8121_v7 = vsel %vm1044_vm2, %v9228_v52, %v9227_v18  ;;  %v8124_v12 = vsel %vm1044_vm2, %v3691_v62, %v3692_v4  ;;  %v2529_v13 = vmul.f32 %v6615_v29, %v8045_v57 }
 0x236   : > { %v6617_v5 = vpop.eup %6616  ;;  %v2620_v0 = vcombine.high %v2556_v23, %v2556_v23  ;;  %v2627_v19 = vrot.slane %v2556_v23, %v8054_v24  ;;  %v6322_v32 = vpack.i.bf16 %v8124_v12, %v8121_v7 }
 0x237   : > { %v2527_v56 = vmul.f32 %v6617_v5, %v8049_v58  ;;  %6318 = vrot.lane.b32.xlu1 %v6317_v61, %s6766_s14 }
 0x238   : > { %v2634_v9 = vrot.slane %v2620_v0, %v8054_v24  ;;  %v2635_v63 = vcombine.high %v2627_v19, %v2627_v19  ;;  %v5229_v59 = vrot.slane %v2627_v19, 9 }
 0x239   : > { %v2557_v34 = vmax.f32 %v2527_v56, %v2529_v13 }
 0x23a   : > { %v6619_v48 = vpop.eup %6618  ;;  %v2636_v30 = vcombine.high %v2634_v9, %v2634_v9  ;;  %v5230_v41 = vrot.slane %v2635_v63, 9  ;;  %v5231_v40 = vrot.slane %v2634_v9, 9  ;;  %v3122_v15 = vmax.f32 %v2627_v19, %v5229_v59 }
 0x23b   : > { %v6621_v33 = vpop.eup %6620  ;;  %v2637_v57 = vcombine.high %v2557_v34, %v2557_v34  ;;  %v2644_v58 = vrot.slane %v2557_v34, %v8054_v24  ;;  %v2436_v14 = vadd.f32 1.0, %v6619_v48  ;;  %6323 = vrot.lane.b32.xlu1 %v6322_v32, %s6767_s15 }
 0x23c   : > { %v5232_v46 = vrot.slane %v2636_v30, 9  ;;  %v3123_v47 = vmax.f32 %v2635_v63, %v5230_v41  ;;  %v3124_v21 = vmax.f32 %v2634_v9, %v5231_v40  ;;  %v3314_v53 = vrot.slane %v3122_v15, %v8059_v25  ;;  %v6623_v22 = vpop.eup %6622 }
 0x23d   : > { %v2651_v45 = vrot.slane %v2637_v57, %v8054_v24  ;;  %v2652_v26 = vcombine.high %v2644_v58, %v2644_v58  ;;  %v5233_v27 = vrot.slane %v2644_v58, 9  ;;  %6626 = vrcp.f32 %v2436_v14  ;;  %v6625_v1 = vpop.eup %6624 }
 0x23e   : > { %v3125_v6 = vmax.f32 %v2636_v30, %v5232_v46  ;;  %v3318_v38 = vrot.slane %v3123_v47, %v8059_v25  ;;  %v3322_v37 = vrot.slane %v3124_v21, %v8059_v25  ;;  %v2434_v8 = vadd.f32 1.0, %v6621_v33 }
 0x23f   : > { %v2653_v20 = vcombine.high %v2651_v45, %v2651_v45  ;;  %v5234_v44 = vrot.slane %v2652_v26, 9  ;;  %v5235_v55 = vrot.slane %v2651_v45, 9  ;;  %v3126_v49 = vmax.f32 %v2644_v58, %v5233_v27 }
 0x240   : > { %v3326_v43 = vrot.slane %v3125_v6, %v8059_v25  ;;  %v3549_v51 = vsel %vm3535_vm14, %v3318_v38, %v3314_v53  ;;  %6628 = vrcp.f32 %v2434_v8  ;;  %v2437_v2 = vadd.f32 1.0, %v6623_v22 }
 0x241   : > { %v3550_v31 = vsel %vm3537_vm15, %v3322_v37, %v3549_v51  ;;  %v5236_v60 = vrot.slane %v2653_v20, 9  ;;  %v3127_v17 = vmax.f32 %v2652_v26, %v5234_v44  ;;  %v3128_v42 = vmax.f32 %v2651_v45, %v5235_v55 }
 0x242   : > { %v3330_v28 = vrot.slane %v3126_v49, %v8059_v25  ;;  %v3551_v62 = vsel %vm3539_vm3, %v3326_v43, %v3550_v31  ;;  %6630 = vrcp.f32 %v2437_v2  ;;  %v2435_v4 = vadd.f32 1.0, %v6625_v1 }
 0x243   : > { %v3129_v29 = vmax.f32 %v2653_v20, %v5236_v60  ;;  %v3334_v23 = vrot.slane %v3127_v17, %v8059_v25  ;;  %v3338_v61 = vrot.slane %v3128_v42, %v8059_v25 }
 0x244   : > { %v3552_v5 = vsel %vm3541_vm4, %v3330_v28, %v3551_v62  ;;  %6632 = vrcp.f32 %v2435_v4  ;;  %v5504_v0 = vpop.f32.mrf.mxu0 }
 0x245   : > { %v3342_v19 = vrot.slane %v3129_v29, %v8059_v25  ;;  %v3553_v18 = vsel %vm3543_vm5, %v3334_v23, %v3552_v5  ;;  %v8149_v52 = vadd.f32 %v5504_v0, %v7983_v10  ;;  %v6547_v23 = vld [vmem:[%s9161_s4 + $0x38] sm:$0xff]  }
 0x246   : > { %v2251_v13 = vpop.f32.mrf.mxu0  ;;  %v3554_v56 = vsel %vm3545_vm6, %v3338_v61, %v3553_v18 }
 0x247   : > { %v5203_v9 = vmul.f32 -1.442695, %v8149_v52  ;;  %v8154_v63 = vadd.f32 %v7983_v10, %v2251_v13  ;;  %v3555_v59 = vsel %vm3547_vm7, %v3342_v19, %v3554_v56 }
 0x248   : > { %v5505_v34 = vpop.f32.mrf.mxu0  ;;  %v3599_v32 = vrot.slane %v3555_v59, 7 }
 0x249   : > { %6634 = vpow2.f32 %v5203_v9  ;;  %v5201_v48 = vmul.f32 -1.442695, %v8154_v63  ;;  %v8159_v30 = vadd.f32 %v5505_v34, %v7983_v10 }
 0x24a   : > { %v6627_v41 = vpop.eup %6626  ;;  %v2254_v40 = vpop.f32.mrf.mxu0  ;;  %v8162_v15 = vsel %vm701_vm0, 0.0, %v3599_v32  ;;  %v8165_v33 = vsel %vm701_vm0, %v3599_v32, 0.0 }
 0x24b   : > { %6636 = vpow2.f32 %v5201_v48  ;;  %v5204_v57 = vmul.f32 -1.442695, %v8159_v30  ;;  %v8169_v58 = vadd.f32 %v7983_v10, %v2254_v40  ;;  %v6327_v14 = vpack.i.bf16 %v8162_v15, %v8104_v16 }
 0x24c   : > { %v3694_v46 = vrot.slane %v8162_v15, 2  ;;  %v3695_v47 = vrot.slane %v8165_v33, 2  ;;  %v2532_v22 = vmul.f32 %v6627_v41, %v8073_v35  ;;  %v6548_v41 = vld [vmem:[%s9161_s4 + $0x70] sm:$0xff]  }
 0x24d   : > { %v6629_v21 = vpop.eup %6628  ;;  %6638 = vpow2.f32 %v5204_v57  ;;  %v5202_v53 = vmul.f32 -1.442695, %v8169_v58  ;;  %6328 = vrot.lane.b32.xlu1 %v6327_v14, %s6768_s16 }
 0x24e   : > { %v2530_v45 = vmul.f32 %v6629_v21, %v8078_v3  ;;  %v8180_v26 = vsel %vm1044_vm2, %v3694_v46, %v3695_v47  ;;  %v6549_v47 = vld [vmem:[%s9161_s4 + $0x30] sm:$0xff]  }
 0x24f   : > { %v6631_v27 = vpop.eup %6630  ;;  %6640 = vpow2.f32 %v5202_v53  ;;  %v6332_v1 = vpack.i.bf16 %v8180_v26, %v8124_v12 }
 0x250   : > { %v2558_v6 = vmax.f32 %v2530_v45, %v2532_v22  ;;  %v2533_v3 = vmul.f32 %v6631_v27, %v8083_v50  ;;  %v6546_v50 = vld [vmem:[%s9161_s4 + $0x78] sm:$0xff]  }
 0x251   : > { %v6633_v38 = vpop.eup %6632  ;;  %6333 = vrot.lane.b32.xlu0 %v6332_v1, %s6766_s14  ;;  %5378 = vmatprep.subr.bf16.mxu1 %v6546_v50 }
 0x252   : > { %v2654_v37 = vcombine.high %v2558_v6, %v2558_v6  ;;  %v2661_v35 = vrot.slane %v2558_v6, %v8054_v24  ;;  %v2531_v8 = vmul.f32 %v6633_v38, %v8086_v54  ;;  %5379 = vmatpush3.bf16.msra.mxu1 %v6547_v23 }
 0x253   : > { %5380 = vmatprep.subr.bf16.mxu1 %v6548_v41 }
 0x254   : > { %v2668_v20 = vrot.slane %v2654_v37, %v8054_v24  ;;  %v2669_v44 = vcombine.high %v2661_v35, %v2661_v35  ;;  %v5237_v55 = vrot.slane %v2661_v35, 9  ;;  %v2559_v49 = vmax.f32 %v2531_v8, %v2533_v3  ;;  %v6550_v3 = vld [vmem:[%s9161_s4 + $0x68] sm:$0xff]  }
 0x256   : > { %v6635_v43 = vpop.eup %6634  ;;  %v2670_v51 = vcombine.high %v2668_v20, %v2668_v20  ;;  %v5238_v2 = vrot.slane %v2669_v44, 9  ;;  %v5239_v12 = vrot.slane %v2668_v20, 9  ;;  %v3130_v31 = vmax.f32 %v2661_v35, %v5237_v55  ;;  %5381 = vmatpush3.bf16.msra.mxu1 %v6549_v47 }
 0x257   : > { %v2671_v60 = vcombine.high %v2559_v49, %v2559_v49  ;;  %v2678_v17 = vrot.slane %v2559_v49, %v8054_v24  ;;  %v2440_v42 = vadd.f32 1.0, %v6635_v43  ;;  %5382 = vmatprep.subr.bf16.mxu1 %v6550_v3 }
 0x258   : > { %v6637_v28 = vpop.eup %6636  ;;  %v5240_v54 = vrot.slane %v2670_v51, 9  ;;  %v3131_v62 = vmax.f32 %v2669_v44, %v5238_v2  ;;  %v3132_v4 = vmax.f32 %v2668_v20, %v5239_v12  ;;  %v3346_v29 = vrot.slane %v3130_v31, %v8059_v25  ;;  %v6551_v20 = vld [vmem:[%s9161_s4 + $0x28] sm:$0xff]   ;;  %v6553_v31 = vld [vmem:[%s9161_s4 + $0x20] sm:$0xff]  }
 0x259   : > { %v2685_v61 = vrot.slane %v2671_v60, %v8054_v24  ;;  %v2686_v5 = vcombine.high %v2678_v17, %v2678_v17  ;;  %v5241_v0 = vrot.slane %v2678_v17, 9  ;;  %6642 = vrcp.f32 %v2440_v42 }
 0x25a   : > { %v6639_v19 = vpop.eup %6638  ;;  %v3133_v18 = vmax.f32 %v2670_v51, %v5240_v54  ;;  %v3350_v13 = vrot.slane %v3131_v62, %v8059_v25  ;;  %v3354_v56 = vrot.slane %v3132_v4, %v8059_v25  ;;  %v2438_v9 = vadd.f32 1.0, %v6637_v28  ;;  %5383 = vmatpush3.bf16.msra.mxu1 %v6551_v20  ;;  %v6552_v51 = vld [vmem:[%s9161_s4 + $0x60] sm:$0xff]  }
 0x25b   : > { %v2687_v59 = vcombine.high %v2685_v61, %v2685_v61  ;;  %v5242_v34 = vrot.slane %v2686_v5, 9  ;;  %v5243_v32 = vrot.slane %v2685_v61, 9  ;;  %v3134_v48 = vmax.f32 %v2678_v17, %v5241_v0  ;;  %5384 = vmatprep.subr.bf16.mxu1 %v6552_v51 }
 0x25c   : > { %v6641_v40 = vpop.eup %6640  ;;  %v3358_v57 = vrot.slane %v3133_v18, %v8059_v25  ;;  %v3556_v14 = vsel %vm3535_vm14, %v3350_v13, %v3346_v29  ;;  %6644 = vrcp.f32 %v2438_v9  ;;  %v2441_v46 = vadd.f32 1.0, %v6639_v19  ;;  %v6555_v13 = vld [vmem:[%s9161_s4 + $0x18] sm:$0xff]  }
 0x25d   : > { %v3557_v21 = vsel %vm3537_vm15, %v3354_v56, %v3556_v14  ;;  %v5244_v53 = vrot.slane %v2687_v59, 9  ;;  %v3135_v22 = vmax.f32 %v2686_v5, %v5242_v34  ;;  %v3136_v45 = vmax.f32 %v2685_v61, %v5243_v32 }
 0x25e   : > { %v3362_v27 = vrot.slane %v3134_v48, %v8059_v25  ;;  %v3558_v1 = vsel %vm3539_vm3, %v3358_v57, %v3557_v21  ;;  %6646 = vrcp.f32 %v2441_v46  ;;  %v2439_v6 = vadd.f32 1.0, %v6641_v40  ;;  %5385 = vmatpush3.bf16.msra.mxu1 %v6553_v31  ;;  %v6560_v31 = vld [vmem:[%s9161_s4 + $0x40] sm:$0xff]  }
 0x25f   : > { %v3137_v38 = vmax.f32 %v2687_v59, %v5244_v53  ;;  %v3366_v37 = vrot.slane %v3135_v22, %v8059_v25  ;;  %v3370_v35 = vrot.slane %v3136_v45, %v8059_v25  ;;  %v3648_v17 = vrot.slane %v8162_v15, 1  ;;  %v6557_v53 = vld [vmem:[%s9161_s4 + $0x10] sm:$0xff]  }
 0x260   : > { %v3559_v8 = vsel %vm3541_vm4, %v3362_v27, %v3558_v1  ;;  %6648 = vrcp.f32 %v2439_v6  ;;  %v3649_v42 = vrot.slane %v8165_v33, 1  ;;  %v6554_v33 = vld [vmem:[%s9161_s4 + $0x58] sm:$0xff]  }
 0x261   : > { %v3374_v44 = vrot.slane %v3137_v38, %v8059_v25  ;;  %v3560_v55 = vsel %vm3543_vm5, %v3366_v37, %v3559_v8  ;;  %5386 = vmatprep.subr.bf16.mxu1 %v6554_v33 }
 0x262   : > { %v3561_v49 = vsel %vm3545_vm6, %v3370_v35, %v3560_v55  ;;  %v8256_v59 = vsel %vm867_vm1, %v3648_v17, %v3649_v42  ;;  %5387 = vmatpush3.bf16.msra.mxu1 %v6555_v13 }
 0x263   : > { %v3562_v43 = vsel %vm3547_vm7, %v3374_v44, %v3561_v49 }
 0x264   : > { %v3600_v2 = vrot.slane %v3562_v43, 7 }
 0x265   : > { %v5508_v12 = vpop.f32.mrf.mxu0 }
 0x266   : > { %v8231_v60 = vadd.f32 %v5508_v12, %v7983_v10  ;;  %v6643_v50 = vpop.eup %6642  ;;  %v8236_v28 = vsel %vm701_vm0, 0.0, %v3600_v2  ;;  %v3624_v62 = vsel %vm701_vm0, %v3600_v2, 0.0 }
 0x267   : > { %v2267_v54 = vpop.f32.mrf.mxu0  ;;  %v6337_v4 = vpack.i.bf16 %v8236_v28, %v8162_v15  ;;  %v3651_v61 = vrot.slane %v8236_v28, 1  ;;  %v3652_v5 = vrot.slane %v3624_v62, 1  ;;  %v3697_v19 = vrot.slane %v8236_v28, 2 }
 0x268   : > { %v5207_v29 = vmul.f32 -1.442695, %v8231_v60  ;;  %v8243_v23 = vadd.f32 %v7983_v10, %v2267_v54  ;;  %v3698_v18 = vrot.slane %v3624_v62, 2  ;;  %v2536_v32 = vmul.f32 %v6643_v50, %v8149_v52  ;;  %v6556_v52 = vld [vmem:[%s9161_s4 + $0x50] sm:$0xff]   ;;  %v6561_v54 = vld [vmem:[%s9161_s4] sm:$0xff]  }
 0x269   : > { %v5509_v0 = vpop.f32.mrf.mxu0  ;;  %v6645_v56 = vpop.eup %6644  ;;  %6338 = vrot.lane.b32.xlu0 %v6337_v4, %s6767_s15  ;;  %v8264_v41 = vsel %vm867_vm1, %v3651_v61, %v3652_v5  ;;  %5388 = vmatprep.subr.bf16.mxu1 %v6556_v52 }
 0x26a   : > { %6650 = vpow2.f32 %v5207_v29  ;;  %v5205_v9 = vmul.f32 -1.442695, %v8243_v23  ;;  %v8259_v34 = vadd.f32 %v5509_v0, %v7983_v10  ;;  %v2534_v48 = vmul.f32 %v6645_v56, %v8154_v63  ;;  %5389 = vmatpush3.bf16.msra.mxu1 %v6557_v53 }
 0x26b   : > { %v2270_v40 = vpop.f32.mrf.mxu0  ;;  %v8267_v57 = vsel %vm1044_vm2, %v3697_v19, %v3698_v18  ;;  %v6647_v14 = vpop.eup %6646  ;;  %v6347_v46 = vpack.i.bf16 %v8264_v41, %v8256_v59 }
 0x26c   : > { %6652 = vpow2.f32 %v5205_v9  ;;  %v5208_v47 = vmul.f32 -1.442695, %v8259_v34  ;;  %v2560_v63 = vmax.f32 %v2534_v48, %v2536_v32  ;;  %v8276_v21 = vadd.f32 %v7983_v10, %v2270_v40 }
 0x26d   : > { %v6649_v22 = vpop.eup %6648  ;;  %v2537_v45 = vmul.f32 %v6647_v14, %v8159_v30  ;;  %6348 = vrot.lane.b32.xlu1 %v6347_v46, %s6766_s14  ;;  %6343 = vrot.lane.b32.xlu0 %v6347_v46, %s6768_s16  ;;  %v3909_v27 = vpack.c.bf16 %v8267_v57, %v8180_v26  ;;  %v6352_v35 = vpack.i.bf16 %v8267_v57, %v8180_v26  ;;  %v6558_v30 = vld [vmem:[%s9161_s4 + $0x48] sm:$0xff]  }
 0x26e   : > { %6654 = vpow2.f32 %v5208_v47  ;;  %v2688_v1 = vcombine.high %v2560_v63, %v2560_v63  ;;  %v2695_v6 = vrot.slane %v2560_v63, %v8054_v24  ;;  %v2535_v38 = vmul.f32 %v6649_v22, %v8169_v58  ;;  %v6559_v58 = vld [vmem:[%s9161_s4 + $0x8] sm:$0xff]   ;;  %5390 = vmatprep.subr.bf16.mxu1 %v6558_v30 }
 0x26f   : > { %v5206_v37 = vmul.f32 -1.442695, %v8276_v21  ;;  %5391 = vmatpush3.bf16.msra.mxu1 %v6559_v58  ;;  %v6564_v26 = vld [vmem:[%s9163_s6 + $0x88] sm:$0xff]  }
 0x270   : > { %v2702_v3 = vrot.slane %v2688_v1, %v8054_v24  ;;  %v2703_v8 = vcombine.high %v2695_v6, %v2695_v6  ;;  %v5245_v20 = vrot.slane %v2695_v6, 9  ;;  %v2561_v44 = vmax.f32 %v2535_v38, %v2537_v45  ;;  %5392 = vmatprep.subr.bf16.mxu1 %v6560_v31 }
 0x271   : > { %6656 = vpow2.f32 %v5206_v37  ;;  %6353 = vrot.lane.b32.xlu1 %v6352_v35, %s6767_s15 }
 0x272   : > { %v2704_v55 = vcombine.high %v2702_v3, %v2702_v3  ;;  %v5246_v49 = vrot.slane %v2703_v8, 9  ;;  %v5247_v43 = vrot.slane %v2702_v3, 9  ;;  %v3138_v51 = vmax.f32 %v2695_v6, %v5245_v20 }
 0x273   : > { %v2705_v2 = vcombine.high %v2561_v44, %v2561_v44  ;;  %v2712_v12 = vrot.slane %v2561_v44, %v8054_v24  ;;  %5393 = vmatpush3.bf16.msra.mxu1 %v6561_v54 }
 0x274   : > { %v5248_v17 = vrot.slane %v2704_v55, 9  ;;  %v3139_v42 = vmax.f32 %v2703_v8, %v5246_v49  ;;  %v3140_v50 = vmax.f32 %v2702_v3, %v5247_v43  ;;  %v3378_v5 = vrot.slane %v3138_v51, %v8059_v25 }
 0x275   : > { %v2719_v62 = vrot.slane %v2705_v2, %v8054_v24  ;;  %v2720_v4 = vcombine.high %v2712_v12, %v2712_v12  ;;  %v5249_v29 = vrot.slane %v2712_v12, 9 }
 0x276   : > { %v3141_v61 = vmax.f32 %v2704_v55, %v5248_v17  ;;  %v3382_v0 = vrot.slane %v3139_v42, %v8059_v25  ;;  %v3386_v19 = vrot.slane %v3140_v50, %v8059_v25 }
 0x277   : > { %v6651_v33 = vpop.eup %6650  ;;  %v2721_v18 = vcombine.high %v2719_v62, %v2719_v62  ;;  %v5250_v13 = vrot.slane %v2720_v4, 9  ;;  %v5251_v56 = vrot.slane %v2719_v62, 9  ;;  %v3142_v9 = vmax.f32 %v2712_v12, %v5249_v29 }
 0x278   : > { %v3390_v48 = vrot.slane %v3141_v61, %v8059_v25  ;;  %v3563_v40 = vsel %vm3535_vm14, %v3382_v0, %v3378_v5  ;;  %v2444_v14 = vadd.f32 1.0, %v6651_v33 }
 0x279   : > { %v6653_v32 = vpop.eup %6652  ;;  %v3564_v46 = vsel %vm3537_vm15, %v3386_v19, %v3563_v40  ;;  %v5252_v47 = vrot.slane %v2721_v18, 9  ;;  %v3143_v52 = vmax.f32 %v2720_v4, %v5250_v13  ;;  %v3144_v63 = vmax.f32 %v2719_v62, %v5251_v56  ;;  %v8350_v19 = vld [vmem:[%s9160_s3] ss:$0 sm:$0xff] }
 0x27a   : > { %v3394_v22 = vrot.slane %v3142_v9, %v8059_v25  ;;  %v3565_v45 = vsel %vm3539_vm3, %v3390_v48, %v3564_v46  ;;  %6658 = vrcp.f32 %v2444_v14  ;;  %v2442_v1 = vadd.f32 1.0, %v6653_v32 }
 0x27b   : > { %v6655_v53 = vpop.eup %6654  ;;  %v3145_v6 = vmax.f32 %v2721_v18, %v5252_v47  ;;  %v3398_v38 = vrot.slane %v3143_v52, %v8059_v25  ;;  %v3402_v37 = vrot.slane %v3144_v63, %v8059_v25 }
 0x27c   : > { %v2445_v35 = vadd.f32 1.0, %v6655_v53  ;;  %v3566_v30 = vsel %vm3541_vm4, %v3394_v22, %v3565_v45  ;;  %6660 = vrcp.f32 %v2442_v1 }
 0x27d   : > { %v3406_v3 = vrot.slane %v3145_v6, %v8059_v25  ;;  %v3567_v8 = vsel %vm3543_vm5, %v3398_v38, %v3566_v30 }
 0x27e   : > { %v6657_v20 = vpop.eup %6656  ;;  %v3568_v44 = vsel %vm3545_vm6, %v3402_v37, %v3567_v8  ;;  %6662 = vrcp.f32 %v2445_v35 }
 0x27f   : > { %v2443_v58 = vadd.f32 1.0, %v6657_v20  ;;  %v3569_v55 = vsel %vm3547_vm7, %v3406_v3, %v3568_v44 }
 0x280   : > { %v3601_v49 = vrot.slane %v3569_v55, 7 }
 0x281   : > { %6664 = vrcp.f32 %v2443_v58 }
 0x282   : > { %v8323_v43 = vsel %vm701_vm0, 0.0, %v3601_v49  ;;  %v8326_v51 = vsel %vm701_vm0, %v3601_v49, 0.0 }
 0x283   : > { %v6357_v2 = vpack.i.bf16 %v8323_v43, %v8236_v28  ;;  %v3700_v12 = vrot.slane %v8323_v43, 2  ;;  %v3701_v31 = vrot.slane %v8326_v51, 2 }
 0x285   : > { %v5512_v17 = vpop.f32.mrf.mxu0  ;;  %6358 = vrot.lane.b32.xlu1 %v6357_v2, %s6768_s16  ;;  %v8337_v50 = vsel %vm1044_vm2, %v3700_v12, %v3701_v31 }
 0x286   : > { %v8334_v42 = vadd.f32 %v5512_v17, %v7983_v10  ;;  %v6362_v62 = vpack.i.bf16 %v8337_v50, %v8267_v57  ;;  %v6565_v57 = vld [vmem:[%s9163_s6 + $0x80] sm:$0xff]  }
 0x287   : > { %v2283_v54 = vpop.f32.mrf.mxu0  ;;  %v6659_v4 = vpop.eup %6658 }
 0x288   : > { %v5211_v29 = vmul.f32 -1.442695, %v8334_v42  ;;  %v8343_v33 = vadd.f32 %v7983_v10, %v2283_v54  ;;  %6363 = vrot.lane.b32.xlu0 %v6362_v62, %s6766_s14  ;;  %v2540_v13 = vmul.f32 %v6659_v4, %v8231_v60 }
 0x289   : > { %v5513_v61 = vpop.f32.mrf.mxu0  ;;  %v6661_v5 = vpop.eup %6660 }
 0x28a   : > { %6666 = vpow2.f32 %v5211_v29  ;;  %v5209_v0 = vmul.f32 -1.442695, %v8343_v33  ;;  %v8353_v18 = vadd.f32 %v8350_v19, %v5513_v61  ;;  %v2538_v10 = vmul.f32 %v6661_v5, %v8243_v23 }
 0x28b   : > { %v2286_v56 = vpop.f32.mrf.mxu0  ;;  %v6663_v48 = vpop.eup %6662 }
 0x28c   : > { %6668 = vpow2.f32 %v5209_v0  ;;  %v5212_v9 = vmul.f32 -1.442695, %v8353_v18  ;;  %v8359_v32 = vadd.f32 %v8350_v19, %v2286_v56  ;;  %v2562_v40 = vmax.f32 %v2538_v10, %v2540_v13 }
 0x28d   : > { %v2541_v60 = vmul.f32 %v6663_v48, %v8259_v34 }
 0x28e   : > { %6670 = vpow2.f32 %v5212_v9  ;;  %v5210_v14 = vmul.f32 -1.442695, %v8359_v32  ;;  %v6665_v46 = vpop.eup %6664  ;;  %v2722_v47 = vcombine.high %v2562_v40, %v2562_v40  ;;  %v2729_v52 = vrot.slane %v2562_v40, %v8054_v24 }
 0x28f   : > { %v2539_v23 = vmul.f32 %v6665_v46, %v8276_v21 }
 0x290   : > { %6672 = vpow2.f32 %v5210_v14  ;;  %v2736_v63 = vrot.slane %v2722_v47, %v8054_v24  ;;  %v2737_v53 = vcombine.high %v2729_v52, %v2729_v52  ;;  %v5253_v22 = vrot.slane %v2729_v52, 9 }
 0x291   : > { %v2563_v45 = vmax.f32 %v2539_v23, %v2541_v60 }
 0x292   : > { %v2738_v1 = vcombine.high %v2736_v63, %v2736_v63  ;;  %v5254_v6 = vrot.slane %v2737_v53, 9  ;;  %v5255_v38 = vrot.slane %v2736_v63, 9  ;;  %v3146_v37 = vmax.f32 %v2729_v52, %v5253_v22 }
 0x293   : > { %v2739_v35 = vcombine.high %v2563_v45, %v2563_v45  ;;  %v2746_v30 = vrot.slane %v2563_v45, %v8054_v24 }
 0x294   : > { %v5256_v3 = vrot.slane %v2738_v1, 9  ;;  %v3147_v8 = vmax.f32 %v2737_v53, %v5254_v6  ;;  %v3148_v20 = vmax.f32 %v2736_v63, %v5255_v38  ;;  %v3410_v49 = vrot.slane %v3146_v37, %v8059_v25 }
 0x295   : > { %v2753_v34 = vrot.slane %v2739_v35, %v8054_v24  ;;  %v2754_v44 = vcombine.high %v2746_v30, %v2746_v30  ;;  %v5257_v21 = vrot.slane %v2746_v30, 9  ;;  %v3654_v37 = vrot.slane %v8323_v43, 1 }
 0x296   : > { %v3149_v55 = vmax.f32 %v2738_v1, %v5256_v3  ;;  %v3414_v2 = vrot.slane %v3147_v8, %v8059_v25  ;;  %v3418_v12 = vrot.slane %v3148_v20, %v8059_v25  ;;  %v3655_v35 = vrot.slane %v8326_v51, 1 }
 0x297   : > { %v6667_v58 = vpop.eup %6666  ;;  %v2755_v31 = vcombine.high %v2753_v34, %v2753_v34  ;;  %v5258_v17 = vrot.slane %v2754_v44, 9  ;;  %v5259_v54 = vrot.slane %v2753_v34, 9  ;;  %v3150_v62 = vmax.f32 %v2746_v30, %v5257_v21 }
 0x298   : > { %v3422_v29 = vrot.slane %v3149_v55, %v8059_v25  ;;  %v3570_v61 = vsel %vm3535_vm14, %v3414_v2, %v3410_v49  ;;  %v2448_v5 = vadd.f32 1.0, %v6667_v58  ;;  %v8398_v51 = vsel %vm867_vm1, %v3654_v37, %v3655_v35 }
 0x299   : > { %v6669_v4 = vpop.eup %6668  ;;  %v3571_v0 = vsel %vm3537_vm15, %v3418_v12, %v3570_v61  ;;  %v5260_v13 = vrot.slane %v2755_v31, 9  ;;  %v3151_v10 = vmax.f32 %v2754_v44, %v5258_v17  ;;  %v3152_v56 = vmax.f32 %v2753_v34, %v5259_v54 }
 0x29a   : > { %v3426_v48 = vrot.slane %v3150_v62, %v8059_v25  ;;  %v3572_v40 = vsel %vm3539_vm3, %v3422_v29, %v3571_v0  ;;  %6674 = vrcp.f32 %v2448_v5  ;;  %v2446_v14 = vadd.f32 1.0, %v6669_v4 }
 0x29b   : > { %v6671_v9 = vpop.eup %6670  ;;  %v3153_v46 = vmax.f32 %v2755_v31, %v5260_v13  ;;  %v3430_v47 = vrot.slane %v3151_v10, %v8059_v25  ;;  %v3434_v52 = vrot.slane %v3152_v56, %v8059_v25 }
 0x29c   : > { %v2449_v60 = vadd.f32 1.0, %v6671_v9  ;;  %v3573_v63 = vsel %vm3541_vm4, %v3426_v48, %v3572_v40  ;;  %6676 = vrcp.f32 %v2446_v14 }
 0x29d   : > { %v6673_v23 = vpop.eup %6672  ;;  %v3438_v53 = vrot.slane %v3153_v46, %v8059_v25  ;;  %v3574_v22 = vsel %vm3543_vm5, %v3430_v47, %v3573_v63 }
 0x29e   : > { %6678 = vrcp.f32 %v2449_v60  ;;  %v2447_v45 = vadd.f32 1.0, %v6673_v23  ;;  %v3575_v1 = vsel %vm3545_vm6, %v3434_v52, %v3574_v22 }
 0x29f   : > { %v3576_v6 = vsel %vm3547_vm7, %v3438_v53, %v3575_v1 }
 0x2a0   : > { %6680 = vrcp.f32 %v2447_v45  ;;  %v3602_v38 = vrot.slane %v3576_v6, 7 }
 0x2a2   : > { %v8386_v30 = vsel %vm701_vm0, 0.0, %v3602_v38  ;;  %v3626_v3 = vsel %vm701_vm0, %v3602_v38, 0.0 }
 0x2a3   : > { %v6367_v8 = vpack.i.bf16 %v8386_v30, %v8323_v43  ;;  %v3657_v20 = vrot.slane %v8386_v30, 1  ;;  %v3658_v34 = vrot.slane %v3626_v3, 1  ;;  %v3703_v44 = vrot.slane %v8386_v30, 2 }
 0x2a4   : > { %v3704_v58 = vrot.slane %v3626_v3, 2 }
 0x2a5   : > { %v5516_v21 = vpop.f32.mrf.mxu0  ;;  %6368 = vrot.lane.b32.xlu0 %v6367_v8, %s6767_s15  ;;  %v8401_v49 = vsel %vm867_vm1, %v3657_v20, %v3658_v34 }
 0x2a6   : > { %v8395_v55 = vadd.f32 %v8350_v19, %v5516_v21  ;;  %v6377_v12 = vpack.i.bf16 %v8401_v49, %v8398_v51  ;;  %v8406_v31 = vsel %vm1044_vm2, %v3703_v44, %v3704_v58 }
 0x2a7   : > { %v2299_v2 = vpop.f32.mrf.mxu0  ;;  %v6675_v17 = vpop.eup %6674  ;;  %v3912_v4 = vpack.c.bf16 %v8406_v31, %v8337_v50  ;;  %v6382_v48 = vpack.i.bf16 %v8406_v31, %v8337_v50  ;;  %v6567_v50 = vld [vmem:[%s9163_s6 + $0x38] sm:$0xff]  }
 0x2a8   : > { %v5215_v54 = vmul.f32 -1.442695, %v8395_v55  ;;  %v8410_v62 = vadd.f32 %v8350_v19, %v2299_v2  ;;  %6378 = vrot.lane.b32.xlu1 %v6377_v12, %s6766_s14  ;;  %v2544_v10 = vmul.f32 %v6675_v17, %v8334_v42 }
 0x2a9   : > { %v5517_v29 = vpop.f32.mrf.mxu0  ;;  %v6677_v61 = vpop.eup %6676  ;;  %6373 = vrot.lane.b32.xlu0 %v6377_v12, %s6768_s16 }
 0x2aa   : > { %6682 = vpow2.f32 %v5215_v54  ;;  %v5213_v5 = vmul.f32 -1.442695, %v8410_v62  ;;  %v8418_v0 = vadd.f32 %v8350_v19, %v5517_v29  ;;  %v2542_v56 = vmul.f32 %v6677_v61, %v8343_v33 }
 0x2ab   : > { %v6679_v13 = vpop.eup %6678  ;;  %v2302_v9 = vpop.f32.mrf.mxu0 }
 0x2ac   : > { %6684 = vpow2.f32 %v5213_v5  ;;  %v5216_v40 = vmul.f32 -1.442695, %v8418_v0  ;;  %v8426_v14 = vadd.f32 %v8350_v19, %v2302_v9  ;;  %v2564_v47 = vmax.f32 %v2542_v56, %v2544_v10  ;;  %6383 = vrot.lane.b32.xlu1 %v6382_v48, %s6767_s15 }
 0x2ad   : > { %v6681_v46 = vpop.eup %6680  ;;  %v2545_v52 = vmul.f32 %v6679_v13, %v8353_v18 }
 0x2ae   : > { %v2543_v42 = vmul.f32 %v6681_v46, %v8359_v32  ;;  %6686 = vpow2.f32 %v5216_v40  ;;  %v5214_v33 = vmul.f32 -1.442695, %v8426_v14  ;;  %v2756_v60 = vcombine.high %v2564_v47, %v2564_v47 }
 0x2af   : > { %v2763_v23 = vrot.slane %v2564_v47, %v8054_v24 }
 0x2b0   : > { %v2565_v63 = vmax.f32 %v2543_v42, %v2545_v52  ;;  %6688 = vpow2.f32 %v5214_v33  ;;  %v2770_v53 = vrot.slane %v2756_v60, %v8054_v24 }
 0x2b1   : > { %v2771_v22 = vcombine.high %v2763_v23, %v2763_v23  ;;  %v5261_v45 = vrot.slane %v2763_v23, 9 }
 0x2b2   : > { %v2773_v1 = vcombine.high %v2565_v63, %v2565_v63  ;;  %v2780_v6 = vrot.slane %v2565_v63, %v8054_v24  ;;  %v2772_v38 = vcombine.high %v2770_v53, %v2770_v53  ;;  %v5263_v18 = vrot.slane %v2770_v53, 9 }
 0x2b3   : > { %v5262_v37 = vrot.slane %v2771_v22, 9  ;;  %v3154_v35 = vmax.f32 %v2763_v23, %v5261_v45 }
 0x2b4   : > { %v2787_v32 = vrot.slane %v2773_v1, %v8054_v24  ;;  %v2788_v3 = vcombine.high %v2780_v6, %v2780_v6  ;;  %v5265_v8 = vrot.slane %v2780_v6, 9  ;;  %v5264_v20 = vrot.slane %v2772_v38, 9 }
 0x2b5   : > { %v3155_v34 = vmax.f32 %v2771_v22, %v5262_v37  ;;  %v3156_v44 = vmax.f32 %v2770_v53, %v5263_v18  ;;  %v3442_v29 = vrot.slane %v3154_v35, %v8059_v25 }
 0x2b6   : > { %v2789_v21 = vcombine.high %v2787_v32, %v2787_v32  ;;  %v5266_v58 = vrot.slane %v2788_v3, 9  ;;  %v5267_v2 = vrot.slane %v2787_v32, 9  ;;  %v3158_v12 = vmax.f32 %v2780_v6, %v5265_v8 }
 0x2b7   : > { %v6683_v17 = vpop.eup %6682  ;;  %v3157_v54 = vmax.f32 %v2772_v38, %v5264_v20  ;;  %v3446_v61 = vrot.slane %v3155_v34, %v8059_v25  ;;  %v3450_v5 = vrot.slane %v3156_v44, %v8059_v25 }
 0x2b8   : > { %v5268_v13 = vrot.slane %v2789_v21, 9  ;;  %v3159_v10 = vmax.f32 %v2788_v3, %v5266_v58  ;;  %v3160_v56 = vmax.f32 %v2787_v32, %v5267_v2  ;;  %v3458_v9 = vrot.slane %v3158_v12, %v8059_v25 }
 0x2b9   : > { %v6685_v48 = vpop.eup %6684  ;;  %v3454_v40 = vrot.slane %v3157_v54, %v8059_v25  ;;  %v3577_v46 = vsel %vm3535_vm14, %v3446_v61, %v3442_v29  ;;  %v2452_v47 = vadd.f32 1.0, %v6683_v17 }
 0x2ba   : > { %v3578_v52 = vsel %vm3537_vm15, %v3450_v5, %v3577_v46  ;;  %v3161_v42 = vmax.f32 %v2789_v21, %v5268_v13  ;;  %v3462_v33 = vrot.slane %v3159_v10, %v8059_v25  ;;  %v3466_v60 = vrot.slane %v3160_v56, %v8059_v25  ;;  %v6319_v10 = vpop.permute.xlu1 %6318 }
 0x2bb   : > { %v6687_v23 = vpop.eup %6686  ;;  %v3579_v63 = vsel %vm3539_vm3, %v3454_v40, %v3578_v52  ;;  %6690 = vrcp.f32 %v2452_v47  ;;  %v2450_v53 = vadd.f32 1.0, %v6685_v48 }
 0x2bc   : > { %v3470_v22 = vrot.slane %v3161_v42, %v8059_v25  ;;  %v3580_v45 = vsel %vm3541_vm4, %v3458_v9, %v3579_v63  ;;  %v2453_v1 = vadd.f32 1.0, %v6687_v23 }
 0x2bd   : > { %v6689_v6 = vpop.eup %6688  ;;  %v3581_v38 = vsel %vm3543_vm5, %v3462_v33, %v3580_v45  ;;  %6692 = vrcp.f32 %v2450_v53  ;;  %v6320_v53 = vunpack.i.l.bf16 %v6319_v10 }
 0x2be   : > { %6694 = vrcp.f32 %v2453_v1  ;;  %v2451_v37 = vadd.f32 1.0, %v6689_v6  ;;  %v3582_v18 = vsel %vm3545_vm6, %v3466_v60, %v3581_v38 }
 0x2bf   : > { %v3583_v35 = vsel %vm3547_vm7, %v3470_v22, %v3582_v18  ;;  %v6324_v18 = vpop.permute.xlu1 %6323 }
 0x2c0   : > { %6696 = vrcp.f32 %v2451_v37  ;;  %v3603_v32 = vrot.slane %v3583_v35, 7 }
 0x2c2   : > { %v8452_v3 = vsel %vm701_vm0, 0.0, %v3603_v32  ;;  %v8455_v8 = vsel %vm701_vm0, %v3603_v32, 0.0 }
 0x2c3   : > { %v6387_v20 = vpack.i.bf16 %v8452_v3, %v8386_v30  ;;  %v3706_v34 = vrot.slane %v8452_v3, 2  ;;  %v3707_v44 = vrot.slane %v8455_v8, 2 }
 0x2c5   : > { %6388 = vrot.lane.b32.xlu1 %v6387_v20, %s6768_s16  ;;  %v8463_v21 = vsel %vm1044_vm2, %v3706_v34, %v3707_v44 }
 0x2c6   : > { %v6392_v58 = vpack.i.bf16 %v8463_v21, %v8406_v31  ;;  %v6568_v31 = vld [vmem:[%s9163_s6 + $0x70] sm:$0xff]  }
 0x2c8   : > { %v6691_v2 = vpop.eup %6690  ;;  %6393 = vrot.lane.b32.xlu0 %v6392_v58, %s6766_s14  ;;  %v5520_v12 = vpop.f32.mrf.mxu0 }
 0x2c9   : > { %v8469_v17 = vadd.f32 %v8350_v19, %v5520_v12  ;;  %v2548_v5 = vmul.f32 %v6691_v2, %v8395_v55  ;;  %v6321_v55 = vunpack.i.h.bf16 %v6319_v10 }
 0x2ca   : > { %v6693_v54 = vpop.eup %6692  ;;  %v2315_v29 = vpop.f32.mrf.mxu0 }
 0x2cb   : > { %v6695_v61 = vpop.eup %6694  ;;  %v2546_v13 = vmul.f32 %v6693_v54, %v8410_v62  ;;  %v5219_v56 = vmul.f32 -1.442695, %v8469_v17  ;;  %v8475_v9 = vadd.f32 %v8350_v19, %v2315_v29 }
 0x2cc   : > { %v5521_v48 = vpop.f32.mrf.mxu0  ;;  %v2549_v42 = vmul.f32 %v6695_v61, %v8418_v0  ;;  %v6325_v61 = vunpack.i.l.bf16 %v6324_v18 }
 0x2cd   : > { %v6697_v40 = vpop.eup %6696  ;;  %v2566_v46 = vmax.f32 %v2546_v13, %v2548_v5  ;;  %6698 = vpow2.f32 %v5219_v56  ;;  %v5217_v47 = vmul.f32 -1.442695, %v8475_v9  ;;  %v8479_v52 = vadd.f32 %v8350_v19, %v5521_v48 }
 0x2ce   : > { %v2547_v62 = vmul.f32 %v6697_v40, %v8426_v14  ;;  %v2318_v33 = vpop.f32.mrf.mxu0  ;;  %v3858_v14 = vsel %vm3856_vm9, %v8104_v16, %v6321_v55 }
 0x2cf   : > { %v2790_v60 = vcombine.high %v2566_v46, %v2566_v46  ;;  %v2797_v23 = vrot.slane %v2566_v46, %v8054_v24  ;;  %6700 = vpow2.f32 %v5217_v47  ;;  %v5220_v63 = vmul.f32 -1.442695, %v8479_v52 }
 0x2d0   : > { %v2567_v22 = vmax.f32 %v2547_v62, %v2549_v42  ;;  %v8486_v45 = vadd.f32 %v8350_v19, %v2318_v33  ;;  %v6329_v33 = vpop.permute.xlu1 %6328 }
 0x2d1   : > { %v2804_v1 = vrot.slane %v2790_v60, %v8054_v24  ;;  %v2805_v0 = vcombine.high %v2797_v23, %v2797_v23  ;;  %v5269_v6 = vrot.slane %v2797_v23, 9  ;;  %6702 = vpow2.f32 %v5220_v63  ;;  %v6334_v60 = vpop.permute.xlu0 %6333 }
 0x2d2   : > { %v2807_v38 = vcombine.high %v2567_v22, %v2567_v22  ;;  %v2814_v37 = vrot.slane %v2567_v22, %v8054_v24  ;;  %v5218_v35 = vmul.f32 -1.442695, %v8486_v45  ;;  %v3857_v22 = vsel %vm3856_vm9, %v9213_v36, %v6320_v53 }
 0x2d3   : > { %v2806_v32 = vcombine.high %v2804_v1, %v2804_v1  ;;  %v5270_v20 = vrot.slane %v2805_v0, 9  ;;  %v5271_v34 = vrot.slane %v2804_v1, 9  ;;  %v3162_v44 = vmax.f32 %v2797_v23, %v5269_v6 }
 0x2d4   : > { %v2821_v19 = vrot.slane %v2807_v38, %v8054_v24  ;;  %v2822_v58 = vcombine.high %v2814_v37, %v2814_v37  ;;  %v5273_v2 = vrot.slane %v2814_v37, 9  ;;  %6704 = vpow2.f32 %v5218_v35 }
 0x2d5   : > { %v5272_v12 = vrot.slane %v2806_v32, 9  ;;  %v3163_v54 = vmax.f32 %v2805_v0, %v5270_v20  ;;  %v3164_v29 = vmax.f32 %v2804_v1, %v5271_v34  ;;  %v3474_v48 = vrot.slane %v3162_v44, %v8059_v25 }
 0x2d6   : > { %v2823_v16 = vcombine.high %v2821_v19, %v2821_v19  ;;  %v5274_v5 = vrot.slane %v2822_v58, 9  ;;  %v5275_v13 = vrot.slane %v2821_v19, 9  ;;  %v3166_v10 = vmax.f32 %v2814_v37, %v5273_v2 }
 0x2d7   : > { %v3165_v56 = vmax.f32 %v2806_v32, %v5272_v12  ;;  %v3478_v40 = vrot.slane %v3163_v54, %v8059_v25  ;;  %v3482_v46 = vrot.slane %v3164_v29, %v8059_v25  ;;  %v6326_v1 = vunpack.i.h.bf16 %v6324_v18 }
 0x2d8   : > { %v5276_v47 = vrot.slane %v2823_v16, 9  ;;  %v3167_v42 = vmax.f32 %v2822_v58, %v5274_v5  ;;  %v3168_v55 = vmax.f32 %v2821_v19, %v5275_v13  ;;  %v3490_v62 = vrot.slane %v3166_v10, %v8059_v25 }
 0x2d9   : > { %v3486_v23 = vrot.slane %v3165_v56, %v8059_v25  ;;  %v3584_v63 = vsel %vm3535_vm14, %v3478_v40, %v3474_v48  ;;  %v8507_v20 = vsel %vm3865_vm10, %v3857_v22, %v6325_v61  ;;  %v6330_v34 = vunpack.i.l.bf16 %v6329_v33 }
 0x2da   : > { %v6699_v0 = vpop.eup %6698  ;;  %v3585_v6 = vsel %vm3537_vm15, %v3482_v46, %v3584_v63  ;;  %v3169_v38 = vmax.f32 %v2823_v16, %v5276_v47  ;;  %v3494_v37 = vrot.slane %v3167_v42, %v8059_v25  ;;  %v3498_v35 = vrot.slane %v3168_v55, %v8059_v25 }
 0x2db   : > { %v3586_v32 = vsel %vm3539_vm3, %v3486_v23, %v3585_v6  ;;  %v2456_v44 = vadd.f32 1.0, %v6699_v0  ;;  %v6336_v18 = vunpack.i.h.bf16 %v6334_v60  ;;  %v6335_v2 = vunpack.i.l.bf16 %v6334_v60  ;;  %v6339_v12 = vpop.permute.xlu0 %6338  ;;  %v6562_v6 = vld [vmem:[%s9161_s4 + $0x88] sm:$0xff]  }
 0x2dc   : > { %v6701_v19 = vpop.eup %6700  ;;  %v3502_v58 = vrot.slane %v3169_v38, %v8059_v25  ;;  %v3587_v53 = vsel %vm3541_vm4, %v3490_v62, %v3586_v32  ;;  %v6341_v16 = vunpack.i.h.bf16 %v6339_v12  ;;  %v3867_v13 = vsel %vm3865_vm10, %v3858_v14, %v6326_v1  ;;  %5522 = vmatprep.subr.bf16.mxu1 %v6562_v6 }
 0x2dd   : > { %v3588_v54 = vsel %vm3543_vm5, %v3494_v37, %v3587_v53  ;;  %6706 = vrcp.f32 %v2456_v44  ;;  %v2454_v29 = vadd.f32 1.0, %v6701_v19  ;;  %v6331_v61 = vunpack.i.h.bf16 %v6329_v33 }
 0x2de   : > { %v6703_v5 = vpop.eup %6702  ;;  %v3589_v10 = vsel %vm3545_vm6, %v3498_v35, %v3588_v54  ;;  %v3660_v56 = vrot.slane %v8452_v3, 1  ;;  %v6340_v40 = vunpack.i.l.bf16 %v6339_v12  ;;  %v3884_v42 = vsel %vm3856_vm9, %v8256_v59, %v6336_v18 }
 0x2df   : > { %6708 = vrcp.f32 %v2454_v29  ;;  %v2457_v48 = vadd.f32 1.0, %v6703_v5  ;;  %v3590_v46 = vsel %vm3547_vm7, %v3502_v58, %v3589_v10  ;;  %v6344_v47 = vpop.permute.xlu0 %6343  ;;  %v3875_v55 = vsel %vm3874_vm11, %v8507_v20, %v6330_v34 }
 0x2e0   : > { %v3604_v62 = vrot.slane %v3590_v46, 7  ;;  %v3661_v14 = vrot.slane %v8455_v8, 1  ;;  %v6346_v60 = vunpack.i.h.bf16 %v6344_v47  ;;  %v3883_v23 = vsel %vm3856_vm9, %v8111_v39, %v6335_v2 }
 0x2e1   : > { %v6705_v33 = vpop.eup %6704  ;;  %6710 = vrcp.f32 %v2457_v48  ;;  %v3892_v63 = vsel %vm3865_vm10, %v3884_v42, %v6341_v16  ;;  %v6345_v1 = vunpack.i.l.bf16 %v6344_v47  ;;  %v3891_v8 = vsel %vm3865_vm10, %v3883_v23, %v6340_v40 }
 0x2e2   : > { %v2455_v22 = vadd.f32 1.0, %v6705_v33  ;;  %v8525_v0 = vsel %vm701_vm0, 0.0, %v3604_v62  ;;  %v3628_v59 = vsel %vm701_vm0, %v3604_v62, 0.0  ;;  %v3900_v38 = vsel %vm3874_vm11, %v3892_v63, %v6346_v60 }
 0x2e3   : > { %v3876_v37 = vsel %vm3874_vm11, %v3867_v13, %v6331_v61  ;;  %v6397_v39 = vpack.i.bf16 %v8525_v0, %v8452_v3  ;;  %v3899_v35 = vsel %vm3874_vm11, %v3891_v8, %v6345_v1  ;;  %v3663_v32 = vrot.slane %v8525_v0, 1 }
 0x2e4   : > { %6712 = vrcp.f32 %v2455_v22  ;;  %v3664_v34 = vrot.slane %v3628_v59, 1  ;;  %v3908_v44 = vpack.c.bf16 %v3900_v38, %v3899_v35  ;;  %v3709_v19 = vrot.slane %v8525_v0, 2 }
 0x2e5   : > { %6398 = vrot.lane.b32.xlu0 %v6397_v39, %s6767_s15  ;;  %v3907_v58 = vpack.c.bf16 %v3876_v37, %v3875_v55  ;;  %v8541_v53 = vsel %vm867_vm1, %v3660_v56, %v3661_v14  ;;  %v3710_v2 = vrot.slane %v3628_v59, 2 }
 0x2e6   : > { %v8544_v18 = vsel %vm867_vm1, %v3663_v32, %v3664_v34  ;;  %4077 = vmatprep.mubr.bf16.mxu1 %v3908_v44 }
 0x2e7   : > { %v6407_v12 = vpack.i.bf16 %v8544_v18, %v8541_v53  ;;  %4078 = vmatmul.mubr.bf16.vlgmr.msra.gmra.mxu1 %v3907_v58  ;;  %v8549_v54 = vsel %vm1044_vm2, %v3709_v19, %v3710_v2 }
 0x2e8   : > { %v3915_v29 = vpack.c.bf16 %v8549_v54, %v8463_v21  ;;  %5523 = vmatpush3.bf16.msra.mxu1 %v6562_v6  ;;  %v6412_v5 = vpack.i.bf16 %v8549_v54, %v8463_v21  ;;  %v6570_v21 = vld [vmem:[%s9163_s6 + $0x68] sm:$0xff]  }
 0x2e9   : > { %6408 = vrot.lane.b32.xlu1 %v6407_v12, %s6766_s14  ;;  %6403 = vrot.lane.b32.xlu0 %v6407_v12, %s6768_s16 }
 0x2ea   : > { %v6707_v16 = vpop.eup %6706 }
 0x2eb   : > { %v2552_v61 = vmul.f32 %v6707_v16, %v8469_v17 }
 0x2ec   : > { %v6709_v13 = vpop.eup %6708 }
 0x2ed   : > { %v2550_v10 = vmul.f32 %v6709_v13, %v8475_v9  ;;  %6413 = vrot.lane.b32.xlu1 %v6412_v5, %s6767_s15 }
 0x2ee   : > { %v6711_v56 = vpop.eup %6710 }
 0x2ef   : > { %v2568_v48 = vmax.f32 %v2550_v10, %v2552_v61  ;;  %v2553_v42 = vmul.f32 %v6711_v56, %v8479_v52 }
 0x2f1   : > { %v6713_v40 = vpop.eup %6712  ;;  %v2824_v46 = vcombine.high %v2568_v48, %v2568_v48  ;;  %v2831_v47 = vrot.slane %v2568_v48, %v8054_v24 }
 0x2f2   : > { %v2551_v55 = vmul.f32 %v6713_v40, %v8486_v45 }
 0x2f3   : > { %v2838_v62 = vrot.slane %v2824_v46, %v8054_v24  ;;  %v2839_v14 = vcombine.high %v2831_v47, %v2831_v47  ;;  %v5277_v33 = vrot.slane %v2831_v47, 9 }
 0x2f4   : > { %v2569_v60 = vmax.f32 %v2551_v55, %v2553_v42 }
 0x2f5   : > { %v2840_v17 = vcombine.high %v2838_v62, %v2838_v62  ;;  %v5278_v23 = vrot.slane %v2839_v14, 9  ;;  %v5279_v9 = vrot.slane %v2838_v62, 9  ;;  %v3170_v63 = vmax.f32 %v2831_v47, %v5277_v33 }
 0x2f6   : > { %v2841_v22 = vcombine.high %v2569_v60, %v2569_v60  ;;  %v2848_v1 = vrot.slane %v2569_v60, %v8054_v24 }
 0x2f7   : > { %v5280_v59 = vrot.slane %v2840_v17, 9  ;;  %v3171_v6 = vmax.f32 %v2839_v14, %v5278_v23  ;;  %v3172_v8 = vmax.f32 %v2838_v62, %v5279_v9  ;;  %v3506_v39 = vrot.slane %v3170_v63, %v8059_v25  ;;  %v6563_v62 = vld [vmem:[%s9161_s4 + $0x80] sm:$0xff]  }
 0x2f8   : > { %v2855_v38 = vrot.slane %v2841_v22, %v8054_v24  ;;  %v2856_v52 = vcombine.high %v2848_v1, %v2848_v1  ;;  %v5281_v37 = vrot.slane %v2848_v1, 9  ;;  %5524 = vmatprep.subr.bf16.mxu1 %v6563_v62 }
 0x2f9   : > { %v3173_v45 = vmax.f32 %v2840_v17, %v5280_v59  ;;  %v3510_v35 = vrot.slane %v3171_v6, %v8059_v25  ;;  %v3514_v32 = vrot.slane %v3172_v8, %v8059_v25  ;;  %5525 = vmatpush3.bf16.msra.mxu1 %v6563_v62 }
 0x2fa   : > { %v2857_v34 = vcombine.high %v2855_v38, %v2855_v38  ;;  %v5282_v44 = vrot.slane %v2856_v52, 9  ;;  %v5283_v19 = vrot.slane %v2855_v38, 9  ;;  %v3174_v58 = vmax.f32 %v2848_v1, %v5281_v37  ;;  %v6364_v37 = vpop.permute.xlu0 %6363  ;;  %5534 = vmatprep.subr.bf16.mxu1 %v6564_v26 }
 0x2fb   : > { %v3518_v2 = vrot.slane %v3173_v45, %v8059_v25  ;;  %v3591_v12 = vsel %vm3535_vm14, %v3510_v35, %v3506_v39 }
 0x2fc   : > { %v3592_v16 = vsel %vm3537_vm15, %v3514_v32, %v3591_v12  ;;  %v5284_v24 = vrot.slane %v2857_v34, 9  ;;  %v3175_v5 = vmax.f32 %v2856_v52, %v5282_v44  ;;  %v3176_v13 = vmax.f32 %v2855_v38, %v5283_v19 }
 0x2fd   : > { %v3522_v61 = vrot.slane %v3174_v58, %v8059_v25  ;;  %v3593_v10 = vsel %vm3539_vm3, %v3518_v2, %v3592_v16  ;;  %v6366_v19 = vunpack.i.h.bf16 %v6364_v37  ;;  %v6365_v58 = vunpack.i.l.bf16 %v6364_v37 }
 0x2fe   : > { %v3177_v56 = vmax.f32 %v2857_v34, %v5284_v24  ;;  %v3526_v48 = vrot.slane %v3175_v5, %v8059_v25  ;;  %v3530_v40 = vrot.slane %v3176_v13, %v8059_v25 }
 0x2ff   : > { %v3594_v46 = vsel %vm3541_vm4, %v3522_v61, %v3593_v10 }
 0x300   : > { %v3534_v47 = vrot.slane %v3177_v56, %v8059_v25  ;;  %v3595_v42 = vsel %vm3543_vm5, %v3526_v48, %v3594_v46  ;;  %v3886_v56 = vsel %vm3856_vm9, %v8398_v51, %v6366_v19  ;;  %v3885_v48 = vsel %vm3856_vm9, %v8264_v41, %v6365_v58 }
 0x301   : > { %v3596_v55 = vsel %vm3545_vm6, %v3530_v40, %v3595_v42 }
 0x302   : > { %v3597_v14 = vsel %vm3547_vm7, %v3534_v47, %v3596_v55 }
 0x303   : > { %v3605_v33 = vrot.slane %v3597_v14, 7 }
 0x305   : > { %v3621_v60 = vsel %vm701_vm0, 0.0, %v3605_v33  ;;  %v3629_v17 = vsel %vm701_vm0, %v3605_v33, 0.0 }
 0x306   : > { %v6417_v23 = vpack.i.bf16 %v9213_v36, %v3621_v60  ;;  %v6432_v25 = vpack.i.bf16 %v3621_v60, %v8525_v0  ;;  %v3773_v9 = vrot.slane %v3621_v60, 2  ;;  %v3774_v63 = vrot.slane %v3629_v17, 2  ;;  %v6349_v36 = vpop.permute.xlu1 %6348 }
 0x307   : > { %v3762_v22 = vrot.slane %v3621_v60, 1  ;;  %v3763_v1 = vrot.slane %v3629_v17, 1  ;;  %v6351_v45 = vunpack.i.h.bf16 %v6349_v36  ;;  %v6350_v39 = vunpack.i.l.bf16 %v6349_v36 }
 0x308   : > { %6418 = vrot.lane.b32.xlu0 %v6417_v23, %s6767_s15  ;;  %6433 = vrot.lane.b32.xlu1 %v6432_v25, %s6768_s16  ;;  %v8591_v59 = vsel %vm1044_vm2, %v3773_v9, %v3774_v63 }
 0x309   : > { %v6422_v6 = vpack.i.bf16 %v8591_v59, %v8549_v54  ;;  %v8596_v8 = vsel %vm867_vm1, %v3762_v22, %v3763_v1  ;;  %v3860_v5 = vsel %vm3856_vm9, %v8236_v28, %v6351_v45  ;;  %v6571_v54 = vld [vmem:[%s9163_s6 + $0x28] sm:$0xff]  }
 0x30a   : > { %v6427_v38 = vpack.i.bf16 %v8100_v11, %v8596_v8  ;;  %v6354_v52 = vpop.permute.xlu1 %6353  ;;  %v3859_v11 = vsel %vm3856_vm9, %v8162_v15, %v6350_v39 }
 0x30b   : > { %v6356_v32 = vunpack.i.h.bf16 %v6354_v52  ;;  %v6355_v34 = vunpack.i.l.bf16 %v6354_v52 }
 0x30c   : > { %6423 = vrot.lane.b32.xlu0 %v6422_v6, %s6766_s14 }
 0x30d   : > { %v3868_v13 = vsel %vm3865_vm10, %v3859_v11, %v6355_v34  ;;  %v3869_v61 = vsel %vm3865_vm10, %v3860_v5, %v6356_v32 }
 0x30e   : > { %v6359_v35 = vpop.permute.xlu1 %6358 }
 0x30f   : > { %v6361_v2 = vunpack.i.h.bf16 %v6359_v35  ;;  %v6360_v12 = vunpack.i.l.bf16 %v6359_v35 }
 0x310   : > { %6428 = vrot.lane.b32.xlu0 %v6427_v38, %s6768_s16 }
 0x311   : > { %v3877_v42 = vsel %vm3874_vm11, %v3868_v13, %v6360_v12  ;;  %v3878_v15 = vsel %vm3874_vm11, %v3869_v61, %v6361_v2 }
 0x312   : > { %v3910_v33 = vpack.c.bf16 %v3878_v15, %v3877_v42 }
 0x317   : > { %v6369_v44 = vpop.permute.xlu0 %6368 }
 0x318   : > { %v6371_v16 = vunpack.i.h.bf16 %v6369_v44  ;;  %v6370_v24 = vunpack.i.l.bf16 %v6369_v44 }
 0x31a   : > { %v3893_v47 = vsel %vm3865_vm10, %v3885_v48, %v6370_v24  ;;  %v3894_v28 = vsel %vm3865_vm10, %v3886_v56, %v6371_v16  ;;  %v6379_v51 = vpop.permute.xlu1 %6378 }
 0x31b   : > { %v6374_v10 = vpop.permute.xlu0 %6373  ;;  %v6381_v17 = vunpack.i.h.bf16 %v6379_v51  ;;  %v6380_v23 = vunpack.i.l.bf16 %v6379_v51 }
 0x31c   : > { %v6376_v40 = vunpack.i.h.bf16 %v6374_v10  ;;  %v6375_v46 = vunpack.i.l.bf16 %v6374_v10 }
 0x31d   : > { %v3862_v45 = vsel %vm3856_vm9, %v8386_v30, %v6381_v17  ;;  %v3861_v39 = vsel %vm3856_vm9, %v8323_v43, %v6380_v23 }
 0x31e   : > { %v3901_v55 = vsel %vm3874_vm11, %v3893_v47, %v6375_v46  ;;  %v3902_v62 = vsel %vm3874_vm11, %v3894_v28, %v6376_v40  ;;  %v6384_v41 = vpop.permute.xlu1 %6383 }
 0x31f   : > { %v3911_v14 = vpack.c.bf16 %v3902_v62, %v3901_v55  ;;  %v6386_v9 = vunpack.i.h.bf16 %v6384_v41  ;;  %v6385_v63 = vunpack.i.l.bf16 %v6384_v41 }
 0x321   : > { %4085 = vmatprep.mubr.bf16.mxu1 %v3911_v14  ;;  %v3870_v35 = vsel %vm3865_vm10, %v3861_v39, %v6385_v63  ;;  %v3871_v32 = vsel %vm3865_vm10, %v3862_v45, %v6386_v9  ;;  %v6575_v45 = vld [vmem:[%s9163_s6 + $0x18] sm:$0xff]  }
 0x322   : > { %4086 = vmatmul.mubr.bf16.gmra.mxu1 %v3910_v33 }
 0x337   : > { %v6389_v25 = vpop.permute.xlu1 %6388 }
 0x338   : > { %v6391_v36 = vunpack.i.h.bf16 %v6389_v25  ;;  %v6390_v38 = vunpack.i.l.bf16 %v6389_v25 }
 0x33a   : > { %v6394_v60 = vpop.permute.xlu0 %6393  ;;  %v3879_v16 = vsel %vm3874_vm11, %v3870_v35, %v6390_v38  ;;  %v3880_v43 = vsel %vm3874_vm11, %v3871_v32, %v6391_v36  ;;  %v3918_v38 = vpack.c.bf16 %v8121_v7, %v8591_v59  ;;  %v6573_v59 = vld [vmem:[%s9163_s6 + $0x20] sm:$0xff]  }
 0x33b   : > { %v6396_v1 = vunpack.i.h.bf16 %v6394_v60  ;;  %v6395_v6 = vunpack.i.l.bf16 %v6394_v60  ;;  %v3913_v13 = vpack.c.bf16 %v3880_v43, %v3879_v16 }
 0x33d   : > { %v3888_v44 = vsel %vm3856_vm9, %v8541_v53, %v6396_v1  ;;  %v3887_v19 = vsel %vm3856_vm9, %v8401_v49, %v6395_v6 }
 0x357   : > { %v6399_v22 = vpop.permute.xlu0 %6398 }
 0x358   : > { %v6401_v52 = vunpack.i.h.bf16 %v6399_v22  ;;  %v6400_v37 = vunpack.i.l.bf16 %v6399_v22 }
 0x35a   : > { %v3895_v12 = vsel %vm3865_vm10, %v3887_v19, %v6400_v37  ;;  %v3896_v30 = vsel %vm3865_vm10, %v3888_v44, %v6401_v52  ;;  %v6574_v52 = vld [vmem:[%s9163_s6 + $0x58] sm:$0xff]  }
 0x35b   : > { %v6404_v34 = vpop.permute.xlu0 %6403  ;;  %v6409_v53 = vpop.permute.xlu1 %6408 }
 0x35c   : > { %v6406_v58 = vunpack.i.h.bf16 %v6404_v34  ;;  %v6405_v2 = vunpack.i.l.bf16 %v6404_v34  ;;  %v6411_v56 = vunpack.i.h.bf16 %v6409_v53  ;;  %v6410_v48 = vunpack.i.l.bf16 %v6409_v53 }
 0x35e   : > { %v3903_v24 = vsel %vm3874_vm11, %v3895_v12, %v6405_v2  ;;  %v3904_v5 = vsel %vm3874_vm11, %v3896_v30, %v6406_v58  ;;  %v3864_v33 = vsel %vm3856_vm9, %v8525_v0, %v6411_v56  ;;  %v3863_v51 = vsel %vm3856_vm9, %v8452_v3, %v6410_v48 }
 0x35f   : > { %v3914_v11 = vpack.c.bf16 %v3904_v5, %v3903_v24  ;;  %v6414_v49 = vpop.permute.xlu1 %6413 }
 0x360   : > { %v6416_v46 = vunpack.i.h.bf16 %v6414_v49  ;;  %v6415_v47 = vunpack.i.l.bf16 %v6414_v49  ;;  %v5285_v49 = vld [vmem:[%s9162_s5] ss:$0 sm:$0xff] }
 0x361   : > { %4093 = vmatprep.mubr.bf16.mxu1 %v3914_v11 }
 0x362   : > { %4094 = vmatmul.mubr.bf16.gmra.mxu1 %v3913_v13  ;;  %v3872_v23 = vsel %vm3865_vm10, %v3863_v51, %v6415_v47  ;;  %v3873_v25 = vsel %vm3865_vm10, %v3864_v33, %v6416_v46  ;;  %v6576_v47 = vld [vmem:[%s9163_s6 + $0x50] sm:$0xff]  }
 0x37a   : > { %v8634_v61 = vpop.permute.xlu0 %6418  ;;  %v6434_v10 = vpop.permute.xlu1 %6433 }
 0x37b   : > { %v6436_v15 = vunpack.i.h.bf16 %v6434_v10  ;;  %v6435_v55 = vunpack.i.l.bf16 %v6434_v10  ;;  %v6421_v41 = vunpack.i.h.bf16 %v8634_v61  ;;  %v6420_v60 = vunpack.i.l.bf16 %v8634_v61 }
 0x37d   : > { %v3881_v0 = vsel %vm3874_vm11, %v3872_v23, %v6435_v55  ;;  %v3882_v63 = vsel %vm3874_vm11, %v3873_v25, %v6436_v15 }
 0x37e   : > { %v6424_v40 = vpop.permute.xlu0 %6423  ;;  %v3916_v36 = vpack.c.bf16 %v3882_v63, %v3881_v0 }
 0x37f   : > { %v6426_v28 = vunpack.i.h.bf16 %v6424_v40  ;;  %v6425_v42 = vunpack.i.l.bf16 %v6424_v40 }
 0x381   : > { %v3890_v62 = vsel %vm3856_vm9, %v8596_v8, %v6426_v28  ;;  %v3889_v14 = vsel %vm3856_vm9, %v8544_v18, %v6425_v42  ;;  %v6577_v28 = vld [vmem:[%s9163_s6 + $0x10] sm:$0xff]  }
 0x382   : > { %v8646_v17 = vpop.permute.xlu0 %6428  ;;  %v3897_v9 = vsel %vm3865_vm10, %v3889_v14, %v6420_v60  ;;  %v3898_v3 = vsel %vm3865_vm10, %v3890_v62, %v6421_v41 }
 0x383   : > { %v6431_v8 = vunpack.i.h.bf16 %v8646_v17  ;;  %v6430_v18 = vunpack.i.l.bf16 %v8646_v17 }
 0x385   : > { %v3905_v22 = vsel %vm3874_vm11, %v3897_v9, %v6430_v18  ;;  %v3906_v1 = vsel %vm3874_vm11, %v3898_v3, %v6431_v8 }
 0x386   : > { %v3917_v6 = vpack.c.bf16 %v3906_v1, %v3905_v22 }
 0x388   : > { %4101 = vmatprep.mubr.bf16.mxu1 %v3917_v6 }
 0x389   : > { %4102 = vmatmul.mubr.bf16.gmra.mxu1 %v3916_v36 }
 0x38a   : > { %5526 = vmatprep.mubr.msk.bf16.mxu1 %vm3856_vm9, %v3909_v27  ;;  %v6566_v27 = vld [vmem:[%s9163_s6 + $0x78] sm:$0xff]  }
 0x38b   : > { %5424 = vmatprep.subr.bf16.mxu0 %v6566_v27 }
 0x38c   : > { %5425 = vmatpush3.bf16.msra.mxu0 %v6567_v50 }
 0x38d   : > { %5426 = vmatprep.subr.bf16.mxu0 %v6568_v31 }
 0x391   : > { %5527 = vmatmul.mubr.msk.bf16.vlgmr.msra.gmra.mxu1 %vm3856_vm9, %v3912_v4  ;;  %v6569_v4 = vld [vmem:[%s9163_s6 + $0x30] sm:$0xff]  }
 0x392   : > { %5530 = vmatprep.mubr.msk.bf16.mxu1 %vm3856_vm9, %v3915_v29  ;;  %5535 = vmatpush3.bf16.msra.mxu1 %v6564_v26  ;;  %v6572_v29 = vld [vmem:[%s9163_s6 + $0x60] sm:$0xff]  }
 0x393   : > { %5536 = vmatprep.subr.bf16.mxu1 %v6565_v57  ;;  %5427 = vmatpush3.bf16.msra.mxu0 %v6569_v4 }
 0x394   : > { %5428 = vmatprep.subr.bf16.mxu0 %v6570_v21 }
 0x396   : > { %5537 = vmatpush3.bf16.msra.mxu1 %v6565_v57 }
 0x397   : > { %5429 = vmatpush3.bf16.msra.mxu0 %v6571_v54 }
 0x398   : > { %5430 = vmatprep.subr.bf16.mxu0 %v6572_v29 }
 0x399   : > { %5531 = vmatmul.mubr.msk.bf16.gmra.mxu1 %vm3856_vm9, %v3918_v38 }
 0x39b   : > { %5431 = vmatpush3.bf16.msra.mxu0 %v6573_v59 }
 0x39c   : > { %5432 = vmatprep.subr.bf16.mxu0 %v6574_v52 }
 0x39f   : > { %5433 = vmatpush3.bf16.msra.mxu0 %v6575_v45 }
 0x3a0   : > { %5434 = vmatprep.subr.bf16.mxu0 %v6576_v47 }
 0x3a3   : > { %5435 = vmatpush3.bf16.msra.mxu0 %v6577_v28 }
 0x3a7   : > { %v5394_v37 = vpop.f32.mrf.mxu1 }
 0x3a9   : > { %v5395_v39 = vpop.f32.mrf.mxu1 }
 0x3aa   : > { %v5396_v13 = vadd.f32 %v5395_v39, %v5394_v37 }
 0x3ab   : > { %v5397_v35 = vpop.f32.mrf.mxu1 }
 0x3ac   : > { %v4080_v46 = vadd.f32 %v5396_v13, %v5285_v49 }
 0x3ad   : > { %v5398_v32 = vpop.f32.mrf.mxu1 }
 0x3ae   : > { %v5399_v42 = vadd.f32 %v5398_v32, %v5397_v35 }
 0x3b0   : > { %v4083_v3 = vadd.f32 %v5399_v42, %v5285_v49 }
 0x3e2   : > { %v5400_v34 = vpop.f32.mrf.mxu1 }
 0x3e4   : > { %v5401_v44 = vpop.f32.mrf.mxu1 }
 0x3e5   : > { %v5402_v5 = vadd.f32 %v5401_v44, %v5400_v34 }
 0x3e6   : > { %v5403_v19 = vpop.f32.mrf.mxu1 }
 0x3e7   : > { %v4088_v56 = vadd.f32 %v5402_v5, %v5285_v49 }
 0x3e8   : > { %v5404_v58 = vpop.f32.mrf.mxu1 }
 0x3e9   : > { %v5405_v10 = vadd.f32 %v5404_v58, %v5403_v19 }
 0x3eb   : > { %v4091_v33 = vadd.f32 %v5405_v10, %v5285_v49 }
 0x422   : > { %v5406_v2 = vpop.f32.mrf.mxu1 }
 0x424   : > { %v5407_v12 = vpop.f32.mrf.mxu1 }
 0x425   : > { %v5408_v51 = vadd.f32 %v5407_v12, %v5406_v2 }
 0x426   : > { %v5409_v30 = vpop.f32.mrf.mxu1 }
 0x427   : > { %v4096_v27 = vadd.f32 %v5408_v51, %v5285_v49 }
 0x428   : > { %v5410_v16 = vpop.f32.mrf.mxu1 }
 0x429   : > { %v5411_v38 = vadd.f32 %v5410_v16, %v5409_v30 }
 0x42b   : > { %v4099_v30 = vadd.f32 %v5411_v38, %v5285_v49 }
 0x449   : > { %v5412_v43 = vpop.f32.mrf.mxu1 }
 0x44b   : > { %v5413_v24 = vpop.f32.mrf.mxu1 }
 0x44c   : > { %v5414_v15 = vadd.f32 %v5413_v24, %v5412_v43 }
 0x44d   : > { %v5415_v11 = vpop.f32.mrf.mxu1 }
 0x44e   : > { %v4104_v63 = vadd.f32 %v5414_v15, %v5285_v49 }
 0x44f   : > { %v5416_v53 = vpop.f32.mrf.mxu1 }
 0x450   : > { %v5417_v26 = vadd.f32 %v5416_v53, %v5415_v11 }
 0x451   : > { %v5528_v48 = vpop.f32.mrf.mxu1 }
 0x452   : > { %v8716_v40 = vadd.f32 %v5528_v48, %v4088_v56  ;;  %v4107_v24 = vadd.f32 %v5417_v26, %v5285_v49  ;;  %v6578_v49 = vld [vmem:[%s9163_s6 + $0x48] sm:$0xff]  }
 0x453   : > { %v4144_v55 = vpop.f32.mrf.mxu1  ;;  %v6579_v48 = vld [vmem:[%s9163_s6 + $0x8] sm:$0xff]   ;;  %5436 = vmatprep.subr.bf16.mxu0 %v6578_v49 }
 0x454   : > { %v4222_v62 = vrot.slane %v8716_v40, 7  ;;  %v8725_v14 = vadd.f32 %v4144_v55, %v4080_v46  ;;  %5437 = vmatpush3.bf16.msra.mxu0 %v6579_v48 }
 0x455   : > { %v5529_v60 = vpop.f32.mrf.mxu1 }
 0x456   : > { %v4220_v23 = vrot.slane %v8725_v14, 7  ;;  %v8728_v25 = vadd.f32 %v5529_v60, %v4091_v33  ;;  %v8731_v18 = vsel %vm701_vm0, 0.0, %v4222_v62  ;;  %v8734_v9 = vsel %vm701_vm0, %v4222_v62, 0.0 }
 0x457   : > { %v4147_v0 = vpop.f32.mrf.mxu1  ;;  %v4314_v54 = vrot.slane %v8731_v18, 2  ;;  %v4315_v29 = vrot.slane %v8734_v9, 2 }
 0x458   : > { %v8737_v22 = vsel %vm701_vm0, 0.0, %v4220_v23  ;;  %v8740_v1 = vsel %vm701_vm0, %v4220_v23, 0.0  ;;  %v4223_v6 = vrot.slane %v8728_v25, 7  ;;  %v4938_v36 = vpack.c.bf16 %v8728_v25, %v8716_v40  ;;  %v9051_v40 = vld [vmem:[%s9164_s7] ss:$0 sm:$0xff] }
 0x459   : > { %v5532_v57 = vpop.f32.mrf.mxu1  ;;  %v8751_v4 = vadd.f32 %v4147_v0, %v4083_v3  ;;  %v4266_v59 = vrot.slane %v8737_v22, 1  ;;  %v4267_v52 = vrot.slane %v8740_v1, 1  ;;  %v4308_v16 = vrot.slane %v8737_v22, 2 }
 0x45a   : > { %v8746_v50 = vsel %vm701_vm0, 0.0, %v4223_v6  ;;  %v8749_v31 = vsel %vm701_vm0, %v4223_v6, 0.0  ;;  %v8753_v21 = vadd.f32 %v5532_v57, %v4104_v63  ;;  %v4309_v43 = vrot.slane %v8740_v1, 2 }
 0x45b   : > { %v4160_v37 = vpop.f32.mrf.mxu1  ;;  %v4317_v45 = vrot.slane %v8746_v50, 2  ;;  %v4318_v39 = vrot.slane %v8749_v31, 2  ;;  %v4221_v35 = vrot.slane %v8751_v4, 7  ;;  %v4937_v32 = vpack.c.bf16 %v8751_v4, %v8725_v14 }
 0x45c   : > { %v8764_v34 = vadd.f32 %v4160_v37, %v4096_v27  ;;  %v6437_v19 = vpack.i.bf16 %v8746_v50, %v8731_v18  ;;  %v4226_v12 = vrot.slane %v8753_v21, 7  ;;  %v8779_v11 = vsel %vm867_vm1, %v4266_v59, %v4267_v52 }
 0x45d   : > { %v5533_v44 = vpop.f32.mrf.mxu1  ;;  %v8769_v58 = vsel %vm701_vm0, 0.0, %v4221_v35  ;;  %v8772_v2 = vsel %vm701_vm0, %v4221_v35, 0.0  ;;  %v8784_v10 = vsel %vm1044_vm2, %v4314_v54, %v4315_v29  ;;  %v8787_v56 = vsel %vm1044_vm2, %v4317_v45, %v4318_v39 }
 0x45e   : > { %6438 = vrot.lane.b32.xlu1 %v6437_v19, %s6768_s16  ;;  %v4311_v13 = vrot.slane %v8769_v58, 2  ;;  %v4312_v53 = vrot.slane %v8772_v2, 2  ;;  %v4224_v46 = vrot.slane %v8764_v34, 7  ;;  %v8796_v47 = vadd.f32 %v5533_v44, %v4107_v24 }
 0x45f   : > { %v4163_v5 = vpop.f32.mrf.mxu1  ;;  %v6452_v42 = vpack.i.bf16 %v8731_v18, %v8769_v58  ;;  %v4269_v15 = vrot.slane %v8769_v58, 1  ;;  %v8804_v55 = vsel %vm701_vm0, 0.0, %v4226_v12  ;;  %v8807_v62 = vsel %vm701_vm0, %v4226_v12, 0.0  ;;  %v6580_v12 = vld [vmem:[%s9163_s6 + $0x40] sm:$0xff]  }
 0x460   : > { %v8798_v28 = vadd.f32 %v4163_v5, %v4099_v30  ;;  %v6442_v33 = vpack.i.bf16 %v8784_v10, %v8779_v11  ;;  %v8812_v51 = vsel %vm701_vm0, 0.0, %v4224_v46  ;;  %v4248_v60 = vsel %vm701_vm0, %v4224_v46, 0.0  ;;  %5438 = vmatprep.subr.bf16.mxu0 %v6580_v12 }
 0x461   : > { %v4227_v23 = vrot.slane %v8796_v47, 7  ;;  %v4940_v3 = vpack.c.bf16 %v8796_v47, %v8753_v21  ;;  %6453 = vrot.lane.b32.xlu0 %v6452_v42, %s6767_s15  ;;  %v4270_v0 = vrot.slane %v8772_v2, 1  ;;  %v4320_v63 = vrot.slane %v8812_v51, 2 }
 0x462   : > { %v4321_v1 = vrot.slane %v4248_v60, 2  ;;  %6443 = vrot.lane.b32.xlu1 %v6442_v33, %s6766_s14  ;;  %v4313_v6 = vsel %vm1044_vm2, %v4311_v13, %v4312_v53  ;;  %v4326_v38 = vrot.slane %v8804_v55, 2  ;;  %v4225_v26 = vrot.slane %v8798_v28, 7 }
 0x463   : > { %v4939_v57 = vpack.c.bf16 %v8798_v28, %v8764_v34  ;;  %v6462_v27 = vpack.i.bf16 %v8787_v56, %v8804_v55  ;;  %v4327_v54 = vrot.slane %v8807_v62, 2  ;;  %v8832_v59 = vsel %vm701_vm0, 0.0, %v4227_v23 }
 0x464   : > { %v4322_v29 = vsel %vm1044_vm2, %v4320_v63, %v4321_v1  ;;  %v4310_v52 = vsel %vm1044_vm2, %v4308_v16, %v4309_v43  ;;  %v8836_v37 = vsel %vm701_vm0, %v4227_v23, 0.0  ;;  %v8839_v45 = vsel %vm701_vm0, 0.0, %v4225_v26 }
 0x465   : > { %v4249_v39 = vsel %vm701_vm0, %v4225_v26, 0.0  ;;  %v4511_v35 = vpack.c.bf16 %v8784_v10, %v4313_v6  ;;  %6463 = vrot.lane.b32.xlu0 %v6462_v27, %s6767_s15  ;;  %v4272_v44 = vrot.slane %v8731_v18, 1  ;;  %v4323_v19 = vrot.slane %v8839_v45, 2 }
 0x466   : > { %v4324_v2 = vrot.slane %v4249_v39, 2  ;;  %v4273_v30 = vrot.slane %v8734_v9, 1  ;;  %v4387_v16 = vrot.slane %v8832_v59, 2  ;;  %v4514_v43 = vpack.c.bf16 %v4322_v29, %v8787_v56  ;;  %v6581_v9 = vld [vmem:[%s9163_s6] sm:$0xff]  }
 0x467   : > { %5538 = vmatprep.mubr.msk.bf16.mxu1 %vm3856_vm9, %v4511_v35  ;;  %v6447_v24 = vpack.i.bf16 %v8746_v50, %v4310_v52  ;;  %v4388_v5 = vrot.slane %v8836_v37, 2  ;;  %v6467_v13 = vpack.i.bf16 %v4313_v6, %v4310_v52  ;;  %v4328_v49 = vsel %vm1044_vm2, %v4326_v38, %v4327_v54  ;;  %5439 = vmatpush3.bf16.msra.mxu0 %v6581_v9 }
 0x468   : > { %v4325_v53 = vsel %vm1044_vm2, %v4323_v19, %v4324_v2  ;;  %5539 = vmatmul.mubr.msk.bf16.vlgmr.msra.gmra.mxu1 %vm3856_vm9, %v4514_v43  ;;  %v8863_v46 = vsel %vm867_vm1, %v4269_v15, %v4270_v0  ;;  %v6457_v42 = vpack.i.bf16 %v8769_v58, %v8737_v22  ;;  %v8870_v33 = vsel %vm867_vm1, %v4272_v44, %v4273_v30 }
 0x469   : > { %6448 = vrot.lane.b32.xlu1 %v6447_v24, %s6767_s15  ;;  %v4517_v48 = vpack.c.bf16 %v4328_v49, %v4325_v53  ;;  %6468 = vrot.lane.b32.xlu0 %v6467_v13, %s6766_s14  ;;  %v4278_v23 = vrot.slane %v8812_v51, 1  ;;  %v4279_v63 = vrot.slane %v4248_v60, 1  ;;  %v6472_v1 = vpack.i.bf16 %v8870_v33, %v8863_v46  ;;  %v8931_v13 = vld [vmem:[%s9167_s10 + $0x8] sm:$0xff]  }
 0x46a   : > { %v4389_v38 = vsel %vm1044_vm2, %v4387_v16, %v4388_v5  ;;  %v6487_v15 = vpack.i.bf16 %v4322_v29, %v8870_v33  ;;  %v6477_v26 = vpack.i.bf16 %v8863_v46, %v8787_v56  ;;  %v4275_v60 = vrot.slane %v8746_v50, 1  ;;  %5558 = vmatprep.subr.bf16.mxu0 %v8931_v13 }
 0x46b   : > { %5542 = vmatprep.mubr.msk.bf16.mxu1 %vm3856_vm9, %v4517_v48  ;;  %v4520_v0 = vpack.c.bf16 %v8121_v7, %v4389_v38  ;;  %v8883_v27 = vsel %vm867_vm1, %v4278_v23, %v4279_v63  ;;  %v4276_v54 = vrot.slane %v8749_v31, 1  ;;  %v6482_v7 = vpack.i.bf16 %v4313_v6, %v8812_v51 }
 0x46c   : > { %v6497_v52 = vpack.i.bf16 %v4328_v49, %v8883_v27  ;;  %v6502_v56 = vpack.i.bf16 %v8839_v45, %v8784_v10  ;;  %v4281_v19 = vrot.slane %v8839_v45, 1  ;;  %v4282_v31 = vrot.slane %v4249_v39, 1 }
 0x46d   : > { %6458 = vrot.lane.b32.xlu1 %v6457_v42, %s6768_s16  ;;  %6473 = vrot.lane.b32.xlu0 %v6472_v1, %s6768_s16  ;;  %v8897_v35 = vsel %vm867_vm1, %v4275_v60, %v4276_v54  ;;  %v4284_v6 = vrot.slane %v8804_v55, 1  ;;  %v4285_v2 = vrot.slane %v8807_v62, 1  ;;  %v6507_v12 = vpack.i.bf16 %v8832_v59, %v4322_v29 }
 0x46e   : > { %v6492_v44 = vpack.i.bf16 %v8883_v27, %v8897_v35  ;;  %v6522_v10 = vpack.i.bf16 %v8897_v35, %v4325_v53  ;;  %v8910_v30 = vsel %vm867_vm1, %v4281_v19, %v4282_v31  ;;  %v6512_v39 = vpack.i.bf16 %v8839_v45, %v8812_v51 }
 0x46f   : > { %v8916_v16 = vsel %vm867_vm1, %v4284_v6, %v4285_v2  ;;  %v4376_v43 = vrot.slane %v8832_v59, 1  ;;  %v4377_v62 = vrot.slane %v8836_v37, 1  ;;  %v6532_v24 = vpack.i.bf16 %v8910_v30, %v4389_v38 }
 0x470   : > { %5543 = vmatmul.mubr.msk.bf16.gmra.mxu1 %vm3856_vm9, %v4520_v0  ;;  %v6527_v29 = vpack.i.bf16 %v8916_v16, %v8910_v30  ;;  %v6537_v9 = vpack.i.bf16 %v4328_v49, %v4325_v53  ;;  %vm5081_vm0 = vcmask 228352  }
 0x471   : > { %6488 = vrot.lane.b32.xlu1 %v6487_v15, %s6766_s14  ;;  %6478 = vrot.lane.b32.xlu0 %v6477_v26, %s6766_s14  ;;  %v8926_v5 = vsel %vm867_vm1, %v4376_v43, %v4377_v62 }
 0x472   : > { %v6517_v37 = vpack.i.bf16 %v8804_v55, %v8926_v5 }
 0x475   : > { %6498 = vrot.lane.b32.xlu1 %v6497_v52, %s6766_s14  ;;  %6483 = vrot.lane.b32.xlu0 %v6482_v7, %s6767_s15 }
 0x479   : > { %6503 = vrot.lane.b32.xlu1 %v6502_v56, %s6767_s15  ;;  %6493 = vrot.lane.b32.xlu0 %v6492_v44, %s6768_s16 }
 0x47d   : > { %6508 = vrot.lane.b32.xlu1 %v6507_v12, %s6767_s15  ;;  %6523 = vrot.lane.b32.xlu0 %v6522_v10, %s6766_s14 }
 0x481   : > { %6513 = vrot.lane.b32.xlu1 %v6512_v39, %s6768_s16  ;;  %6528 = vrot.lane.b32.xlu0 %v6527_v29, %s6768_s16 }
 0x485   : > { %4299 = vrot.lane.b32.xlu1 %v8916_v16, %s6766_s14  ;;  %6533 = vrot.lane.b32.xlu0 %v6532_v24, %s6766_s14  ;;  %s9120_s14 = scalar_lea.vmem %s9169_s12, %s5357_s19 }
 0x489   : > { %6518 = vrot.lane.b32.xlu1 %v6517_v37, %s6768_s16  ;;  %6538 = vrot.lane.b32.xlu0 %v6537_v9, %s6767_s15  ;;  %v8966_v37 = vld [vmem:[%s9167_s10] sm:$0xff]  }
 0x48d   : > { %4365 = vrot.lane.b32.xlu0 %v8832_v59, %s6768_s16 }
 0x4d0   : > { %v8943_v48 = vpop.permute.xlu1 %6438 }
 0x4d3   : > { %v6454_v42 = vpop.permute.xlu0 %6453 }
 0x4d4   : > { %v6444_v23 = vpop.permute.xlu1 %6443  ;;  %v6456_v53 = vunpack.i.h.bf16 %v6454_v42  ;;  %v6455_v52 = vunpack.i.l.bf16 %v6454_v42 }
 0x4d5   : > { %v6445_v38 = vunpack.i.l.bf16 %v6444_v23  ;;  %v6446_v9 = vunpack.i.h.bf16 %v6444_v23 }
 0x4d7   : > { %v8945_v63 = vpop.permute.xlu0 %6463  ;;  %v4463_v7 = vsel %vm3856_vm9, %v8737_v22, %v6445_v38 }
 0x4db   : > { %v6449_v1 = vpop.permute.xlu1 %6448  ;;  %v6469_v15 = vpop.permute.xlu0 %6468 }
 0x4dc   : > { %v6450_v0 = vunpack.i.l.bf16 %v6449_v1  ;;  %v6471_v26 = vunpack.i.h.bf16 %v6469_v15  ;;  %v6470_v60 = vunpack.i.l.bf16 %v6469_v15 }
 0x4de   : > { %v4486_v49 = vsel %vm3856_vm9, %v8863_v46, %v6471_v26  ;;  %v4485_v54 = vsel %vm3856_vm9, %v8779_v11, %v6470_v60  ;;  %v4470_v31 = vsel %vm3865_vm10, %v4463_v7, %v6450_v0  ;;  %v6451_v60 = vunpack.i.h.bf16 %v6449_v1 }
 0x4df   : > { %v6459_v59 = vpop.permute.xlu1 %6458  ;;  %v6474_v19 = vpop.permute.xlu0 %6473  ;;  %v4493_v10 = vsel %vm3865_vm10, %v4485_v54, %v6455_v52  ;;  %v4494_v11 = vsel %vm3865_vm10, %v4486_v49, %v6456_v53  ;;  %v6441_v49 = vunpack.i.h.bf16 %v8943_v48 }
 0x4e0   : > { %v6461_v56 = vunpack.i.h.bf16 %v6459_v59  ;;  %v6460_v44 = vunpack.i.l.bf16 %v6459_v59  ;;  %v6476_v6 = vunpack.i.h.bf16 %v6474_v19  ;;  %v6475_v2 = vunpack.i.l.bf16 %v6474_v19 }
 0x4e1   : > { %v4487_v59 = vsel %vm3856_vm9, %v8870_v33, %v6446_v9 }
 0x4e2   : > { %v4477_v12 = vsel %vm3874_vm11, %v8507_v20, %v6460_v44  ;;  %v4478_v46 = vsel %vm3874_vm11, %v4470_v31, %v6461_v56  ;;  %v4501_v22 = vsel %vm3874_vm11, %v4493_v10, %v6475_v2  ;;  %v4502_v43 = vsel %vm3874_vm11, %v4494_v11, %v6476_v6 }
 0x4e3   : > { %v8959_v39 = vpop.permute.xlu1 %6488  ;;  %v6479_v62 = vpop.permute.xlu0 %6478  ;;  %v4510_v29 = vpack.c.bf16 %v4502_v43, %v4501_v22  ;;  %v4509_v24 = vpack.c.bf16 %v4478_v46, %v4477_v12  ;;  %v6440_v6 = vunpack.i.l.bf16 %v8943_v48  ;;  %v4495_v33 = vsel %vm3865_vm10, %v4487_v59, %v6451_v60 }
 0x4e4   : > { %v6490_v42 = vunpack.i.l.bf16 %v8959_v39  ;;  %v6481_v38 = vunpack.i.h.bf16 %v6479_v62  ;;  %v6480_v0 = vunpack.i.l.bf16 %v6479_v62 }
 0x4e5   : > { %4679 = vmatprep.mubr.bf16.mxu0 %v4510_v29 }
 0x4e6   : > { %4680 = vmatmul.mubr.bf16.vlgmr.msra.gmra.mxu0 %v4509_v24  ;;  %v4465_v23 = vsel %vm3856_vm9, %v8731_v18, %v6490_v42  ;;  %v4464_v52 = vsel %vm3856_vm9, %v8769_v58, %v6481_v38  ;;  %v4488_v1 = vsel %vm3856_vm9, %v8897_v35, %v6480_v0  ;;  %v6491_v35 = vunpack.i.h.bf16 %v8959_v39 }
 0x4e7   : > { %v8968_v20 = vpop.permute.xlu1 %6498  ;;  %v6484_v15 = vpop.permute.xlu0 %6483  ;;  %5559 = vmatpush3.bf16.msra.mxu0 %v8931_v13  ;;  %v6466_v42 = vunpack.i.h.bf16 %v8945_v63 }
 0x4e8   : > { %v6486_v26 = vunpack.i.h.bf16 %v6484_v15  ;;  %5560 = vmatprep.subr.bf16.mxu0 %v8966_v37  ;;  %v6485_v53 = vunpack.i.l.bf16 %v6484_v15  ;;  %v6500_v11 = vunpack.i.l.bf16 %v8968_v20  ;;  %v6465_v15 = vunpack.i.l.bf16 %v8945_v63 }
 0x4ea   : > { %v4471_v44 = vsel %vm3865_vm10, %v4464_v52, %v6486_v26  ;;  %v4496_v18 = vsel %vm3865_vm10, %v4488_v1, %v6485_v53  ;;  %v4467_v60 = vsel %vm3856_vm9, %v8812_v51, %v6500_v11 }
 0x4eb   : > { %v6504_v54 = vpop.permute.xlu1 %6503  ;;  %v6494_v56 = vpop.permute.xlu0 %6493  ;;  %5561 = vmatpush3.bf16.msra.mxu0 %v8966_v37  ;;  %v4479_v48 = vsel %vm3874_vm11, %v4471_v44, %v6440_v6 }
 0x4ec   : > { %v6505_v7 = vunpack.i.l.bf16 %v6504_v54  ;;  %v6496_v19 = vunpack.i.h.bf16 %v6494_v56  ;;  %v6495_v31 = vunpack.i.l.bf16 %v6494_v56  ;;  %v6506_v38 = vunpack.i.h.bf16 %v6504_v54 }
 0x4ed   : > { %v4489_v54 = vsel %vm3856_vm9, %v8883_v27, %v6491_v35 }
 0x4ee   : > { %v4472_v2 = vsel %vm3865_vm10, %v4465_v23, %v6505_v7  ;;  %v4503_v12 = vsel %vm3874_vm11, %v4495_v33, %v6495_v31  ;;  %v4504_v46 = vsel %vm3874_vm11, %v4496_v18, %v6496_v19  ;;  %v4497_v7 = vsel %vm3865_vm10, %v4489_v54, %v6506_v38 }
 0x4ef   : > { %v6509_v58 = vpop.permute.xlu1 %6508  ;;  %v4480_v10 = vsel %vm3874_vm11, %v4472_v2, %v6441_v49  ;;  %v6524_v22 = vpop.permute.xlu0 %6523  ;;  %v4513_v43 = vpack.c.bf16 %v4504_v46, %v4503_v12  ;;  %v6501_v31 = vunpack.i.h.bf16 %v8968_v20 }
 0x4f0   : > { %v6510_v62 = vunpack.i.l.bf16 %v6509_v58  ;;  %v6526_v29 = vunpack.i.h.bf16 %v6524_v22  ;;  %v6525_v24 = vunpack.i.l.bf16 %v6524_v22  ;;  %v4512_v9 = vpack.c.bf16 %v4480_v10, %v4479_v48 }
 0x4f1   : > { %4687 = vmatprep.mubr.bf16.mxu0 %v4513_v43  ;;  %v6511_v33 = vunpack.i.h.bf16 %v6509_v58  ;;  %v4491_v35 = vsel %vm3856_vm9, %v8916_v16, %v6501_v31 }
 0x4f2   : > { %v4466_v0 = vsel %vm3856_vm9, %v8746_v50, %v6526_v29  ;;  %v4490_v39 = vsel %vm3856_vm9, %v8910_v30, %v6525_v24  ;;  %4688 = vmatmul.mubr.bf16.gmra.mxu0 %v4512_v9  ;;  %v4474_v63 = vsel %vm3865_vm10, %v4467_v60, %v6510_v62 }
 0x4f3   : > { %v6514_v26 = vpop.permute.xlu1 %6513  ;;  %v6529_v59 = vpop.permute.xlu0 %6528  ;;  %v4473_v23 = vsel %vm3865_vm10, %v4466_v0, %v6466_v42  ;;  %v4498_v30 = vsel %vm3865_vm10, %v4490_v39, %v6465_v15  ;;  %v4499_v58 = vsel %vm3865_vm10, %v4491_v35, %v6511_v33 }
 0x4f4   : > { %v6516_v53 = vunpack.i.h.bf16 %v6514_v26  ;;  %v6515_v49 = vunpack.i.l.bf16 %v6514_v26  ;;  %v6531_v52 = vunpack.i.h.bf16 %v6529_v59  ;;  %v6530_v50 = vunpack.i.l.bf16 %v6529_v59 }
 0x4f6   : > { %v4481_v56 = vsel %vm3874_vm11, %v4473_v23, %v6515_v49  ;;  %v4482_v51 = vsel %vm3874_vm11, %v4474_v63, %v6516_v53  ;;  %v4505_v44 = vsel %vm3874_vm11, %v4497_v7, %v6530_v50  ;;  %v4506_v19 = vsel %vm3874_vm11, %v4498_v30, %v6531_v52 }
 0x4f7   : > { %v4300_v1 = vpop.permute.xlu1 %4299  ;;  %v6534_v27 = vpop.permute.xlu0 %6533  ;;  %v4516_v6 = vpack.c.bf16 %v4506_v19, %v4505_v44  ;;  %v4515_v2 = vpack.c.bf16 %v4482_v51, %v4481_v56 }
 0x4f8   : > { %v6535_v18 = vunpack.i.l.bf16 %v6534_v27  ;;  %v6536_v12 = vunpack.i.h.bf16 %v6534_v27 }
 0x4f9   : > { %4695 = vmatprep.mubr.bf16.mxu0 %v4516_v6 }
 0x4fa   : > { %v4492_v46 = vsel %vm3856_vm9, %v8926_v5, %v6535_v18  ;;  %4696 = vmatmul.mubr.bf16.gmra.mxu0 %v4515_v2  ;;  %v4469_v5 = vsel %vm3856_vm9, %v8804_v55, %v4300_v1  ;;  %v4468_v16 = vsel %vm3856_vm9, %v8839_v45, %v6536_v12  ;;  %v6584_v55 = vld [vmem:[%s9165_s8 + $0x8] sm:$0xff]   ;;  %v6585_v45 = vld [vmem:[%s9165_s8] sm:$0xff]  }
 0x4fb   : > { %v6519_v10 = vpop.permute.xlu1 %6518  ;;  %v6539_v22 = vpop.permute.xlu0 %6538  ;;  %v4500_v20 = vsel %vm3865_vm10, %v4492_v46, %v6421_v41  ;;  %5546 = vmatprep.subr.bf16.mxu1 %v6584_v55 }
 0x4fc   : > { %v6520_v11 = vunpack.i.l.bf16 %v6519_v10  ;;  %v6541_v43 = vunpack.i.h.bf16 %v6539_v22  ;;  %v6540_v48 = vunpack.i.l.bf16 %v6539_v22  ;;  %v4508_v62 = vsel %vm3874_vm11, %v4500_v20, %v6431_v8  ;;  %5547 = vmatpush3.bf16.msra.mxu1 %v6584_v55 }
 0x4fd   : > { %v6521_v29 = vunpack.i.h.bf16 %v6519_v10  ;;  %5548 = vmatprep.subr.bf16.mxu1 %v6585_v45 }
 0x4fe   : > { %v4507_v24 = vsel %vm3874_vm11, %v4499_v58, %v6520_v11  ;;  %v4475_v61 = vsel %vm3865_vm10, %v4468_v16, %v6540_v48  ;;  %v4476_v41 = vsel %vm3865_vm10, %v4469_v5, %v6541_v43 }
 0x4ff   : > { %v4519_v9 = vpack.c.bf16 %v4508_v62, %v4507_v24  ;;  %v4366_v42 = vpop.permute.xlu0 %4365  ;;  %v4483_v38 = vsel %vm3874_vm11, %v4475_v61, %v6521_v29 }
 0x500   : > { %v4484_v17 = vsel %vm3874_vm11, %v4476_v41, %v4366_v42  ;;  %5549 = vmatpush3.bf16.msra.mxu1 %v6585_v45  ;;  %v9081_v45 = vld [vmem:[%s9168_s11] ss:$0 sm:$0xff] }
 0x501   : > { %4703 = vmatprep.mubr.bf16.mxu0 %v4519_v9  ;;  %v4518_v8 = vpack.c.bf16 %v4484_v17, %v4483_v38  ;;  %5570 = vmatprep.subr.bf16.mxu1 %v8931_v13 }
 0x503   : > { %4704 = vmatmul.mubr.bf16.gmra.mxu0 %v4518_v8 }
 0x504   : > { %5562 = vmatprep.mubr.msk.bf16.mxu0 %vm3856_vm9, %v4937_v32 }
 0x50b   : > { %5563 = vmatmul.mubr.msk.bf16.vlgmr.msra.gmra.mxu0 %vm3856_vm9, %v4938_v36 }
 0x528   : > { %v5540_v14 = vpop.f32.mrf.mxu1 }
 0x52a   : > { %v4746_v32 = vpop.f32.mrf.mxu1 }
 0x52c   : > { %v5541_v39 = vpop.f32.mrf.mxu1 }
 0x52e   : > { %v4749_v23 = vpop.f32.mrf.mxu1 }
 0x530   : > { %v5544_v51 = vpop.f32.mrf.mxu1 }
 0x532   : > { %v4762_v33 = vpop.f32.mrf.mxu1 }
 0x534   : > { %v5545_v20 = vpop.f32.mrf.mxu1 }
 0x536   : > { %v4765_v61 = vpop.f32.mrf.mxu1 }
 0x5a6   : > { %v5440_v4 = vpop.f32.mrf.mxu0 }
 0x5a8   : > { %v5441_v25 = vpop.f32.mrf.mxu0 }
 0x5a9   : > { %v5442_v36 = vadd.f32 %v5441_v25, %v5440_v4 }
 0x5aa   : > { %v5443_v15 = vpop.f32.mrf.mxu0 }
 0x5ab   : > { %v4682_v0 = vadd.f32 %v5442_v36, %v9051_v40 }
 0x5ac   : > { %v5444_v26 = vpop.f32.mrf.mxu0 }
 0x5ad   : > { %v9054_v60 = vadd.f32 %v4746_v32, %v4682_v0  ;;  %v5445_v53 = vadd.f32 %v5444_v26, %v5443_v15 }
 0x5af   : > { %v5331_v49 = vmul.f32 -1.442695, %v9054_v60  ;;  %v4685_v59 = vadd.f32 %v5445_v53, %v9051_v40 }
 0x5b1   : > { %6714 = vpow2.f32 %v5331_v49  ;;  %v9058_v54 = vadd.f32 %v4749_v23, %v4685_v59 }
 0x5b2   : > { %v5446_v63 = vpop.f32.mrf.mxu0 }
 0x5b3   : > { %v5332_v52 = vmul.f32 -1.442695, %v9058_v54 }
 0x5b4   : > { %v5447_v50 = vpop.f32.mrf.mxu0 }
 0x5b5   : > { %6716 = vpow2.f32 %v5332_v52  ;;  %v5448_v7 = vadd.f32 %v5447_v50, %v5446_v63 }
 0x5b6   : > { %v5449_v30 = vpop.f32.mrf.mxu0 }
 0x5b7   : > { %v4690_v56 = vadd.f32 %v5448_v7, %v9051_v40 }
 0x5b8   : > { %v5450_v1 = vpop.f32.mrf.mxu0 }
 0x5b9   : > { %v9062_v44 = vadd.f32 %v5540_v14, %v4690_v56  ;;  %v5451_v19 = vadd.f32 %v5450_v1, %v5449_v30 }
 0x5ba   : > { %v5452_v31 = vpop.f32.mrf.mxu0 }
 0x5bb   : > { %v5333_v27 = vmul.f32 -1.442695, %v9062_v44  ;;  %v4693_v6 = vadd.f32 %v5451_v19, %v9051_v40 }
 0x5bc   : > { %v5453_v18 = vpop.f32.mrf.mxu0 }
 0x5bd   : > { %6718 = vpow2.f32 %v5333_v27  ;;  %v9066_v2 = vadd.f32 %v5541_v39, %v4693_v6  ;;  %v5454_v12 = vadd.f32 %v5453_v18, %v5452_v31 }
 0x5be   : > { %v6715_v46 = vpop.eup %6714  ;;  %v5455_v10 = vpop.f32.mrf.mxu0 }
 0x5bf   : > { %v4801_v35 = vadd.f32 1.0, %v6715_v46  ;;  %v5334_v11 = vmul.f32 -1.442695, %v9066_v2  ;;  %v4698_v22 = vadd.f32 %v5454_v12, %v9051_v40 }
 0x5c0   : > { %v5456_v58 = vpop.f32.mrf.mxu0 }
 0x5c1   : > { %v9070_v43 = vadd.f32 %v4762_v33, %v4698_v22  ;;  %v5457_v48 = vadd.f32 %v5456_v58, %v5455_v10  ;;  %6720 = vpow2.f32 %v5334_v11 }
 0x5c2   : > { %v6717_v62 = vpop.eup %6716  ;;  %6722 = vrcp.f32 %v4801_v35 }
 0x5c3   : > { %v4802_v5 = vadd.f32 1.0, %v6717_v62  ;;  %v5335_v16 = vmul.f32 -1.442695, %v9070_v43  ;;  %v4701_v29 = vadd.f32 %v5457_v48, %v9051_v40  ;;  %v5458_v24 = vpop.f32.mrf.mxu0 }
 0x5c5   : > { %6724 = vrcp.f32 %v4802_v5  ;;  %v9074_v41 = vadd.f32 %v4765_v61, %v4701_v29  ;;  %v5459_v9 = vpop.f32.mrf.mxu0 }
 0x5c6   : > { %6726 = vpow2.f32 %v5335_v16  ;;  %v5460_v42 = vadd.f32 %v5459_v9, %v5458_v24 }
 0x5c7   : > { %v5336_v38 = vmul.f32 -1.442695, %v9074_v41  ;;  %v5461_v17 = vpop.f32.mrf.mxu0 }
 0x5c8   : > { %v4706_v8 = vadd.f32 %v5460_v42, %v9051_v40 }
 0x5c9   : > { %6728 = vpow2.f32 %v5336_v38  ;;  %v5462_v55 = vpop.f32.mrf.mxu0 }
 0x5ca   : > { %v6719_v14 = vpop.eup %6718  ;;  %v4771_v4 = vadd.f32 %v5544_v51, %v4706_v8  ;;  %v5463_v32 = vadd.f32 %v5462_v55, %v5461_v17 }
 0x5cb   : > { %v4803_v25 = vadd.f32 1.0, %v6719_v14  ;;  %v5564_v36 = vpop.f32.mrf.mxu0 }
 0x5cc   : > { %v5337_v15 = vmul.f32 -1.442695, %v4771_v4  ;;  %v4709_v0 = vadd.f32 %v5463_v32, %v9051_v40  ;;  %v5019_v39 = vadd.f32 %v5564_v36, %v9081_v45 }
 0x5cd   : > { %v5010_v26 = vpop.f32.mrf.mxu0 }
 0x5ce   : > { %6730 = vpow2.f32 %v5337_v15  ;;  %v4774_v53 = vadd.f32 %v5545_v20, %v4709_v0  ;;  %5053 = vrot.lane.b32.xlu1 %v5019_v39, %s6761_s17  ;;  %v6721_v49 = vpop.eup %6720  ;;  %v5011_v50 = vadd.f32 %v9081_v45, %v5010_v26 }
 0x5cf   : > { %6732 = vrcp.f32 %v4803_v25  ;;  %v5565_v59 = vpop.f32.mrf.mxu0  ;;  %v6723_v23 = vpop.eup %6722  ;;  %v4804_v63 = vadd.f32 1.0, %v6721_v49 }
 0x5d0   : > { %v5338_v52 = vmul.f32 -1.442695, %v4774_v53  ;;  %v5022_v7 = vadd.f32 %v5565_v59, %v9081_v45  ;;  %v4825_v51 = vmul.f32 %v6723_v23, %v9054_v60 }
 0x5d1   : > { %v5013_v30 = vpop.f32.mrf.mxu0  ;;  %6734 = vrcp.f32 %v4804_v63 }
 0x5d2   : > { %v6725_v56 = vpop.eup %6724  ;;  %5055 = vrot.lane.b32.xlu0 %v5022_v7, %s6761_s17  ;;  %5049 = vrot.lane.b32.xlu1 %v5011_v50, %s6761_s17  ;;  %6736 = vpow2.f32 %v5338_v52  ;;  %v5014_v31 = vadd.f32 %v9081_v45, %v5013_v30 }
 0x5d3   : > { %v6727_v40 = vpop.eup %6726  ;;  %v4826_v1 = vmul.f32 %v6725_v56, %v9058_v54 }
 0x5d4   : > { %v4805_v19 = vadd.f32 1.0, %v6727_v40 }
 0x5d5   : > { %v4833_v27 = vpack.c.bf16 %v4826_v1, %v4825_v51 }
 0x5d6   : > { %v6729_v6 = vpop.eup %6728  ;;  %5051 = vrot.lane.b32.xlu0 %v5014_v31, %s6761_s17  ;;  %6738 = vrcp.f32 %v4805_v19 }
 0x5d7   : > { %v4806_v33 = vadd.f32 1.0, %v6729_v6  ;;  %5550 = vmatprep.mubr.msk.bf16.mxu1 %vm3856_vm9, %v4833_v27 }
 0x5d9   : > { %6740 = vrcp.f32 %v4806_v33 }
 0x5db   : > { %v6731_v18 = vpop.eup %6730 }
 0x5dc   : > { %v6733_v12 = vpop.eup %6732  ;;  %v4807_v46 = vadd.f32 1.0, %v6731_v18 }
 0x5dd   : > { %v4827_v54 = vmul.f32 %v6733_v12, %v9062_v44 }
 0x5de   : > { %v6735_v10 = vpop.eup %6734  ;;  %6742 = vrcp.f32 %v4807_v46 }
 0x5df   : > { %v6737_v60 = vpop.eup %6736  ;;  %v4828_v35 = vmul.f32 %v6735_v10, %v9066_v2 }
 0x5e0   : > { %v4808_v11 = vadd.f32 1.0, %v6737_v60 }
 0x5e1   : > { %v4834_v22 = vpack.c.bf16 %v4828_v35, %v4827_v54 }
 0x5e2   : > { %6744 = vrcp.f32 %v4808_v11 }
 0x5e3   : > { %v6739_v20 = vpop.eup %6738  ;;  %5551 = vmatmul.mubr.msk.bf16.vlgmr.msra.gmra.mxu1 %vm3856_vm9, %v4834_v22 }
 0x5e4   : > { %5572 = vmatpush3.bf16.msra.mxu1 %v8931_v13  ;;  %v4829_v48 = vmul.f32 %v6739_v20, %v9070_v43 }
 0x5e5   : > { %5571 = vmatprep.subr.bf16.mxu1 %v8966_v37 }
 0x5e6   : > { %v6741_v58 = vpop.eup %6740 }
 0x5e7   : > { %v4830_v62 = vmul.f32 %v6741_v58, %v9074_v41 }
 0x5e8   : > { %5573 = vmatpush3.bf16.msra.mxu1 %v8966_v37  ;;  %v5339_v37 = vld [vmem:[%s9166_s9] ss:$0 sm:$0xff] }
 0x5e9   : > { %v4835_v44 = vpack.c.bf16 %v4830_v62, %v4829_v48 }
 0x5eb   : > { %5554 = vmatprep.mubr.msk.bf16.mxu1 %vm3856_vm9, %v4835_v44  ;;  %v6743_v2 = vpop.eup %6742 }
 0x5ec   : > { %v4831_v16 = vmul.f32 %v6743_v2, %v4771_v4 }
 0x5ef   : > { %v6745_v5 = vpop.eup %6744 }
 0x5f0   : > { %v4832_v29 = vmul.f32 %v6745_v5, %v4774_v53 }
 0x5f2   : > { %v4836_v24 = vpack.c.bf16 %v4832_v29, %v4831_v16 }
 0x5f4   : > { %5555 = vmatmul.mubr.msk.bf16.gmra.mxu1 %vm3856_vm9, %v4836_v24 }
 0x5f5   : > { %5566 = vmatprep.mubr.msk.bf16.mxu1 %vm3856_vm9, %v4939_v57 }
 0x5fc   : > { %5567 = vmatmul.mubr.msk.bf16.vlgmr.msra.gmra.mxu1 %vm3856_vm9, %v4940_v3 }
 0x640   : > { %v5054_v13 = vpop.permute.xlu1 %5053 }
 0x644   : > { %v5056_v21 = vpop.permute.xlu0 %5055  ;;  %v5050_v57 = vpop.permute.xlu1 %5049 }
 0x648   : > { %v5052_v8 = vpop.permute.xlu0 %5051 }
 0x6a3   : > { %v5552_v43 = vpop.f32.mrf.mxu1 }
 0x6a4   : > { %v4915_v34 = vadd.f32 %v5552_v43, %v5339_v37 }
 0x6a5   : > { %v4906_v47 = vpop.f32.mrf.mxu1 }
 0x6a6   : > { %v5075_v28 = vsel %vm1908_vm8, %v4915_v34, %v5054_v13  ;;  %v4907_v3 = vadd.f32 %v5339_v37, %v4906_v47 }
 0x6a7   : > { %5084 = vst.msk [vmem:[%s9120_s14 + $0x10] sm:$0xff] %vm5081_vm0, %v5075_v28  ;;  %v5553_v61 = vpop.f32.mrf.mxu1 }
 0x6a8   : > { %v5073_v41 = vsel %vm1908_vm8, %v4907_v3, %v5050_v57  ;;  %v4918_v9 = vadd.f32 %v5553_v61, %v5339_v37 }
 0x6a9   : > { %5082 = vst.msk [vmem:[%s9120_s14] sm:$0xff] %vm5081_vm0, %v5073_v41  ;;  %v4909_v42 = vpop.f32.mrf.mxu1 }
 0x6aa   : > { %v5076_v38 = vsel %vm1908_vm8, %v4918_v9, %v5056_v21  ;;  %v4910_v17 = vadd.f32 %v5339_v37, %v4909_v42 }
 0x6ab   : > { %5085 = vst.msk [vmem:[%s9120_s14 + $0x18] sm:$0xff] %vm5081_vm0, %v5076_v38 }
 0x6ac   : > { %v5074_v55 = vsel %vm1908_vm8, %v4910_v17, %v5052_v8 }
 0x6ad   : > { %5083 = vst.msk [vmem:[%s9120_s14 + $0x8] sm:$0xff] %vm5081_vm0, %v5074_v55 }
 0x6b4   : > { %v5556_v14 = vpop.f32.mrf.mxu1 }
 0x6b5   : > { %v4931_v4 = vadd.f32 %v5556_v14, %v5339_v37 }
 0x6b6   : > { %v4922_v32 = vpop.f32.mrf.mxu1 }
 0x6b7   : > { %v4923_v25 = vadd.f32 %v5339_v37, %v4922_v32 }
 0x6b8   : > { %v5557_v36 = vpop.f32.mrf.mxu1 }
 0x6b9   : > { %v4934_v15 = vadd.f32 %v5557_v36, %v5339_v37 }
 0x6ba   : > { %v4925_v0 = vpop.f32.mrf.mxu1 }
 0x6bb   : > { %v4926_v39 = vadd.f32 %v5339_v37, %v4925_v0 }
 0x6bc   : > { %v5568_v26 = vpop.f32.mrf.mxu1 }
 0x6bd   : > { %v5035_v63 = vadd.f32 %v5568_v26, %v9081_v45 }
 0x6be   : > { %v5026_v53 = vpop.f32.mrf.mxu1 }
 0x6bf   : > { %v5027_v49 = vadd.f32 %v9081_v45, %v5026_v53 }
 0x6c0   : > { %v5569_v59 = vpop.f32.mrf.mxu1 }
 0x6c1   : > { %5057 = vrot.lane.b32.xlu1 %v5027_v49, %s6761_s17  ;;  %v5038_v50 = vadd.f32 %v5569_v59, %v9081_v45 }
 0x6c2   : > { %v5029_v23 = vpop.f32.mrf.mxu1 }
 0x6c3   : > { %v5030_v52 = vadd.f32 %v9081_v45, %v5029_v23 }
 0x6c5   : > { %5059 = vrot.lane.b32.xlu0 %v5030_v52, %s6761_s17  ;;  %5061 = vrot.lane.b32.xlu1 %v5035_v63, %s6761_s17 }
 0x6c9   : > { %5063 = vrot.lane.b32.xlu0 %v5038_v50, %s6761_s17 }
 0x733   : > { %v5058_v7 = vpop.permute.xlu1 %5057 }
 0x734   : > { %v5077_v30 = vsel %vm1908_vm8, %v4923_v25, %v5058_v7 }
 0x735   : > { %5086 = vst.msk [vmem:[%s9120_s14 + $0x20] sm:$0xff] %vm5081_vm0, %v5077_v30 }
 0x737   : > { %v5060_v56 = vpop.permute.xlu0 %5059  ;;  %v5062_v40 = vpop.permute.xlu1 %5061 }
 0x738   : > { %v5078_v51 = vsel %vm1908_vm8, %v4926_v39, %v5060_v56  ;;  %v5079_v1 = vsel %vm1908_vm8, %v4931_v4, %v5062_v40 }
 0x739   : > { %5087 = vst.msk [vmem:[%s9120_s14 + $0x28] sm:$0xff] %vm5081_vm0, %v5078_v51  ;;  %5088 = vst.msk [vmem:[%s9120_s14 + $0x30] sm:$0xff] %vm5081_vm0, %v5079_v1 }
 0x73b   : > { %v5064_v19 = vpop.permute.xlu0 %5063 }
 0x73c   : > { %v5080_v45 = vsel %vm1908_vm8, %v4934_v15, %v5064_v19 }
 0x73d   : > { %5089 = vst.msk [vmem:[%s9120_s14 + $0x38] sm:$0xff] %vm5081_vm0, %v5080_v45 }
 0x73e PF: > { %s22_s21 = sadd.s32 1, %s6753_s21  }
 0x73f   : > { %p19_p4 = scmp.ge.s32.totalorder %s22_s21, 4  }
 0x741   :  { %21 = sbr.rel (!%p19_p4) target bundleno = 1 (0x1), region = 101 }

</bundles_post_ra>
